<compile_context>
chip_gen: v7x
topology: tpu7x:2x2x1
jax: 0.10.0
libtpu: 0.0.40
codegen_flags: <defaults>
</compile_context>

<pallas_src>
import functools
import math

import jax
import jax.numpy as jnp
import numpy as np
from jax import lax
from jax.experimental import pallas as pl
from jax.experimental.pallas import tpu as pltpu


def _layer_norm(x, gamma, beta, eps):
    mu = jnp.mean(x, axis=-1, keepdims=True)
    var = jnp.mean(jnp.square(x - mu), axis=-1, keepdims=True)
    return (x - mu) * lax.rsqrt(var + eps) * gamma + beta


def _bsarec_kernel(x_ref, mask_ref, wqkv_ref, bqkv_ref, wd_ref, bd_ref,
                   g1_ref, b1_ref, lpa_ref, lpb_ref, sb2_ref, g2_ref, b2_ref,
                   out_ref, *, n_heads, ln_eps, alpha, batch_block):
    f32 = jnp.float32
    bf16 = jnp.bfloat16

    @pl.loop(0, batch_block)          # bounds live ranges across batch rows
    def _(row):
        x = x_ref[row]                # [S, H] f32 (residual path stays f32)
        xb = x.astype(bf16)
        mask = mask_ref[row]          # [1, S] additive key-padding row

        # ---------------- self-attention branch --------------------------
        # Per-head weights were pre-sliced in the wrapper, so no 32-lane
        # slicing of activations happens in-kernel; the output projection is
        # distributed over heads, so per-head context is never concatenated.
        acc = jnp.zeros(x.shape, f32)
        for h in range(n_heads):                       # static unroll (4 heads)
            # 1/sqrt(head_dim) is already folded into the Q weights/bias.
            qh = jnp.dot(xb, wqkv_ref[0, h], preferred_element_type=f32) + bqkv_ref[0, h]
            kh = jnp.dot(xb, wqkv_ref[1, h], preferred_element_type=f32) + bqkv_ref[1, h]
            vh = jnp.dot(xb, wqkv_ref[2, h], preferred_element_type=f32) + bqkv_ref[2, h]
            scores = lax.dot_general(                   # [S, S]: q @ k^T
                qh.astype(bf16), kh.astype(bf16),
                (((1,), (1,)), ((), ())), preferred_element_type=f32)
            scores = scores + mask                      # broadcast over queries
            m = jnp.max(scores, axis=-1, keepdims=True)            # XLU reduce
            p = jnp.exp(scores - m)                                # EUP
            denom = jnp.sum(p, axis=-1, keepdims=True)             # XLU reduce
            p = p * pl.reciprocal(denom, approx=True)              # EUP (free slot)
            # TODO(synk): attn_dropout / out_dropout run in inference mode (identity).
            ctx = jnp.dot(p.astype(bf16), vh.astype(bf16),
                          preferred_element_type=f32)              # [S, dh]
            acc = acc + jnp.dot(ctx.astype(bf16), wd_ref[h],
                                preferred_element_type=f32)        # [S, H]
        hidden = _layer_norm(acc + bd_ref[...] + x,
                             g1_ref[...], b1_ref[...], ln_eps)

        # ---------------- FrequencyLayer branch --------------------------
        # rfft -> zero bins >= c -> irfft is an exact rank-(2c-1) projector on
        # the sequence axis; applied here as two skinny bf16 MXU matmuls.
        tmp = jnp.dot(lpb_ref[...], xb, preferred_element_type=f32)       # [rp, H]
        low = jnp.dot(lpa_ref[...], tmp.astype(bf16),
                      preferred_element_type=f32)                         # [S, H]
        semb = low + sb2_ref[...] * (x - low)
        dsp = _layer_norm(semb + x, g2_ref[...], b2_ref[...], 1e-12)

        out_ref[row] = (alpha * dsp + (1.0 - alpha) * hidden).astype(out_ref.dtype)


def prepare_params(params, *, seq_len, n_heads, c=4):
    """One-time constant preparation (hoisted out of the forward path)."""
    H = params["wq"].shape[0]
    dh = H // n_heads
    inv_sqrt_d = 1.0 / math.sqrt(dh)
    f32, bf16 = jnp.float32, jnp.bfloat16

    def heads_in_out(w):          # [H_in, H_out] -> [n_heads, H_in, dh]
        return np.asarray(w, np.float32).reshape(H, n_heads, dh).transpose(1, 0, 2)

    def heads_bias(b):            # [H_out] -> [n_heads, 1, dh]
        return np.asarray(b, np.float32).reshape(n_heads, 1, dh)

    wqkv = np.stack([heads_in_out(params["wq"]) * inv_sqrt_d,   # scale folded into Q
                     heads_in_out(params["wk"]),
                     heads_in_out(params["wv"])])               # [3, nh, H, dh]
    bqkv = np.stack([heads_bias(params["bq"]) * inv_sqrt_d,
                     heads_bias(params["bk"]),
                     heads_bias(params["bv"])])                 # [3, nh, 1, dh]
    wd = np.asarray(params["wd"], np.float32).reshape(n_heads, dh, H)

    # Low-pass operator built once with numpy (no per-call jnp.fft), then
    # factored via SVD into skinny left/right factors padded to 8 sublanes.
    eye = np.eye(seq_len, dtype=np.float64)
    spec = np.fft.rfft(eye, axis=0, norm="ortho")
    spec[c:, :] = 0.0
    lowpass = np.fft.irfft(spec, n=seq_len, axis=0, norm="ortho")   # [S, S]
    u, s, vt = np.linalg.svd(lowpass)
    rank = max(1, int(np.sum(s > 1e-6 * s[0])))                     # = 2c-1 = 7
    rank_pad = -(-rank // 8) * 8
    lpa = np.zeros((seq_len, rank_pad), np.float32)
    lpb = np.zeros((rank_pad, seq_len), np.float32)
    lpa[:, :rank] = u[:, :rank] * s[:rank]
    lpb[:rank, :] = vt[:rank, :]

    return {
        "n_heads": n_heads, "head_dim": dh, "hidden": H, "lp_rank": rank_pad,
        "wqkv": jnp.asarray(wqkv, bf16),
        "bqkv": jnp.asarray(bqkv, f32),
        "wd": jnp.asarray(wd, bf16),
        "bd": jnp.asarray(np.asarray(params["bd"], np.float32)[None, :], f32),
        "g1": jnp.asarray(np.asarray(params["ln_gamma"], np.float32)[None, :], f32),
        "b1": jnp.asarray(np.asarray(params["ln_beta"], np.float32)[None, :], f32),
        "lpa": jnp.asarray(lpa, bf16),
        "lpb": jnp.asarray(lpb, bf16),
        "sb2": jnp.asarray(
            np.asarray(params["sqrt_beta"], np.float32).reshape(1, H) ** 2, f32),
        "g2": jnp.asarray(np.asarray(params["fl_ln_gamma"], np.float32)[None, :], f32),
        "b2": jnp.asarray(np.asarray(params["fl_ln_beta"], np.float32)[None, :], f32),
    }


def mha_forward(x, key_mask, prep, *, alpha=0.5, ln_eps=1e-12, batch_block=None):
    """x: [B, S, H]; key_mask: [B, S] additive key-padding row (0 valid, -1e4 pad)."""
    B, S, H = x.shape
    nh, dh, rp = prep["n_heads"], prep["head_dim"], prep["lp_rank"]
    if batch_block is None:
        # keep >= 4 grid steps so both v7x TensorCores pipeline >= 2 steps each
        batch_block = max(1, min(8, B // 4))
    bt = max(1, min(batch_block, B))
    pad = (-B) % bt
    if pad:
        x = jnp.concatenate([x, jnp.zeros((pad, S, H), x.dtype)], axis=0)
        key_mask = jnp.concatenate(
            [key_mask, jnp.zeros((pad, S), key_mask.dtype)], axis=0)
    Bp = B + pad

    x = x.astype(jnp.float32)
    mask = key_mask.astype(jnp.float32).reshape(Bp, 1, S)

    kernel = functools.partial(_bsarec_kernel, n_heads=nh, ln_eps=ln_eps,
                               alpha=alpha, batch_block=bt)

    c2 = lambda b: (0, 0)
    c3 = lambda b: (0, 0, 0)
    c4 = lambda b: (0, 0, 0, 0)

    flops = int(Bp * (6 * S * H * H          # per-head Q/K/V projections
                      + 4 * S * S * H        # scores + context
                      + 2 * S * H * H        # distributed output projection
                      + 4 * S * rp * H))     # factored low-pass
    bytes_accessed = int(x.size * 4 + mask.size * 4 + Bp * S * H * 4
                         + prep["wqkv"].size * 2 + prep["wd"].size * 2
                         + (prep["lpa"].size + prep["lpb"].size) * 2)

    out = pl.pallas_call(
        kernel,
        out_shape=jax.ShapeDtypeStruct((Bp, S, H), jnp.float32),
        grid_spec=pltpu.PrefetchScalarGridSpec(
            num_scalar_prefetch=0,
            grid=(Bp // bt,),
            in_specs=[
                pl.BlockSpec((bt, S, H), lambda b: (b, 0, 0)),   # x
                pl.BlockSpec((bt, 1, S), lambda b: (b, 0, 0)),   # key-padding rows
                # constants: DMA'd once, VMEM-resident across the whole grid
                pl.BlockSpec((3, nh, H, dh), c4),                # Wq/Wk/Wv per head
                pl.BlockSpec((3, nh, 1, dh), c4),                # bq/bk/bv per head
                pl.BlockSpec((nh, dh, H), c3),                   # Wdense per head
                pl.BlockSpec((1, H), c2),                        # bdense
                pl.BlockSpec((1, H), c2),                        # LN gamma
                pl.BlockSpec((1, H), c2),                        # LN beta
                pl.BlockSpec((S, rp), c2),                       # low-pass left factor
                pl.BlockSpec((rp, S), c2),                       # low-pass right factor
                pl.BlockSpec((1, H), c2),                        # sqrt_beta ** 2
                pl.BlockSpec((1, H), c2),                        # filter LN gamma
                pl.BlockSpec((1, H), c2),                        # filter LN beta
            ],
            out_specs=pl.BlockSpec((bt, S, H), lambda b: (b, 0, 0)),
        ),
        compiler_params=pltpu.CompilerParams(
            dimension_semantics=("parallel",),     # megacore sharding on v7x
            vmem_limit_bytes=32 * 1024 * 1024,     # safe on v5e/v6e/v7x
        ),
        cost_estimate=pl.CostEstimate(
            flops=flops,
            transcendentals=int(Bp * nh * S * S),
            bytes_accessed=bytes_accessed,
        ),
    )(x, mask, prep["wqkv"], prep["bqkv"], prep["wd"], prep["bd"],
      prep["g1"], prep["b1"], prep["lpa"], prep["lpb"], prep["sb2"],
      prep["g2"], prep["b2"])
    return out[:B]


def mha_reference(x, key_mask, params, *, n_heads, c=4, alpha=0.5, ln_eps=1e-12):
    """Pure-JAX f32 reference mirroring the PyTorch forward (eval mode)."""
    B, S, H = x.shape
    dh = H // n_heads

    def ln(y, g, b, eps):
        mu = jnp.mean(y, axis=-1, keepdims=True)
        var = jnp.mean((y - mu) ** 2, axis=-1, keepdims=True)
        return (y - mu) / jnp.sqrt(var + eps) * g + b

    q = x @ params["wq"] + params["bq"]
    k = x @ params["wk"] + params["bk"]
    v = x @ params["wv"] + params["bv"]
    split = lambda t: t.reshape(B, S, n_heads, dh).transpose(0, 2, 1, 3)
    qh, kh, vh = split(q), split(k), split(v)
    scores = qh @ kh.transpose(0, 1, 3, 2) / math.sqrt(dh)
    scores = scores + key_mask[:, None, None, :]
    probs = jax.nn.softmax(scores, axis=-1)
    ctx = (probs @ vh).transpose(0, 2, 1, 3).reshape(B, S, H)
    hidden = ctx @ params["wd"] + params["bd"]
    hidden = ln(hidden + x, params["ln_gamma"], params["ln_beta"], ln_eps)

    xf = jnp.fft.rfft(x, axis=1, norm="ortho")
    xf = xf.at[:, c:, :].set(0)
    low = jnp.fft.irfft(xf, n=S, axis=1, norm="ortho")
    high = x - low
    semb = low + params["sqrt_beta"].reshape(1, 1, H) ** 2 * high
    dsp = ln(semb + x, params["fl_ln_gamma"], params["fl_ln_beta"], 1e-12)
    return alpha * dsp + (1.0 - alpha) * hidden


if __name__ == "__main__":
    B, S, H, NH = 8, 128, 128, 4    # lane-dense S/H; grid = B/Bt = 4 steps

    key = jax.random.PRNGKey(0)
    keys = jax.random.split(key, 16)
    stdv = 1.0 / math.sqrt(2 * H)   # matches the module's reset_parameters
    u = lambda k, shape: jax.random.uniform(k, shape, jnp.float32, -stdv, stdv)
    params = {
        "wq": u(keys[0], (H, H)), "bq": u(keys[1], (H,)),
        "wk": u(keys[2], (H, H)), "bk": u(keys[3], (H,)),
        "wv": u(keys[4], (H, H)), "bv": u(keys[5], (H,)),
        "wd": u(keys[6], (H, H)), "bd": u(keys[7], (H,)),
        "ln_gamma": 1.0 + u(keys[8], (H,)), "ln_beta": u(keys[9], (H,)),
        "sqrt_beta": u(keys[10], (1, 1, H)),
        "fl_ln_gamma": 1.0 + u(keys[11], (H,)), "fl_ln_beta": u(keys[12], (H,)),
    }
    x = jax.random.normal(keys[13], (B, S, H), jnp.float32)

    # Additive key-padding rows: 0 for valid keys, -1e4 for padded keys.
    lengths = jnp.array([S, 96, 64, 32, 120, 80, 48, 16])
    valid = (jnp.arange(S)[None, :] < lengths[:, None]).astype(jnp.float32)
    key_mask = (1.0 - valid) * -1e4                       # [B, S]

    prep = prepare_params(params, seq_len=S, n_heads=NH)  # one-time constants
    out = jax.block_until_ready(mha_forward(x, key_mask, prep))

    ref = mha_reference(x, key_mask, params, n_heads=NH)
    np.testing.assert_allclose(np.asarray(out), np.asarray(ref),
                               rtol=5e-2, atol=5e-2)
    print("KERNEL_OK")
</pallas_src>

<mosaic_0001>
module attributes {stable_mosaic.version = 11 : i64} {
  func.func @_bsarec_kernel(%arg0: i32, %arg1: memref<2x128x128xf32, #tpu.memory_space<vmem>>, %arg2: memref<2x1x128xf32, #tpu.memory_space<vmem>>, %arg3: memref<3x4x128x32xbf16, #tpu.memory_space<vmem>>, %arg4: memref<3x4x1x32xf32, #tpu.memory_space<vmem>>, %arg5: memref<4x32x128xbf16, #tpu.memory_space<vmem>>, %arg6: memref<1x128xf32, #tpu.memory_space<vmem>>, %arg7: memref<1x128xf32, #tpu.memory_space<vmem>>, %arg8: memref<1x128xf32, #tpu.memory_space<vmem>>, %arg9: memref<128x8xbf16, #tpu.memory_space<vmem>>, %arg10: memref<8x128xbf16, #tpu.memory_space<vmem>>, %arg11: memref<1x128xf32, #tpu.memory_space<vmem>>, %arg12: memref<1x128xf32, #tpu.memory_space<vmem>>, %arg13: memref<1x128xf32, #tpu.memory_space<vmem>>, %arg14: memref<2x128x128xf32, #tpu.memory_space<vmem>>) attributes {dimension_semantics = [#tpu.dimension_semantics<parallel>], iteration_bounds = array<i64: 4>, scalar_prefetch = 0 : i64, scratch_operands = 0 : i64, tpu.core_type = #tpu.core_type<tc>, window_params = [{transform_indices = @transform_0, window_bounds = array<i64: 2, 128, 128>}, {transform_indices = @transform_1, window_bounds = array<i64: 2, 1, 128>}, {pipeline_mode = #tpu.pipeline_mode<synchronous>, transform_indices = @transform_2, window_bounds = array<i64: 3, 4, 128, 32>}, {pipeline_mode = #tpu.pipeline_mode<synchronous>, transform_indices = @transform_3, window_bounds = array<i64: 3, 4, 1, 32>}, {pipeline_mode = #tpu.pipeline_mode<synchronous>, transform_indices = @transform_4, window_bounds = array<i64: 4, 32, 128>}, {pipeline_mode = #tpu.pipeline_mode<synchronous>, transform_indices = @transform_5, window_bounds = array<i64: 1, 128>}, {pipeline_mode = #tpu.pipeline_mode<synchronous>, transform_indices = @transform_6, window_bounds = array<i64: 1, 128>}, {pipeline_mode = #tpu.pipeline_mode<synchronous>, transform_indices = @transform_7, window_bounds = array<i64: 1, 128>}, {pipeline_mode = #tpu.pipeline_mode<synchronous>, transform_indices = @transform_8, window_bounds = array<i64: 128, 8>}, {pipeline_mode = #tpu.pipeline_mode<synchronous>, transform_indices = @transform_9, window_bounds = array<i64: 8, 128>}, {pipeline_mode = #tpu.pipeline_mode<synchronous>, transform_indices = @transform_10, window_bounds = array<i64: 1, 128>}, {pipeline_mode = #tpu.pipeline_mode<synchronous>, transform_indices = @transform_11, window_bounds = array<i64: 1, 128>}, {pipeline_mode = #tpu.pipeline_mode<synchronous>, transform_indices = @transform_12, window_bounds = array<i64: 1, 128>}, {transform_indices = @transform_13, window_bounds = array<i64: 2, 128, 128>}]} {
    %c0_i32 = arith.constant 0 : i32
    %c2_i32 = arith.constant 2 : i32
    %0 = arith.addi %c0_i32, %c2_i32 : i32
    %c1_i32 = arith.constant 1 : i32
    scf.for %arg15 = %c0_i32 to %0 step %c1_i32  : i32 {
      %c1_i32_1 = arith.constant 1 : i32
      %1 = arith.muli %arg15, %c1_i32_1 : i32
      %c0_i32_2 = arith.constant 0 : i32
      %2 = arith.addi %c0_i32_2, %1 : i32
      %3 = arith.index_cast %2 : i32 to index
      %c0 = arith.constant 0 : index
      %c0_3 = arith.constant 0 : index
      %4 = vector.load %arg1[%3, %c0, %c0_3] : memref<2x128x128xf32, #tpu.memory_space<vmem>>, vector<1x128x128xf32>
      %5 = vector.shape_cast %4 : vector<1x128x128xf32> to vector<128x128xf32>
      %6 = arith.truncf %5 : vector<128x128xf32> to vector<128x128xbf16>
      %7 = arith.index_cast %2 : i32 to index
      %c0_4 = arith.constant 0 : index
      %c0_5 = arith.constant 0 : index
      %8 = vector.load %arg2[%7, %c0_4, %c0_5] : memref<2x1x128xf32, #tpu.memory_space<vmem>>, vector<1x1x128xf32>
      %9 = vector.shape_cast %8 : vector<1x1x128xf32> to vector<1x128xf32>
      %cst = arith.constant 0.000000e+00 : f32
      %10 = vector.broadcast %cst : f32 to vector<128x128xf32>
      %c0_6 = arith.constant 0 : index
      %c0_7 = arith.constant 0 : index
      %c0_8 = arith.constant 0 : index
      %c0_9 = arith.constant 0 : index
      %11 = vector.load %arg3[%c0_6, %c0_7, %c0_8, %c0_9] : memref<3x4x128x32xbf16, #tpu.memory_space<vmem>>, vector<1x1x128x32xbf16>
      %12 = vector.shape_cast %11 : vector<1x1x128x32xbf16> to vector<128x32xbf16>
      %cst_10 = arith.constant dense<0.000000e+00> : vector<128x32xf32>
      %13 = tpu.matmul %6, %12, %cst_10 {dimension_numbers = #tpu.dot_dimension_numbers<[1], [0], [0], [1], [0, 0, 1, 1], [], []>} : vector<128x128xbf16>, vector<128x32xbf16>, vector<128x32xf32> -> vector<128x32xf32>
      %c0_11 = arith.constant 0 : index
      %c0_12 = arith.constant 0 : index
      %c0_13 = arith.constant 0 : index
      %c0_14 = arith.constant 0 : index
      %14 = vector.load %arg4[%c0_11, %c0_12, %c0_13, %c0_14] : memref<3x4x1x32xf32, #tpu.memory_space<vmem>>, vector<1x1x1x32xf32>
      %15 = vector.shape_cast %14 : vector<1x1x1x32xf32> to vector<1x32xf32>
      %16 = vector.broadcast %15 : vector<1x32xf32> to vector<128x32xf32>
      %17 = arith.addf %13, %16 : vector<128x32xf32>
      %c1 = arith.constant 1 : index
      %c0_15 = arith.constant 0 : index
      %c0_16 = arith.constant 0 : index
      %c0_17 = arith.constant 0 : index
      %18 = vector.load %arg3[%c1, %c0_15, %c0_16, %c0_17] : memref<3x4x128x32xbf16, #tpu.memory_space<vmem>>, vector<1x1x128x32xbf16>
      %19 = vector.shape_cast %18 : vector<1x1x128x32xbf16> to vector<128x32xbf16>
      %cst_18 = arith.constant dense<0.000000e+00> : vector<128x32xf32>
      %20 = tpu.matmul %6, %19, %cst_18 {dimension_numbers = #tpu.dot_dimension_numbers<[1], [0], [0], [1], [0, 0, 1, 1], [], []>} : vector<128x128xbf16>, vector<128x32xbf16>, vector<128x32xf32> -> vector<128x32xf32>
      %c1_19 = arith.constant 1 : index
      %c0_20 = arith.constant 0 : index
      %c0_21 = arith.constant 0 : index
      %c0_22 = arith.constant 0 : index
      %21 = vector.load %arg4[%c1_19, %c0_20, %c0_21, %c0_22] : memref<3x4x1x32xf32, #tpu.memory_space<vmem>>, vector<1x1x1x32xf32>
      %22 = vector.shape_cast %21 : vector<1x1x1x32xf32> to vector<1x32xf32>
      %23 = vector.broadcast %22 : vector<1x32xf32> to vector<128x32xf32>
      %24 = arith.addf %20, %23 : vector<128x32xf32>
      %c2 = arith.constant 2 : index
      %c0_23 = arith.constant 0 : index
      %c0_24 = arith.constant 0 : index
      %c0_25 = arith.constant 0 : index
      %25 = vector.load %arg3[%c2, %c0_23, %c0_24, %c0_25] : memref<3x4x128x32xbf16, #tpu.memory_space<vmem>>, vector<1x1x128x32xbf16>
      %26 = vector.shape_cast %25 : vector<1x1x128x32xbf16> to vector<128x32xbf16>
      %cst_26 = arith.constant dense<0.000000e+00> : vector<128x32xf32>
      %27 = tpu.matmul %6, %26, %cst_26 {dimension_numbers = #tpu.dot_dimension_numbers<[1], [0], [0], [1], [0, 0, 1, 1], [], []>} : vector<128x128xbf16>, vector<128x32xbf16>, vector<128x32xf32> -> vector<128x32xf32>
      %c2_27 = arith.constant 2 : index
      %c0_28 = arith.constant 0 : index
      %c0_29 = arith.constant 0 : index
      %c0_30 = arith.constant 0 : index
      %28 = vector.load %arg4[%c2_27, %c0_28, %c0_29, %c0_30] : memref<3x4x1x32xf32, #tpu.memory_space<vmem>>, vector<1x1x1x32xf32>
      %29 = vector.shape_cast %28 : vector<1x1x1x32xf32> to vector<1x32xf32>
      %30 = vector.broadcast %29 : vector<1x32xf32> to vector<128x32xf32>
      %31 = arith.addf %27, %30 : vector<128x32xf32>
      %32 = arith.truncf %17 : vector<128x32xf32> to vector<128x32xbf16>
      %33 = arith.truncf %24 : vector<128x32xf32> to vector<128x32xbf16>
      %cst_31 = arith.constant dense<0.000000e+00> : vector<128x128xf32>
      %34 = tpu.matmul %32, %33, %cst_31 {dimension_numbers = #tpu.dot_dimension_numbers<[1], [1], [0], [0], [0, 0, 1, 0], [], []>} : vector<128x32xbf16>, vector<128x32xbf16>, vector<128x128xf32> -> vector<128x128xf32>
      %35 = vector.broadcast %9 : vector<1x128xf32> to vector<128x128xf32>
      %36 = arith.addf %34, %35 : vector<128x128xf32>
      %cst_32 = arith.constant dense<0xFF800000> : vector<128xf32>
      %37 = vector.multi_reduction <maximumf>, %36, %cst_32 [1] : vector<128x128xf32> to vector<128xf32>
      %38 = vector.shape_cast %37 : vector<128xf32> to vector<128x1xf32>
      %39 = vector.broadcast %38 : vector<128x1xf32> to vector<128x128xf32>
      %40 = arith.subf %36, %39 : vector<128x128xf32>
      %41 = math.exp %40 : vector<128x128xf32>
      %cst_33 = arith.constant dense<0.000000e+00> : vector<128xf32>
      %42 = vector.multi_reduction <add>, %41, %cst_33 [1] : vector<128x128xf32> to vector<128xf32>
      %43 = vector.shape_cast %42 : vector<128xf32> to vector<128x1xf32>
      %44 = tpu.reciprocal %43 {approx = true} : vector<128x1xf32> -> vector<128x1xf32>
      %45 = vector.broadcast %44 : vector<128x1xf32> to vector<128x128xf32>
      %46 = arith.mulf %41, %45 : vector<128x128xf32>
      %47 = arith.truncf %46 : vector<128x128xf32> to vector<128x128xbf16>
      %48 = arith.truncf %31 : vector<128x32xf32> to vector<128x32xbf16>
      %cst_34 = arith.constant dense<0.000000e+00> : vector<128x32xf32>
      %49 = tpu.matmul %47, %48, %cst_34 {dimension_numbers = #tpu.dot_dimension_numbers<[1], [0], [0], [1], [0, 0, 1, 1], [], []>} : vector<128x128xbf16>, vector<128x32xbf16>, vector<128x32xf32> -> vector<128x32xf32>
      %50 = arith.truncf %49 : vector<128x32xf32> to vector<128x32xbf16>
      %c0_35 = arith.constant 0 : index
      %c0_36 = arith.constant 0 : index
      %c0_37 = arith.constant 0 : index
      %51 = vector.load %arg5[%c0_35, %c0_36, %c0_37] : memref<4x32x128xbf16, #tpu.memory_space<vmem>>, vector<1x32x128xbf16>
      %52 = vector.shape_cast %51 : vector<1x32x128xbf16> to vector<32x128xbf16>
      %cst_38 = arith.constant dense<0.000000e+00> : vector<128x128xf32>
      %53 = tpu.matmul %50, %52, %cst_38 {dimension_numbers = #tpu.dot_dimension_numbers<[1], [0], [0], [1], [0, 0, 1, 1], [], []>} : vector<128x32xbf16>, vector<32x128xbf16>, vector<128x128xf32> -> vector<128x128xf32>
      %54 = arith.addf %10, %53 : vector<128x128xf32>
      %c0_39 = arith.constant 0 : index
      %c1_40 = arith.constant 1 : index
      %c0_41 = arith.constant 0 : index
      %c0_42 = arith.constant 0 : index
      %55 = vector.load %arg3[%c0_39, %c1_40, %c0_41, %c0_42] : memref<3x4x128x32xbf16, #tpu.memory_space<vmem>>, vector<1x1x128x32xbf16>
      %56 = vector.shape_cast %55 : vector<1x1x128x32xbf16> to vector<128x32xbf16>
      %cst_43 = arith.constant dense<0.000000e+00> : vector<128x32xf32>
      %57 = tpu.matmul %6, %56, %cst_43 {dimension_numbers = #tpu.dot_dimension_numbers<[1], [0], [0], [1], [0, 0, 1, 1], [], []>} : vector<128x128xbf16>, vector<128x32xbf16>, vector<128x32xf32> -> vector<128x32xf32>
      %c0_44 = arith.constant 0 : index
      %c1_45 = arith.constant 1 : index
      %c0_46 = arith.constant 0 : index
      %c0_47 = arith.constant 0 : index
      %58 = vector.load %arg4[%c0_44, %c1_45, %c0_46, %c0_47] : memref<3x4x1x32xf32, #tpu.memory_space<vmem>>, vector<1x1x1x32xf32>
      %59 = vector.shape_cast %58 : vector<1x1x1x32xf32> to vector<1x32xf32>
      %60 = vector.broadcast %59 : vector<1x32xf32> to vector<128x32xf32>
      %61 = arith.addf %57, %60 : vector<128x32xf32>
      %c1_48 = arith.constant 1 : index
      %c1_49 = arith.constant 1 : index
      %c0_50 = arith.constant 0 : index
      %c0_51 = arith.constant 0 : index
      %62 = vector.load %arg3[%c1_48, %c1_49, %c0_50, %c0_51] : memref<3x4x128x32xbf16, #tpu.memory_space<vmem>>, vector<1x1x128x32xbf16>
      %63 = vector.shape_cast %62 : vector<1x1x128x32xbf16> to vector<128x32xbf16>
      %cst_52 = arith.constant dense<0.000000e+00> : vector<128x32xf32>
      %64 = tpu.matmul %6, %63, %cst_52 {dimension_numbers = #tpu.dot_dimension_numbers<[1], [0], [0], [1], [0, 0, 1, 1], [], []>} : vector<128x128xbf16>, vector<128x32xbf16>, vector<128x32xf32> -> vector<128x32xf32>
      %c1_53 = arith.constant 1 : index
      %c1_54 = arith.constant 1 : index
      %c0_55 = arith.constant 0 : index
      %c0_56 = arith.constant 0 : index
      %65 = vector.load %arg4[%c1_53, %c1_54, %c0_55, %c0_56] : memref<3x4x1x32xf32, #tpu.memory_space<vmem>>, vector<1x1x1x32xf32>
      %66 = vector.shape_cast %65 : vector<1x1x1x32xf32> to vector<1x32xf32>
      %67 = vector.broadcast %66 : vector<1x32xf32> to vector<128x32xf32>
      %68 = arith.addf %64, %67 : vector<128x32xf32>
      %c2_57 = arith.constant 2 : index
      %c1_58 = arith.constant 1 : index
      %c0_59 = arith.constant 0 : index
      %c0_60 = arith.constant 0 : index
      %69 = vector.load %arg3[%c2_57, %c1_58, %c0_59, %c0_60] : memref<3x4x128x32xbf16, #tpu.memory_space<vmem>>, vector<1x1x128x32xbf16>
      %70 = vector.shape_cast %69 : vector<1x1x128x32xbf16> to vector<128x32xbf16>
      %cst_61 = arith.constant dense<0.000000e+00> : vector<128x32xf32>
      %71 = tpu.matmul %6, %70, %cst_61 {dimension_numbers = #tpu.dot_dimension_numbers<[1], [0], [0], [1], [0, 0, 1, 1], [], []>} : vector<128x128xbf16>, vector<128x32xbf16>, vector<128x32xf32> -> vector<128x32xf32>
      %c2_62 = arith.constant 2 : index
      %c1_63 = arith.constant 1 : index
      %c0_64 = arith.constant 0 : index
      %c0_65 = arith.constant 0 : index
      %72 = vector.load %arg4[%c2_62, %c1_63, %c0_64, %c0_65] : memref<3x4x1x32xf32, #tpu.memory_space<vmem>>, vector<1x1x1x32xf32>
      %73 = vector.shape_cast %72 : vector<1x1x1x32xf32> to vector<1x32xf32>
      %74 = vector.broadcast %73 : vector<1x32xf32> to vector<128x32xf32>
      %75 = arith.addf %71, %74 : vector<128x32xf32>
      %76 = arith.truncf %61 : vector<128x32xf32> to vector<128x32xbf16>
      %77 = arith.truncf %68 : vector<128x32xf32> to vector<128x32xbf16>
      %cst_66 = arith.constant dense<0.000000e+00> : vector<128x128xf32>
      %78 = tpu.matmul %76, %77, %cst_66 {dimension_numbers = #tpu.dot_dimension_numbers<[1], [1], [0], [0], [0, 0, 1, 0], [], []>} : vector<128x32xbf16>, vector<128x32xbf16>, vector<128x128xf32> -> vector<128x128xf32>
      %79 = vector.broadcast %9 : vector<1x128xf32> to vector<128x128xf32>
      %80 = arith.addf %78, %79 : vector<128x128xf32>
      %cst_67 = arith.constant dense<0xFF800000> : vector<128xf32>
      %81 = vector.multi_reduction <maximumf>, %80, %cst_67 [1] : vector<128x128xf32> to vector<128xf32>
      %82 = vector.shape_cast %81 : vector<128xf32> to vector<128x1xf32>
      %83 = vector.broadcast %82 : vector<128x1xf32> to vector<128x128xf32>
      %84 = arith.subf %80, %83 : vector<128x128xf32>
      %85 = math.exp %84 : vector<128x128xf32>
      %cst_68 = arith.constant dense<0.000000e+00> : vector<128xf32>
      %86 = vector.multi_reduction <add>, %85, %cst_68 [1] : vector<128x128xf32> to vector<128xf32>
      %87 = vector.shape_cast %86 : vector<128xf32> to vector<128x1xf32>
      %88 = tpu.reciprocal %87 {approx = true} : vector<128x1xf32> -> vector<128x1xf32>
      %89 = vector.broadcast %88 : vector<128x1xf32> to vector<128x128xf32>
      %90 = arith.mulf %85, %89 : vector<128x128xf32>
      %91 = arith.truncf %90 : vector<128x128xf32> to vector<128x128xbf16>
      %92 = arith.truncf %75 : vector<128x32xf32> to vector<128x32xbf16>
      %cst_69 = arith.constant dense<0.000000e+00> : vector<128x32xf32>
      %93 = tpu.matmul %91, %92, %cst_69 {dimension_numbers = #tpu.dot_dimension_numbers<[1], [0], [0], [1], [0, 0, 1, 1], [], []>} : vector<128x128xbf16>, vector<128x32xbf16>, vector<128x32xf32> -> vector<128x32xf32>
      %94 = arith.truncf %93 : vector<128x32xf32> to vector<128x32xbf16>
      %c1_70 = arith.constant 1 : index
      %c0_71 = arith.constant 0 : index
      %c0_72 = arith.constant 0 : index
      %95 = vector.load %arg5[%c1_70, %c0_71, %c0_72] : memref<4x32x128xbf16, #tpu.memory_space<vmem>>, vector<1x32x128xbf16>
      %96 = vector.shape_cast %95 : vector<1x32x128xbf16> to vector<32x128xbf16>
      %cst_73 = arith.constant dense<0.000000e+00> : vector<128x128xf32>
      %97 = tpu.matmul %94, %96, %cst_73 {dimension_numbers = #tpu.dot_dimension_numbers<[1], [0], [0], [1], [0, 0, 1, 1], [], []>} : vector<128x32xbf16>, vector<32x128xbf16>, vector<128x128xf32> -> vector<128x128xf32>
      %98 = arith.addf %54, %97 : vector<128x128xf32>
      %c0_74 = arith.constant 0 : index
      %c2_75 = arith.constant 2 : index
      %c0_76 = arith.constant 0 : index
      %c0_77 = arith.constant 0 : index
      %99 = vector.load %arg3[%c0_74, %c2_75, %c0_76, %c0_77] : memref<3x4x128x32xbf16, #tpu.memory_space<vmem>>, vector<1x1x128x32xbf16>
      %100 = vector.shape_cast %99 : vector<1x1x128x32xbf16> to vector<128x32xbf16>
      %cst_78 = arith.constant dense<0.000000e+00> : vector<128x32xf32>
      %101 = tpu.matmul %6, %100, %cst_78 {dimension_numbers = #tpu.dot_dimension_numbers<[1], [0], [0], [1], [0, 0, 1, 1], [], []>} : vector<128x128xbf16>, vector<128x32xbf16>, vector<128x32xf32> -> vector<128x32xf32>
      %c0_79 = arith.constant 0 : index
      %c2_80 = arith.constant 2 : index
      %c0_81 = arith.constant 0 : index
      %c0_82 = arith.constant 0 : index
      %102 = vector.load %arg4[%c0_79, %c2_80, %c0_81, %c0_82] : memref<3x4x1x32xf32, #tpu.memory_space<vmem>>, vector<1x1x1x32xf32>
      %103 = vector.shape_cast %102 : vector<1x1x1x32xf32> to vector<1x32xf32>
      %104 = vector.broadcast %103 : vector<1x32xf32> to vector<128x32xf32>
      %105 = arith.addf %101, %104 : vector<128x32xf32>
      %c1_83 = arith.constant 1 : index
      %c2_84 = arith.constant 2 : index
      %c0_85 = arith.constant 0 : index
      %c0_86 = arith.constant 0 : index
      %106 = vector.load %arg3[%c1_83, %c2_84, %c0_85, %c0_86] : memref<3x4x128x32xbf16, #tpu.memory_space<vmem>>, vector<1x1x128x32xbf16>
      %107 = vector.shape_cast %106 : vector<1x1x128x32xbf16> to vector<128x32xbf16>
      %cst_87 = arith.constant dense<0.000000e+00> : vector<128x32xf32>
      %108 = tpu.matmul %6, %107, %cst_87 {dimension_numbers = #tpu.dot_dimension_numbers<[1], [0], [0], [1], [0, 0, 1, 1], [], []>} : vector<128x128xbf16>, vector<128x32xbf16>, vector<128x32xf32> -> vector<128x32xf32>
      %c1_88 = arith.constant 1 : index
      %c2_89 = arith.constant 2 : index
      %c0_90 = arith.constant 0 : index
      %c0_91 = arith.constant 0 : index
      %109 = vector.load %arg4[%c1_88, %c2_89, %c0_90, %c0_91] : memref<3x4x1x32xf32, #tpu.memory_space<vmem>>, vector<1x1x1x32xf32>
      %110 = vector.shape_cast %109 : vector<1x1x1x32xf32> to vector<1x32xf32>
      %111 = vector.broadcast %110 : vector<1x32xf32> to vector<128x32xf32>
      %112 = arith.addf %108, %111 : vector<128x32xf32>
      %c2_92 = arith.constant 2 : index
      %c2_93 = arith.constant 2 : index
      %c0_94 = arith.constant 0 : index
      %c0_95 = arith.constant 0 : index
      %113 = vector.load %arg3[%c2_92, %c2_93, %c0_94, %c0_95] : memref<3x4x128x32xbf16, #tpu.memory_space<vmem>>, vector<1x1x128x32xbf16>
      %114 = vector.shape_cast %113 : vector<1x1x128x32xbf16> to vector<128x32xbf16>
      %cst_96 = arith.constant dense<0.000000e+00> : vector<128x32xf32>
      %115 = tpu.matmul %6, %114, %cst_96 {dimension_numbers = #tpu.dot_dimension_numbers<[1], [0], [0], [1], [0, 0, 1, 1], [], []>} : vector<128x128xbf16>, vector<128x32xbf16>, vector<128x32xf32> -> vector<128x32xf32>
      %c2_97 = arith.constant 2 : index
      %c2_98 = arith.constant 2 : index
      %c0_99 = arith.constant 0 : index
      %c0_100 = arith.constant 0 : index
      %116 = vector.load %arg4[%c2_97, %c2_98, %c0_99, %c0_100] : memref<3x4x1x32xf32, #tpu.memory_space<vmem>>, vector<1x1x1x32xf32>
      %117 = vector.shape_cast %116 : vector<1x1x1x32xf32> to vector<1x32xf32>
      %118 = vector.broadcast %117 : vector<1x32xf32> to vector<128x32xf32>
      %119 = arith.addf %115, %118 : vector<128x32xf32>
      %120 = arith.truncf %105 : vector<128x32xf32> to vector<128x32xbf16>
      %121 = arith.truncf %112 : vector<128x32xf32> to vector<128x32xbf16>
      %cst_101 = arith.constant dense<0.000000e+00> : vector<128x128xf32>
      %122 = tpu.matmul %120, %121, %cst_101 {dimension_numbers = #tpu.dot_dimension_numbers<[1], [1], [0], [0], [0, 0, 1, 0], [], []>} : vector<128x32xbf16>, vector<128x32xbf16>, vector<128x128xf32> -> vector<128x128xf32>
      %123 = vector.broadcast %9 : vector<1x128xf32> to vector<128x128xf32>
      %124 = arith.addf %122, %123 : vector<128x128xf32>
      %cst_102 = arith.constant dense<0xFF800000> : vector<128xf32>
      %125 = vector.multi_reduction <maximumf>, %124, %cst_102 [1] : vector<128x128xf32> to vector<128xf32>
      %126 = vector.shape_cast %125 : vector<128xf32> to vector<128x1xf32>
      %127 = vector.broadcast %126 : vector<128x1xf32> to vector<128x128xf32>
      %128 = arith.subf %124, %127 : vector<128x128xf32>
      %129 = math.exp %128 : vector<128x128xf32>
      %cst_103 = arith.constant dense<0.000000e+00> : vector<128xf32>
      %130 = vector.multi_reduction <add>, %129, %cst_103 [1] : vector<128x128xf32> to vector<128xf32>
      %131 = vector.shape_cast %130 : vector<128xf32> to vector<128x1xf32>
      %132 = tpu.reciprocal %131 {approx = true} : vector<128x1xf32> -> vector<128x1xf32>
      %133 = vector.broadcast %132 : vector<128x1xf32> to vector<128x128xf32>
      %134 = arith.mulf %129, %133 : vector<128x128xf32>
      %135 = arith.truncf %134 : vector<128x128xf32> to vector<128x128xbf16>
      %136 = arith.truncf %119 : vector<128x32xf32> to vector<128x32xbf16>
      %cst_104 = arith.constant dense<0.000000e+00> : vector<128x32xf32>
      %137 = tpu.matmul %135, %136, %cst_104 {dimension_numbers = #tpu.dot_dimension_numbers<[1], [0], [0], [1], [0, 0, 1, 1], [], []>} : vector<128x128xbf16>, vector<128x32xbf16>, vector<128x32xf32> -> vector<128x32xf32>
      %138 = arith.truncf %137 : vector<128x32xf32> to vector<128x32xbf16>
      %c2_105 = arith.constant 2 : index
      %c0_106 = arith.constant 0 : index
      %c0_107 = arith.constant 0 : index
      %139 = vector.load %arg5[%c2_105, %c0_106, %c0_107] : memref<4x32x128xbf16, #tpu.memory_space<vmem>>, vector<1x32x128xbf16>
      %140 = vector.shape_cast %139 : vector<1x32x128xbf16> to vector<32x128xbf16>
      %cst_108 = arith.constant dense<0.000000e+00> : vector<128x128xf32>
      %141 = tpu.matmul %138, %140, %cst_108 {dimension_numbers = #tpu.dot_dimension_numbers<[1], [0], [0], [1], [0, 0, 1, 1], [], []>} : vector<128x32xbf16>, vector<32x128xbf16>, vector<128x128xf32> -> vector<128x128xf32>
      %142 = arith.addf %98, %141 : vector<128x128xf32>
      %c0_109 = arith.constant 0 : index
      %c3 = arith.constant 3 : index
      %c0_110 = arith.constant 0 : index
      %c0_111 = arith.constant 0 : index
      %143 = vector.load %arg3[%c0_109, %c3, %c0_110, %c0_111] : memref<3x4x128x32xbf16, #tpu.memory_space<vmem>>, vector<1x1x128x32xbf16>
      %144 = vector.shape_cast %143 : vector<1x1x128x32xbf16> to vector<128x32xbf16>
      %cst_112 = arith.constant dense<0.000000e+00> : vector<128x32xf32>
      %145 = tpu.matmul %6, %144, %cst_112 {dimension_numbers = #tpu.dot_dimension_numbers<[1], [0], [0], [1], [0, 0, 1, 1], [], []>} : vector<128x128xbf16>, vector<128x32xbf16>, vector<128x32xf32> -> vector<128x32xf32>
      %c0_113 = arith.constant 0 : index
      %c3_114 = arith.constant 3 : index
      %c0_115 = arith.constant 0 : index
      %c0_116 = arith.constant 0 : index
      %146 = vector.load %arg4[%c0_113, %c3_114, %c0_115, %c0_116] : memref<3x4x1x32xf32, #tpu.memory_space<vmem>>, vector<1x1x1x32xf32>
      %147 = vector.shape_cast %146 : vector<1x1x1x32xf32> to vector<1x32xf32>
      %148 = vector.broadcast %147 : vector<1x32xf32> to vector<128x32xf32>
      %149 = arith.addf %145, %148 : vector<128x32xf32>
      %c1_117 = arith.constant 1 : index
      %c3_118 = arith.constant 3 : index
      %c0_119 = arith.constant 0 : index
      %c0_120 = arith.constant 0 : index
      %150 = vector.load %arg3[%c1_117, %c3_118, %c0_119, %c0_120] : memref<3x4x128x32xbf16, #tpu.memory_space<vmem>>, vector<1x1x128x32xbf16>
      %151 = vector.shape_cast %150 : vector<1x1x128x32xbf16> to vector<128x32xbf16>
      %cst_121 = arith.constant dense<0.000000e+00> : vector<128x32xf32>
      %152 = tpu.matmul %6, %151, %cst_121 {dimension_numbers = #tpu.dot_dimension_numbers<[1], [0], [0], [1], [0, 0, 1, 1], [], []>} : vector<128x128xbf16>, vector<128x32xbf16>, vector<128x32xf32> -> vector<128x32xf32>
      %c1_122 = arith.constant 1 : index
      %c3_123 = arith.constant 3 : index
      %c0_124 = arith.constant 0 : index
      %c0_125 = arith.constant 0 : index
      %153 = vector.load %arg4[%c1_122, %c3_123, %c0_124, %c0_125] : memref<3x4x1x32xf32, #tpu.memory_space<vmem>>, vector<1x1x1x32xf32>
      %154 = vector.shape_cast %153 : vector<1x1x1x32xf32> to vector<1x32xf32>
      %155 = vector.broadcast %154 : vector<1x32xf32> to vector<128x32xf32>
      %156 = arith.addf %152, %155 : vector<128x32xf32>
      %c2_126 = arith.constant 2 : index
      %c3_127 = arith.constant 3 : index
      %c0_128 = arith.constant 0 : index
      %c0_129 = arith.constant 0 : index
      %157 = vector.load %arg3[%c2_126, %c3_127, %c0_128, %c0_129] : memref<3x4x128x32xbf16, #tpu.memory_space<vmem>>, vector<1x1x128x32xbf16>
      %158 = vector.shape_cast %157 : vector<1x1x128x32xbf16> to vector<128x32xbf16>
      %cst_130 = arith.constant dense<0.000000e+00> : vector<128x32xf32>
      %159 = tpu.matmul %6, %158, %cst_130 {dimension_numbers = #tpu.dot_dimension_numbers<[1], [0], [0], [1], [0, 0, 1, 1], [], []>} : vector<128x128xbf16>, vector<128x32xbf16>, vector<128x32xf32> -> vector<128x32xf32>
      %c2_131 = arith.constant 2 : index
      %c3_132 = arith.constant 3 : index
      %c0_133 = arith.constant 0 : index
      %c0_134 = arith.constant 0 : index
      %160 = vector.load %arg4[%c2_131, %c3_132, %c0_133, %c0_134] : memref<3x4x1x32xf32, #tpu.memory_space<vmem>>, vector<1x1x1x32xf32>
      %161 = vector.shape_cast %160 : vector<1x1x1x32xf32> to vector<1x32xf32>
      %162 = vector.broadcast %161 : vector<1x32xf32> to vector<128x32xf32>
      %163 = arith.addf %159, %162 : vector<128x32xf32>
      %164 = arith.truncf %149 : vector<128x32xf32> to vector<128x32xbf16>
      %165 = arith.truncf %156 : vector<128x32xf32> to vector<128x32xbf16>
      %cst_135 = arith.constant dense<0.000000e+00> : vector<128x128xf32>
      %166 = tpu.matmul %164, %165, %cst_135 {dimension_numbers = #tpu.dot_dimension_numbers<[1], [1], [0], [0], [0, 0, 1, 0], [], []>} : vector<128x32xbf16>, vector<128x32xbf16>, vector<128x128xf32> -> vector<128x128xf32>
      %167 = vector.broadcast %9 : vector<1x128xf32> to vector<128x128xf32>
      %168 = arith.addf %166, %167 : vector<128x128xf32>
      %cst_136 = arith.constant dense<0xFF800000> : vector<128xf32>
      %169 = vector.multi_reduction <maximumf>, %168, %cst_136 [1] : vector<128x128xf32> to vector<128xf32>
      %170 = vector.shape_cast %169 : vector<128xf32> to vector<128x1xf32>
      %171 = vector.broadcast %170 : vector<128x1xf32> to vector<128x128xf32>
      %172 = arith.subf %168, %171 : vector<128x128xf32>
      %173 = math.exp %172 : vector<128x128xf32>
      %cst_137 = arith.constant dense<0.000000e+00> : vector<128xf32>
      %174 = vector.multi_reduction <add>, %173, %cst_137 [1] : vector<128x128xf32> to vector<128xf32>
      %175 = vector.shape_cast %174 : vector<128xf32> to vector<128x1xf32>
      %176 = tpu.reciprocal %175 {approx = true} : vector<128x1xf32> -> vector<128x1xf32>
      %177 = vector.broadcast %176 : vector<128x1xf32> to vector<128x128xf32>
      %178 = arith.mulf %173, %177 : vector<128x128xf32>
      %179 = arith.truncf %178 : vector<128x128xf32> to vector<128x128xbf16>
      %180 = arith.truncf %163 : vector<128x32xf32> to vector<128x32xbf16>
      %cst_138 = arith.constant dense<0.000000e+00> : vector<128x32xf32>
      %181 = tpu.matmul %179, %180, %cst_138 {dimension_numbers = #tpu.dot_dimension_numbers<[1], [0], [0], [1], [0, 0, 1, 1], [], []>} : vector<128x128xbf16>, vector<128x32xbf16>, vector<128x32xf32> -> vector<128x32xf32>
      %182 = arith.truncf %181 : vector<128x32xf32> to vector<128x32xbf16>
      %c3_139 = arith.constant 3 : index
      %c0_140 = arith.constant 0 : index
      %c0_141 = arith.constant 0 : index
      %183 = vector.load %arg5[%c3_139, %c0_140, %c0_141] : memref<4x32x128xbf16, #tpu.memory_space<vmem>>, vector<1x32x128xbf16>
      %184 = vector.shape_cast %183 : vector<1x32x128xbf16> to vector<32x128xbf16>
      %cst_142 = arith.constant dense<0.000000e+00> : vector<128x128xf32>
      %185 = tpu.matmul %182, %184, %cst_142 {dimension_numbers = #tpu.dot_dimension_numbers<[1], [0], [0], [1], [0, 0, 1, 1], [], []>} : vector<128x32xbf16>, vector<32x128xbf16>, vector<128x128xf32> -> vector<128x128xf32>
      %186 = arith.addf %142, %185 : vector<128x128xf32>
      %c0_143 = arith.constant 0 : index
      %c0_144 = arith.constant 0 : index
      %187 = vector.load %arg6[%c0_143, %c0_144] : memref<1x128xf32, #tpu.memory_space<vmem>>, vector<1x128xf32>
      %188 = vector.broadcast %187 : vector<1x128xf32> to vector<128x128xf32>
      %189 = arith.addf %186, %188 : vector<128x128xf32>
      %190 = arith.addf %189, %5 : vector<128x128xf32>
      %c0_145 = arith.constant 0 : index
      %c0_146 = arith.constant 0 : index
      %191 = vector.load %arg7[%c0_145, %c0_146] : memref<1x128xf32, #tpu.memory_space<vmem>>, vector<1x128xf32>
      %c0_147 = arith.constant 0 : index
      %c0_148 = arith.constant 0 : index
      %192 = vector.load %arg8[%c0_147, %c0_148] : memref<1x128xf32, #tpu.memory_space<vmem>>, vector<1x128xf32>
      %cst_149 = arith.constant dense<0.000000e+00> : vector<128xf32>
      %193 = vector.multi_reduction <add>, %190, %cst_149 [1] : vector<128x128xf32> to vector<128xf32>
      %194 = vector.shape_cast %193 : vector<128xf32> to vector<128x1xf32>
      %cst_150 = arith.constant 1.280000e+02 : f32
      %195 = vector.broadcast %cst_150 : f32 to vector<128x1xf32>
      %196 = arith.divf %194, %195 : vector<128x1xf32>
      %197 = vector.broadcast %196 : vector<128x1xf32> to vector<128x128xf32>
      %198 = arith.subf %190, %197 : vector<128x128xf32>
      %199 = arith.mulf %198, %198 : vector<128x128xf32>
      %cst_151 = arith.constant dense<0.000000e+00> : vector<128xf32>
      %200 = vector.multi_reduction <add>, %199, %cst_151 [1] : vector<128x128xf32> to vector<128xf32>
      %201 = vector.shape_cast %200 : vector<128xf32> to vector<128x1xf32>
      %cst_152 = arith.constant 1.280000e+02 : f32
      %202 = vector.broadcast %cst_152 : f32 to vector<128x1xf32>
      %203 = arith.divf %201, %202 : vector<128x1xf32>
      %204 = vector.broadcast %196 : vector<128x1xf32> to vector<128x128xf32>
      %205 = arith.subf %190, %204 : vector<128x128xf32>
      %cst_153 = arith.constant 9.99999996E-13 : f32
      %206 = vector.broadcast %cst_153 : f32 to vector<128x1xf32>
      %207 = arith.addf %203, %206 : vector<128x1xf32>
      %208 = math.rsqrt %207 : vector<128x1xf32>
      %209 = vector.broadcast %208 : vector<128x1xf32> to vector<128x128xf32>
      %210 = arith.mulf %205, %209 : vector<128x128xf32>
      %211 = vector.broadcast %191 : vector<1x128xf32> to vector<128x128xf32>
      %212 = arith.mulf %210, %211 : vector<128x128xf32>
      %213 = vector.broadcast %192 : vector<1x128xf32> to vector<128x128xf32>
      %214 = arith.addf %212, %213 : vector<128x128xf32>
      %c0_154 = arith.constant 0 : index
      %c0_155 = arith.constant 0 : index
      %215 = vector.load %arg10[%c0_154, %c0_155] : memref<8x128xbf16, #tpu.memory_space<vmem>>, vector<8x128xbf16>
      %cst_156 = arith.constant dense<0.000000e+00> : vector<8x128xf32>
      %216 = tpu.matmul %215, %6, %cst_156 {dimension_numbers = #tpu.dot_dimension_numbers<[1], [0], [0], [1], [0, 0, 1, 1], [], []>} : vector<8x128xbf16>, vector<128x128xbf16>, vector<8x128xf32> -> vector<8x128xf32>
      %c0_157 = arith.constant 0 : index
      %c0_158 = arith.constant 0 : index
      %217 = vector.load %arg9[%c0_157, %c0_158] : memref<128x8xbf16, #tpu.memory_space<vmem>>, vector<128x8xbf16>
      %218 = arith.truncf %216 : vector<8x128xf32> to vector<8x128xbf16>
      %cst_159 = arith.constant dense<0.000000e+00> : vector<128x128xf32>
      %219 = tpu.matmul %217, %218, %cst_159 {dimension_numbers = #tpu.dot_dimension_numbers<[1], [0], [0], [1], [0, 0, 1, 1], [], []>} : vector<128x8xbf16>, vector<8x128xbf16>, vector<128x128xf32> -> vector<128x128xf32>
      %c0_160 = arith.constant 0 : index
      %c0_161 = arith.constant 0 : index
      %220 = vector.load %arg11[%c0_160, %c0_161] : memref<1x128xf32, #tpu.memory_space<vmem>>, vector<1x128xf32>
      %221 = arith.subf %5, %219 : vector<128x128xf32>
      %222 = vector.broadcast %220 : vector<1x128xf32> to vector<128x128xf32>
      %223 = arith.mulf %222, %221 : vector<128x128xf32>
      %224 = arith.addf %219, %223 : vector<128x128xf32>
      %225 = arith.addf %224, %5 : vector<128x128xf32>
      %c0_162 = arith.constant 0 : index
      %c0_163 = arith.constant 0 : index
      %226 = vector.load %arg12[%c0_162, %c0_163] : memref<1x128xf32, #tpu.memory_space<vmem>>, vector<1x128xf32>
      %c0_164 = arith.constant 0 : index
      %c0_165 = arith.constant 0 : index
      %227 = vector.load %arg13[%c0_164, %c0_165] : memref<1x128xf32, #tpu.memory_space<vmem>>, vector<1x128xf32>
      %cst_166 = arith.constant dense<0.000000e+00> : vector<128xf32>
      %228 = vector.multi_reduction <add>, %225, %cst_166 [1] : vector<128x128xf32> to vector<128xf32>
      %229 = vector.shape_cast %228 : vector<128xf32> to vector<128x1xf32>
      %cst_167 = arith.constant 1.280000e+02 : f32
      %230 = vector.broadcast %cst_167 : f32 to vector<128x1xf32>
      %231 = arith.divf %229, %230 : vector<128x1xf32>
      %232 = vector.broadcast %231 : vector<128x1xf32> to vector<128x128xf32>
      %233 = arith.subf %225, %232 : vector<128x128xf32>
      %234 = arith.mulf %233, %233 : vector<128x128xf32>
      %cst_168 = arith.constant dense<0.000000e+00> : vector<128xf32>
      %235 = vector.multi_reduction <add>, %234, %cst_168 [1] : vector<128x128xf32> to vector<128xf32>
      %236 = vector.shape_cast %235 : vector<128xf32> to vector<128x1xf32>
      %cst_169 = arith.constant 1.280000e+02 : f32
      %237 = vector.broadcast %cst_169 : f32 to vector<128x1xf32>
      %238 = arith.divf %236, %237 : vector<128x1xf32>
      %239 = vector.broadcast %231 : vector<128x1xf32> to vector<128x128xf32>
      %240 = arith.subf %225, %239 : vector<128x128xf32>
      %cst_170 = arith.constant 9.99999996E-13 : f32
      %241 = vector.broadcast %cst_170 : f32 to vector<128x1xf32>
      %242 = arith.addf %238, %241 : vector<128x1xf32>
      %243 = math.rsqrt %242 : vector<128x1xf32>
      %244 = vector.broadcast %243 : vector<128x1xf32> to vector<128x128xf32>
      %245 = arith.mulf %240, %244 : vector<128x128xf32>
      %246 = vector.broadcast %226 : vector<1x128xf32> to vector<128x128xf32>
      %247 = arith.mulf %245, %246 : vector<128x128xf32>
      %248 = vector.broadcast %227 : vector<1x128xf32> to vector<128x128xf32>
      %249 = arith.addf %247, %248 : vector<128x128xf32>
      %cst_171 = arith.constant 5.000000e-01 : f32
      %250 = vector.broadcast %cst_171 : f32 to vector<128x128xf32>
      %251 = arith.mulf %250, %249 : vector<128x128xf32>
      %cst_172 = arith.constant 5.000000e-01 : f32
      %252 = vector.broadcast %cst_172 : f32 to vector<128x128xf32>
      %253 = arith.mulf %252, %214 : vector<128x128xf32>
      %254 = arith.addf %251, %253 : vector<128x128xf32>
      %255 = arith.index_cast %2 : i32 to index
      %c0_173 = arith.constant 0 : index
      %c0_174 = arith.constant 0 : index
      %256 = vector.load %arg14[%255, %c0_173, %c0_174] : memref<2x128x128xf32, #tpu.memory_space<vmem>>, vector<1x128x128xf32>
      %257 = vector.shape_cast %256 : vector<1x128x128xf32> to vector<128x128xf32>
      %258 = vector.shape_cast %254 : vector<128x128xf32> to vector<1x128x128xf32>
      tpu.vector_store %arg14[%255, %c0_173, %c0_174], %258 {strides = array<i32>} : memref<2x128x128xf32, #tpu.memory_space<vmem>>, vector<1x128x128xf32>,
    }
    %c2_i32_0 = arith.constant 2 : i32
    return
  }
  func.func @transform_0(%arg0: i32) -> (i32, i32, i32) {
    %c0_i32 = arith.constant 0 : i32
    %c0_i32_0 = arith.constant 0 : i32
    %c0_i32_1 = arith.constant 0 : i32
    return %arg0, %c0_i32, %c0_i32_0 : i32, i32, i32
  }
  func.func @transform_1(%arg0: i32) -> (i32, i32, i32) {
    %c0_i32 = arith.constant 0 : i32
    %c0_i32_0 = arith.constant 0 : i32
    %c0_i32_1 = arith.constant 0 : i32
    return %arg0, %c0_i32, %c0_i32_0 : i32, i32, i32
  }
  func.func @transform_2(%arg0: i32) -> (i32, i32, i32, i32) {
    %c0_i32 = arith.constant 0 : i32
    %c0_i32_0 = arith.constant 0 : i32
    %c0_i32_1 = arith.constant 0 : i32
    %c0_i32_2 = arith.constant 0 : i32
    %c0_i32_3 = arith.constant 0 : i32
    return %c0_i32, %c0_i32_0, %c0_i32_1, %c0_i32_2 : i32, i32, i32, i32
  }
  func.func @transform_3(%arg0: i32) -> (i32, i32, i32, i32) {
    %c0_i32 = arith.constant 0 : i32
    %c0_i32_0 = arith.constant 0 : i32
    %c0_i32_1 = arith.constant 0 : i32
    %c0_i32_2 = arith.constant 0 : i32
    %c0_i32_3 = arith.constant 0 : i32
    return %c0_i32, %c0_i32_0, %c0_i32_1, %c0_i32_2 : i32, i32, i32, i32
  }
  func.func @transform_4(%arg0: i32) -> (i32, i32, i32) {
    %c0_i32 = arith.constant 0 : i32
    %c0_i32_0 = arith.constant 0 : i32
    %c0_i32_1 = arith.constant 0 : i32
    %c0_i32_2 = arith.constant 0 : i32
    return %c0_i32, %c0_i32_0, %c0_i32_1 : i32, i32, i32
  }
  func.func @transform_5(%arg0: i32) -> (i32, i32) {
    %c0_i32 = arith.constant 0 : i32
    %c0_i32_0 = arith.constant 0 : i32
    %c0_i32_1 = arith.constant 0 : i32
    return %c0_i32, %c0_i32_0 : i32, i32
  }
  func.func @transform_6(%arg0: i32) -> (i32, i32) {
    %c0_i32 = arith.constant 0 : i32
    %c0_i32_0 = arith.constant 0 : i32
    %c0_i32_1 = arith.constant 0 : i32
    return %c0_i32, %c0_i32_0 : i32, i32
  }
  func.func @transform_7(%arg0: i32) -> (i32, i32) {
    %c0_i32 = arith.constant 0 : i32
    %c0_i32_0 = arith.constant 0 : i32
    %c0_i32_1 = arith.constant 0 : i32
    return %c0_i32, %c0_i32_0 : i32, i32
  }
  func.func @transform_8(%arg0: i32) -> (i32, i32) {
    %c0_i32 = arith.constant 0 : i32
    %c0_i32_0 = arith.constant 0 : i32
    %c0_i32_1 = arith.constant 0 : i32
    return %c0_i32, %c0_i32_0 : i32, i32
  }
  func.func @transform_9(%arg0: i32) -> (i32, i32) {
    %c0_i32 = arith.constant 0 : i32
    %c0_i32_0 = arith.constant 0 : i32
    %c0_i32_1 = arith.constant 0 : i32
    return %c0_i32, %c0_i32_0 : i32, i32
  }
  func.func @transform_10(%arg0: i32) -> (i32, i32) {
    %c0_i32 = arith.constant 0 : i32
    %c0_i32_0 = arith.constant 0 : i32
    %c0_i32_1 = arith.constant 0 : i32
    return %c0_i32, %c0_i32_0 : i32, i32
  }
  func.func @transform_11(%arg0: i32) -> (i32, i32) {
    %c0_i32 = arith.constant 0 : i32
    %c0_i32_0 = arith.constant 0 : i32
    %c0_i32_1 = arith.constant 0 : i32
    return %c0_i32, %c0_i32_0 : i32, i32
  }
  func.func @transform_12(%arg0: i32) -> (i32, i32) {
    %c0_i32 = arith.constant 0 : i32
    %c0_i32_0 = arith.constant 0 : i32
    %c0_i32_1 = arith.constant 0 : i32
    return %c0_i32, %c0_i32_0 : i32, i32
  }
  func.func @transform_13(%arg0: i32) -> (i32, i32, i32) {
    %c0_i32 = arith.constant 0 : i32
    %c0_i32_0 = arith.constant 0 : i32
    %c0_i32_1 = arith.constant 0 : i32
    return %arg0, %c0_i32, %c0_i32_0 : i32, i32, i32
  }
}

</mosaic_0001>

<bundles_post_ra>
// kernel: tpu_custom_call.1
= control target key start
LH: loop header
LB: loop body
LE: loop exit
PB: predicated region body
PF: predicated region fallthrough
CT: control target
= control target key end

     0   :  { %s10475_s0 = inlined_call_operand.vmem [shape: f32[8,128,128], index: 0, kind: input, shape index: {}]   ;;  %s10476_s1 = inlined_call_operand.hbm [shape: f32[8,1,128], index: 1, kind: input, shape index: {}]   ;;  %s10477_s2 = inlined_call_operand.vmem [shape: bf16[3,4,128,32], index: 2, kind: input, shape index: {}]   ;;  %s10478_s3 = inlined_call_operand.vmem [shape: f32[3,4,1,32], index: 3, kind: input, shape index: {}]   ;;  %s10479_s4 = inlined_call_operand.hbm [shape: bf16[4,32,128], index: 4, kind: input, shape index: {}]   ;;  %s10480_s5 = inlined_call_operand.vmem [shape: f32[1,128], index: 5, kind: input, shape index: {}]   ;;  %s10481_s6 = inlined_call_operand.vmem [shape: f32[1,128], index: 6, kind: input, shape index: {}]   ;;  %s10482_s7 = inlined_call_operand.vmem [shape: f32[1,128], index: 7, kind: input, shape index: {}]   ;;  %s10483_s8 = inlined_call_operand.vmem [shape: bf16[128,8], index: 8, kind: input, shape index: {}]   ;;  %s10484_s9 = inlined_call_operand.vmem [shape: bf16[8,128], index: 9, kind: input, shape index: {}]   ;;  %s10485_s10 = inlined_call_operand.vmem [shape: f32[1,128], index: 10, kind: input, shape index: {}]   ;;  %s10486_s11 = inlined_call_operand.vmem [shape: f32[1,128], index: 11, kind: input, shape index: {}]   ;;  %s10487_s12 = inlined_call_operand.vmem [shape: f32[1,128], index: 12, kind: input, shape index: {}]   ;;  %s10488_s13 = inlined_call_operand.hbm [shape: f32[8,128,128], index: 13, kind: output, shape index: {}]  }
   0x1   :  { %10518 = sst [smem:[#allocation27_spill]] %s10475_s0 }
   0x2   :  { %10519 = sst [smem:[#allocation28_spill]] %s10486_s11 }
   0x3   :  { %10520 = sst [smem:[#allocation29_spill]] %s10487_s12 }
   0x4   :  { %10521 = sst [smem:[#allocation30_spill]] %s10488_s13 }
   0x5   :  { %18 = vsyncpa [#allocation3], 0 }
   0x6   :  { %20 = vsyncpa [#allocation3 + $0x1], 0 }
   0x7   :  { %21 = vsyncpa [#allocation6], 0 }
   0x8   :  { %22 = vsyncpa [#allocation4], 0 }
   0x9   :  { %24 = vsyncpa [#allocation4 + $0x1], 0  ;;  %s8206_s25 = smov 0   ;;  %s8208_s26 = smov 0  }
   0xa   :  { %s8210_s27 = smov 0   ;;  %s8212_s28 = smov 0  }
   0xb LB: > { %10522 = sst [smem:[#allocation11_spill]] %s8107_s25  ;;  %s8227_s29 = sadd.s32 4294967295, %s8119_s28   ;;  %s8119_s28 = sphi %s8212_s28, %s10585_s28   ;;  %s8115_s27 = sphi %s8210_s27, %s10588_s27   ;;  %s8111_s26 = sphi %s8208_s26, %s10587_s26   ;;  %s8107_s25 = sphi %s8206_s25, %s10586_s25  }
   0xc   : > { %s5832_s30 = sadd.s32 4294967294, %s8119_s28   ;;  %p76_p0 = scmp.ne.s32.totalorder %s8111_s26, %s8107_s25 }
   0xd   : > { %p10492_p1 = scmp.eq.s32.totalorder %s8227_s29, 0  ;;  %p337_p3 = scmp.eq.s32.totalorder %s5832_s30, 3 }
   0xe   : > { %p5833_p5 = scmp.ge.s32.totalorder %s8119_s28, 1  ;;  %p344_p7 = scmp.lt.s32.totalorder %s8119_s28, 5 }
   0xf   : > { %p8236_p4 = por %p10492_p1, %p76_p0  ;;  %p8241_p6 = por %p337_p3, %p76_p0 }
  0x10   : > { %p8246_p8 = pnand %p5833_p5, %p344_p7  ;;  %s8125_s17 = smov [#allocation5]  }
  0x11   : > { %s10523_s14 = scalar_select %p8236_p4, 1, 0 }
  0x12   : > { %s10524_s15 = scalar_select %p8241_p6, 1, 0 }
  0x13   : > { %s10526_s16 = scalar_select %p8246_p8, 1, 0 }
  0x14   : > { %10525 = sst [smem:[#allocation12_spill]] %s10524_s15  ;;  %s362_s18 = sshll.u32 %s8125_s17, 4  ;;  %s363_s18 = int_to_ptr.vmem [resolvable:$true] %s362_s18 }
  0x15   : > { %p7472_p9 = pneg %p8246_p8  ;;  %s8259_s20 = sadd.s32 1, %s8119_s28  }
  0x16   : > { %10528 = sst [smem:[#allocation13_spill]] %s8259_s20  ;;  %s63_s21 = sadd.s32 1, %s8115_s27 }
  0x17   : > { %p8254_p10 = pnand %p7472_p9, %p10492_p1  ;;  %s60_s22 = ssub.s32 %s8119_s28, %s8259_s20 }
  0x18   : > { %s7987_s30 = scalar_lea.hbm %s10479_s4, 1024 }
  0x19   : > { %p7988_p11 = scmp.ne.s32.totalorder %s10479_s4, %s7987_s30  ;;  %p7989_p12 = pneg %p8254_p10 }
  0x1a   : > { %p7994_p3 = scmp.lt.u32.totalorder %s7987_s30, %s10479_s4 }
  0x1b   : > { %p7990_p13 = pnand %p7989_p12, %p7988_p11 }
  0x1d   : > { %p7991_p0 = pneg %p7990_p13 }
  0x1f   : > { %p7996_p5 = pnand %p7994_p3, %p7991_p0 }
  0x21   : > { %7999 = shalt.err (!%p7996_p5)
}
  0x22   : > { %s8000_s12 = scalar_lea.vmem %s363_s18, 1024  ;;  %p8008_p2 = scmp.lt.s32.totalorder %s363_s18, %s363_s18 }
  0x23   : > { %p8001_p7 = scmp.ne.s32.totalorder %s363_s18, %s8000_s12  ;;  %p8009_p6 = scmp.lt.s32.totalorder %s8000_s12, %s8000_s12 }
  0x25   : > { %p8003_p9 = pnand %p8001_p7, %p7989_p12  ;;  %p8010_p4 = por %p8009_p6, %p8008_p2 }
  0x27   : > { %p8004_p1 = pneg %p8003_p9 }
  0x29   : > { %p8011_p8 = pnand %p8010_p4, %p8004_p1 }
  0x2b   : > { %8014 = shalt.err (!%p8011_p8)
}
  0x2c   : > { %s8126_s15 = smov 64   ;;  %s8127_s13 = smov 4  }
  0x2d   : > { %7475 = dma.hbm_to_vmem [thread:$0]  (!%p8254_p10), %s10479_s4, 1024, %s363_s18, [#allocation6], %s8126_s15, %s8126_s15, %s8127_s13  }
  0x2e   : > { %p61_p11 = scmp.eq.s32.totalorder %s60_s22, 0  ;;  %p70_p2 = scmp.ne.s32.totalorder %s8115_s27, %s8111_s26 }
  0x2f   : > { %p71_p1 = scmp.eq.s32.totalorder %s8119_s28, 0  ;;  %p7485_p4 = scmp.lt.s32.totalorder %s8119_s28, 4 }
  0x30   : > { %s8285_s12 = scalar_select %p61_p11, %s8115_s27, %s63_s21  }
  0x31   : > { %p72_p6 = por %p71_p1, %p70_p2  ;;  %p10529_p8 = scmp.eq.s32.totalorder %s8227_s29, 3 }
  0x32   : > { %s410_s30 = sand.u32 1, %s8115_s27   ;;  %s6243_s17 = sshll.u32 %s8119_s28, 5 }
  0x33   : > { %p8289_p12 = por %p10529_p8, %p70_p2  ;;  %s5836_s20 = sshll.u32 %s410_s30, 1 }
  0x34   : > { %s8298_s25 = scalar_lea.hbm %s10476_s1, %s6243_s17  ;;  %s414_s18 = scalar_lea.vmem [#allocation2], %s5836_s20 }
  0x35   : > { %s421_s21 = sshll.u32 %s414_s18, 4  ;;  %p8300_p10 = pnand %p7485_p4, %p72_p6  ;;  %s8304_s21 = int_to_ptr.vmem [resolvable:$true] %s421_s21 }
  0x36   : > { %s8306_s15 = scalar_lea.sflag [#allocation3], %s410_s30  ;;  %s8015_s13 = scalar_lea.hbm %s8298_s25, 32 }
  0x37   : > { %p8016_p13 = scmp.ne.s32.totalorder %s8298_s25, %s8015_s13  ;;  %p8017_p0 = pneg %p8300_p10 }
  0x38   : > { %s8020_s23 = scalar_lea.hbm %s10476_s1, 128  ;;  %p8021_p7 = scmp.lt.u32.totalorder %s8298_s25, %s10476_s1 }
  0x39   : > { %p8018_p3 = pnand %p8017_p0, %p8016_p13  ;;  %p8022_p9 = scmp.lt.u32.totalorder %s8020_s23, %s8015_s13 }
  0x3a   : > { %p8024_p2 = scmp.lt.u32.totalorder %s8015_s13, %s8298_s25 }
  0x3b   : > { %p8019_p5 = pneg %p8018_p3  ;;  %p8023_p11 = por %p8022_p9, %p8021_p7 }
  0x3d   : > { %p8025_p1 = por %p8024_p2, %p8023_p11 }
  0x3f   : > { %p8026_p4 = pnand %p8025_p1, %p8019_p5 }
  0x41   : > { %8029 = shalt.err (!%p8026_p4)
}
  0x42   : > { %s8030_s30 = scalar_lea.vmem %s8304_s21, 32  ;;  %s8128_s18 = smov [#allocation2]  }
  0x43   : > { %p8031_p6 = scmp.ne.s32.totalorder %s8304_s21, %s8030_s30  ;;  %s8035_s11 = sshll.u32 %s8128_s18, 4  ;;  %s8036_s11 = int_to_ptr.vmem [resolvable:$false] %s8035_s11 }
  0x44   : > { %s8037_s20 = scalar_lea.vmem %s8036_s11, 64  ;;  %p8038_p3 = scmp.lt.s32.totalorder %s8304_s21, %s8036_s11 }
  0x45   : > { %p8033_p8 = pnand %p8031_p6, %p8017_p0  ;;  %p8039_p7 = scmp.lt.s32.totalorder %s8037_s20, %s8030_s30 }
  0x47   : > { %p8034_p13 = pneg %p8033_p8  ;;  %p8040_p9 = por %p8039_p7, %p8038_p3 }
  0x49   : > { %p8041_p11 = pnand %p8040_p9, %p8034_p13 }
  0x4b   : > { %8044 = shalt.err (!%p8041_p11)
}
  0x4c   : > { %s8129_s13 = smov 16   ;;  %s8130_s23 = smov 1  }
  0x4d   : > { %7479 = dma.hbm_to_vmem [thread:$0]  (!%p8300_p10), %s8298_s25, 32, %s8304_s21, %s8306_s15, %s8129_s13, %s8129_s13, %s8130_s23  }
  0x4e   : > { %p10532_p0 = scmp.ne.s32.totalorder %s10526_s16, 0 }
  0x4f   : > { %s8337_s17 = sand.u32 (!%p10532_p0), 1, %s8111_s26   ;;  %p10533_p5 = scmp.ne.s32.totalorder (!%p10532_p0), %s10523_s14, 0 }
  0x50   : > { %433 = sbr.rel (%p10532_p0) target bundleno = 4172 (0x104c), region = 72  ;;  %s5840_s19 = sshll.u32 (!%p10532_p0), %s8337_s17, 1 }
  0x51   : > { %s436_s30 = scalar_lea.sflag (!%p10532_p0), [#allocation3], %s8337_s17  ;;  %s8341_s18 = scalar_lea.vmem (!%p10532_p0), [#allocation2], %s5840_s19 }
  0x57   : > { %8094 = dma.done.wait (%p10533_p5), %s436_s30, 32  }
  0x58   : > { %8096 = vsyncadd (%p10533_p5), %s436_s30, 4294967264  ;;  %p10534_p10 = scmp.eq.s32.totalorder %s8227_s29, 0 }
  0x5a   : > { %8098 = dma.done.wait (%p10534_p10), [#allocation6], 1024   ;;  %p10535_p2 = pmov %p10534_p10 }
  0x5b   : > { %s5842_s16 = sshll.u32 %s8337_s17, 8  ;;  %s5843_s25 = sshll.u32 %s8227_s29, 1 }
  0x5c   : > { %8100 = vsyncadd (%p10535_p2), [#allocation6], 4294966272  ;;  %p493_p1 = scmp.lt.s32.totalorder %s5843_s25, 7  ;;  %s10536_s0 = sld [smem:[#allocation27_spill]] }
  0x5d   : > { %s8358_s14 = scalar_lea.vmem [#allocation7], %s5842_s16  ;;  %s8360_s20 = smov 0  }
  0x5e   : > { %s10590_s25 = smov (!%p493_p1, %s5843_s25), 7 }
  0x5f   : > { %s6244_s21 = sshll.u32 %s10590_s25, 7 }
  0x62   : > { %s8356_s11 = scalar_lea.vmem %s10536_s0, %s6244_s21 }
  0x63 LB: >> { %v7537_v0 = vld [vmem:[%s10477_s2 + $0x100] sm:$0xff]   ;;  %v7538_v1 = vld [vmem:[%s10477_s2 + $0x108] sm:$0xff]   ;;  %s10497_s16 = sshll.u32 %s8123_s20, 7  ;;  %v7539_v2 = vld [vmem:[%s10477_s2 + $0x110] sm:$0xff]   ;;  %vm1066_vm0 = vcmask 261120   ;;  %vm8132_vm1 = vmmov 0   ;;  %s8123_s20 = sphi %s8360_s20, %s507_s20  }
  0x64   : >> { %6657 = vmatprep.subr.bf16.mxu1 %v7537_v0  ;;  %s8378_s22 = scalar_lea.vmem %s8356_s11, %s10497_s16  ;;  %v7540_v3 = vld [vmem:[%s10477_s2 + $0x118] sm:$0xff]   ;;  %v7545_v7 = vld [vmem:[%s10477_s2] sm:$0xff]   ;;  %v7546_v9 = vld [vmem:[%s10477_s2 + $0x8] sm:$0xff]   ;;  %s8577_s16 = scalar_lea.vmem %s8341_s18, %s8123_s20 [#allocation2]  ;;  %vm5228_vm2 = vcmask 64512   ;;  %vm5253_vm3 = vcmask 1043456  }
  0x65   : >> { %6658 = vmatpush3.bf16.msra.mxu1 %v7537_v0  ;;  %v510_v4 = vld [vmem:[%s8378_s22] sm:$0xff]  ;;  %v511_v5 = vld [vmem:[%s8378_s22 + $0x8] sm:$0xff]  ;;  %6625 = vmatprep.subr.bf16.mxu0 %v7545_v7  ;;  %v7547_v10 = vld [vmem:[%s10477_s2 + $0x10] sm:$0xff]   ;;  %s10578_s23 = sld [smem:[#allocation28_spill]]  ;;  %s10579_s0 = sld [smem:[#allocation29_spill]] }
  0x66   : >> { %6659 = vmatprep.subr.bf16.mxu1 %v7538_v1  ;;  %v8385_v6 = vpack.c.bf16 %v511_v5, %v510_v4  ;;  %v7541_v8 = vld [vmem:[%s10477_s2 + $0x120] sm:$0xff]   ;;  %6626 = vmatpush3.bf16.msra.mxu0 %v7545_v7  ;;  %v7542_v11 = vld [vmem:[%s10477_s2 + $0x128] sm:$0xff]   ;;  %v7548_v12 = vld [vmem:[%s10477_s2 + $0x18] sm:$0xff]  }
  0x67   : >> { %6627 = vmatprep.subr.bf16.mxu0 %v7546_v9  ;;  %v7543_v13 = vld [vmem:[%s10477_s2 + $0x130] sm:$0xff]   ;;  %v7549_v14 = vld [vmem:[%s10477_s2 + $0x20] sm:$0xff]   ;;  %v7544_v15 = vld [vmem:[%s10477_s2 + $0x138] sm:$0xff]  }
  0x68   : >> { %6673 = vmatprep.mubr.bf16.mxu1 %v8385_v6  ;;  %6641 = vmatprep.mubr.bf16.mxu0 %v8385_v6  ;;  %v512_v16 = vld [vmem:[%s8378_s22 + $0x10] sm:$0xff]  ;;  %v513_v17 = vld [vmem:[%s8378_s22 + $0x18] sm:$0xff]  ;;  %v7550_v18 = vld [vmem:[%s10477_s2 + $0x28] sm:$0xff]  }
  0x69   : >> { %6660 = vmatpush3.bf16.msra.mxu1 %v7538_v1  ;;  %v514_v19 = vld [vmem:[%s8378_s22 + $0x20] sm:$0xff]  ;;  %v515_v20 = vld [vmem:[%s8378_s22 + $0x28] sm:$0xff]  ;;  %v7551_v21 = vld [vmem:[%s10477_s2 + $0x30] sm:$0xff]   ;;  %v8426_v22 = vpack.c.bf16 %v513_v17, %v512_v16 }
  0x6a   : >> { %6661 = vmatprep.subr.bf16.mxu1 %v7539_v2  ;;  %6628 = vmatpush3.bf16.msra.mxu0 %v7546_v9  ;;  %v8428_v23 = vpack.c.bf16 %v515_v20, %v514_v19  ;;  %v516_v24 = vld [vmem:[%s8378_s22 + $0x30] sm:$0xff]  ;;  %v517_v25 = vld [vmem:[%s8378_s22 + $0x38] sm:$0xff]  ;;  %v518_v27 = vld [vmem:[%s8378_s22 + $0x40] sm:$0xff] }
  0x6b   : >> { %6629 = vmatprep.subr.bf16.mxu0 %v7547_v10  ;;  %10537 = vst [vmem:[#allocation14_spill] sm:$0xff] %v8426_v22  ;;  %v7552_v26 = vld [vmem:[%s10477_s2 + $0x38] sm:$0xff]   ;;  %v519_v28 = vld [vmem:[%s8378_s22 + $0x48] sm:$0xff]  ;;  %v8439_v29 = vpack.c.bf16 %v517_v25, %v516_v24  ;;  %v520_v31 = vld [vmem:[%s8378_s22 + $0x50] sm:$0xff] }
  0x6c   : >> { %10538 = vst [vmem:[#allocation15_spill] sm:$0xff] %v8428_v23  ;;  %v8441_v30 = vpack.c.bf16 %v519_v28, %v518_v27  ;;  %v521_v32 = vld [vmem:[%s8378_s22 + $0x58] sm:$0xff]  ;;  %v522_v33 = vld [vmem:[%s8378_s22 + $0x60] sm:$0xff]  ;;  %v523_v34 = vld [vmem:[%s8378_s22 + $0x68] sm:$0xff] }
  0x6d   : >> { %6662 = vmatpush3.bf16.msra.mxu1 %v7539_v2  ;;  %10539 = vst [vmem:[#allocation16_spill] sm:$0xff] %v8439_v29  ;;  %v8450_v35 = vpack.c.bf16 %v521_v32, %v520_v31  ;;  %v8453_v36 = vpack.c.bf16 %v523_v34, %v522_v33  ;;  %v524_v37 = vld [vmem:[%s8378_s22 + $0x70] sm:$0xff]  ;;  %v525_v38 = vld [vmem:[%s8378_s22 + $0x78] sm:$0xff]  ;;  %v8471_v41 = vld [vmem:[%s10478_s3 + $0x4] ss:$0 sm:$0xff] }
  0x6e   : >> { %6663 = vmatprep.subr.bf16.mxu1 %v7540_v3  ;;  %6630 = vmatpush3.bf16.msra.mxu0 %v7547_v10  ;;  %10540 = vst [vmem:[#allocation17_spill] sm:$0xff] %v8441_v30  ;;  %v8460_v39 = vpack.c.bf16 %v525_v38, %v524_v37  ;;  %v8483_v55 = vld [vmem:[%s10478_s3] ss:$0 sm:$0xff] }
  0x6f   : >> { %6631 = vmatprep.subr.bf16.mxu0 %v7548_v12  ;;  %10541 = vst [vmem:[#allocation18_spill] sm:$0xff] %v8450_v35  ;;  %10542 = vst [vmem:[#allocation19_spill] sm:$0xff] %v8453_v36 }
  0x70   : >> { %10543 = vst [vmem:[#allocation20_spill] sm:$0xff] %v8460_v39 }
  0x71   : >> { %6664 = vmatpush3.bf16.msra.mxu1 %v7540_v3 }
  0x72   : >> { %6665 = vmatprep.subr.bf16.mxu1 %v7541_v8  ;;  %6632 = vmatpush3.bf16.msra.mxu0 %v7548_v12 }
  0x73   : >> { %6633 = vmatprep.subr.bf16.mxu0 %v7549_v14 }
  0x75   : >> { %6666 = vmatpush3.bf16.msra.mxu1 %v7541_v8 }
  0x76   : >> { %6667 = vmatprep.subr.bf16.mxu1 %v7542_v11  ;;  %6634 = vmatpush3.bf16.msra.mxu0 %v7549_v14 }
  0x77   : >> { %6635 = vmatprep.subr.bf16.mxu0 %v7550_v18 }
  0x79   : >> { %6668 = vmatpush3.bf16.msra.mxu1 %v7542_v11 }
  0x7a   : >> { %6669 = vmatprep.subr.bf16.mxu1 %v7543_v13  ;;  %6636 = vmatpush3.bf16.msra.mxu0 %v7550_v18 }
  0x7b   : >> { %6637 = vmatprep.subr.bf16.mxu0 %v7551_v21 }
  0x7d   : >> { %6670 = vmatpush3.bf16.msra.mxu1 %v7543_v13 }
  0x7e   : >> { %6671 = vmatprep.subr.bf16.mxu1 %v7544_v15  ;;  %6638 = vmatpush3.bf16.msra.mxu0 %v7551_v21 }
  0x7f   : >> { %6639 = vmatprep.subr.bf16.mxu0 %v7552_v26 }
  0x81   : >> { %6672 = vmatpush3.bf16.msra.mxu1 %v7544_v15 }
  0x82   : >> { %6640 = vmatpush3.bf16.msra.mxu0 %v7552_v26 }
  0x84   : >> { %6674 = vmatmul.mubr.bf16.vlgmr.msra.gmra.mrb[0].mxu1 %v8426_v22 }
  0x85   : >> { %6677 = vmatprep.mubr.bf16.mxu1 %v8428_v23  ;;  %6642 = vmatmul.mubr.bf16.vlgmr.msra.gmra.mrb[0].mxu0 %v8426_v22 }
  0x86   : >> { %6645 = vmatprep.mubr.bf16.mxu0 %v8428_v23 }
  0x8c   : >> { %6678 = vmatmul.mubr.bf16.gmra.mrb[4].mxu1 %v8439_v29 }
  0x8d   : >> { %6681 = vmatprep.mubr.bf16.mxu1 %v8441_v30  ;;  %6646 = vmatmul.mubr.bf16.gmra.mrb[4].mxu0 %v8439_v29 }
  0x8e   : >> { %6649 = vmatprep.mubr.bf16.mxu0 %v8441_v30 }
  0x94   : >> { %6682 = vmatmul.mubr.bf16.gmra.mrb[8].mxu1 %v8450_v35 }
  0x95   : >> { %6685 = vmatprep.mubr.bf16.mxu1 %v8453_v36  ;;  %6650 = vmatmul.mubr.bf16.gmra.mrb[8].mxu0 %v8450_v35 }
  0x96   : >> { %6653 = vmatprep.mubr.bf16.mxu0 %v8453_v36 }
  0x9c   : >> { %6686 = vmatmul.mubr.bf16.gmra.mrb[12].mxu1 %v8460_v39 }
  0x9d   : >> { %6654 = vmatmul.mubr.bf16.gmra.mrb[12].mxu0 %v8460_v39 }
  0x9e   : >> { %6705 = vmatprep.mubr.bf16.mxu0 %v8385_v6 }
 0x157   : >> { %v6675_v40 = vpop.f32.mrb[0].mxu1 }
 0x158   : >> { %v811_v42 = vpop.f32.mrb[1].mxu1  ;;  %v820_v44 = vadd.f32 %v6675_v40, %v8471_v41  ;;  %v6643_v60 = vpop.f32.mrb[0].mxu0 }
 0x159   : >> { %v6676_v43 = vpop.f32.mrb[2].mxu1  ;;  %v812_v47 = vadd.f32 %v8471_v41, %v811_v42  ;;  %v8490_v62 = vadd.f32 %v6643_v60, %v8483_v55  ;;  %v641_v63 = vpop.f32.mrb[1].mxu0 }
 0x15a   : >> { %v823_v45 = vadd.f32 %v6676_v43, %v8471_v41  ;;  %v814_v46 = vpop.f32.mrb[3].mxu1  ;;  %v642_v1 = vadd.f32 %v8483_v55, %v641_v63  ;;  %v6644_v2 = vpop.f32.mrb[2].mxu0 }
 0x15b   : >> { %v815_v48 = vadd.f32 %v8471_v41, %v814_v46  ;;  %v8494_v4 = vadd.f32 %v6644_v2, %v8483_v55  ;;  %v644_v5 = vpop.f32.mrb[3].mxu0 }
 0x15c   : >> { %v1053_v49 = vpack.c.bf16 %v823_v45, %v820_v44  ;;  %v645_v7 = vadd.f32 %v8483_v55, %v644_v5 }
 0x15d   : >> { %v1052_v50 = vpack.c.bf16 %v815_v48, %v812_v47  ;;  %v1045_v10 = vpack.c.bf16 %v8494_v4, %v8490_v62  ;;  %v7554_v62 = vld [vmem:[%s10477_s2 + $0x208] sm:$0xff]   ;;  %v7555_v4 = vld [vmem:[%s10477_s2 + $0x210] sm:$0xff]  }
 0x15e   : >> { %v1095_v8 = vsel %vm1066_vm0, %v1053_v49, 0  ;;  %v1044_v13 = vpack.c.bf16 %v645_v7, %v642_v1 }
 0x15f   : >> { %7431 = vmatprep.subr.msk.bf16.mxu1 %vm1066_vm0, %v1052_v50  ;;  %v1092_v51 = vsel %vm1066_vm0, %v1052_v50, 0  ;;  %v6679_v52 = vpop.f32.mrb[4].mxu1 }
 0x160   : >> { %6722 = vmatpush3.bf16.xpose.msra.mxu1 %v1092_v51  ;;  %v836_v53 = vadd.f32 %v6679_v52, %v8471_v41  ;;  %v827_v54 = vpop.f32.mrb[5].mxu1  ;;  %6737 = vmatprep.mubr.msk.bf16.mxu1 %vm1066_vm0, %v1044_v13  ;;  %v6647_v18 = vpop.f32.mrb[4].mxu0 }
 0x161   : >> { %7432 = vmatprep.subr.msk.bf16.mxu1 %vm1066_vm0, %v1053_v49  ;;  %v828_v56 = vadd.f32 %v8471_v41, %v827_v54  ;;  %v6680_v57 = vpop.f32.mrb[6].mxu1  ;;  %v666_v20 = vadd.f32 %v6647_v18, %v8483_v55  ;;  %v657_v21 = vpop.f32.mrb[5].mxu0  ;;  %v7560_v18 = vld [vmem:[%s10477_s2 + $0x238] sm:$0xff]  }
 0x162   : >> { %v839_v58 = vadd.f32 %v6680_v57, %v8471_v41  ;;  %v830_v59 = vpop.f32.mrb[7].mxu1  ;;  %v658_v25 = vadd.f32 %v8483_v55, %v657_v21  ;;  %v6648_v26 = vpop.f32.mrb[6].mxu0 }
 0x163   : >> { %v831_v61 = vadd.f32 %v8471_v41, %v830_v59  ;;  %v669_v28 = vadd.f32 %v6648_v26, %v8483_v55  ;;  %v660_v31 = vpop.f32.mrb[7].mxu0 }
 0x164   : >> { %v1055_v0 = vpack.c.bf16 %v839_v58, %v836_v53  ;;  %v661_v32 = vadd.f32 %v8483_v55, %v660_v31 }
 0x165   : >> { %v1054_v3 = vpack.c.bf16 %v831_v61, %v828_v56  ;;  %v1047_v37 = vpack.c.bf16 %v669_v28, %v666_v20 }
 0x166   : >> { %v1046_v42 = vpack.c.bf16 %v661_v32, %v658_v25  ;;  %v1101_v59 = vsel %vm1066_vm0, %v1055_v0, 0 }
 0x167   : >> { %v6683_v9 = vpop.f32.mrb[8].mxu1  ;;  %v1098_v33 = vsel %vm1066_vm0, %v1054_v3, 0 }
 0x168   : >> { %6724 = vmatpush3.bf16.xpose.msra.mxu1 %v1095_v8  ;;  %v852_v11 = vadd.f32 %v6683_v9, %v8471_v41  ;;  %v843_v12 = vpop.f32.mrb[9].mxu1  ;;  %v6651_v47 = vpop.f32.mrb[8].mxu0 }
 0x169   : >> { %7433 = vmatprep.subr.msk.bf16.mxu1 %vm1066_vm0, %v1054_v3  ;;  %v844_v14 = vadd.f32 %v8471_v41, %v843_v12  ;;  %v6684_v15 = vpop.f32.mrb[10].mxu1  ;;  %v682_v49 = vadd.f32 %v6651_v47, %v8483_v55  ;;  %v673_v50 = vpop.f32.mrb[9].mxu0 }
 0x16a   : >> { %v855_v16 = vadd.f32 %v6684_v15, %v8471_v41  ;;  %v846_v17 = vpop.f32.mrb[11].mxu1  ;;  %v674_v52 = vadd.f32 %v8483_v55, %v673_v50  ;;  %v6652_v53 = vpop.f32.mrb[10].mxu0  ;;  %v7557_v15 = vld [vmem:[%s10477_s2 + $0x220] sm:$0xff]  }
 0x16b   : >> { %v847_v19 = vadd.f32 %v8471_v41, %v846_v17  ;;  %v685_v56 = vadd.f32 %v6652_v53, %v8483_v55  ;;  %v676_v57 = vpop.f32.mrb[11].mxu0  ;;  %v7559_v17 = vld [vmem:[%s10477_s2 + $0x230] sm:$0xff]  }
 0x16c   : >> { %v1057_v24 = vpack.c.bf16 %v855_v16, %v852_v11  ;;  %v677_v58 = vadd.f32 %v8483_v55, %v676_v57  ;;  %v7558_v16 = vld [vmem:[%s10477_s2 + $0x228] sm:$0xff]  }
 0x16d   : >> { %v1056_v27 = vpack.c.bf16 %v847_v19, %v844_v14  ;;  %v1049_v60 = vpack.c.bf16 %v685_v56, %v682_v49  ;;  %v5908_v19 = vld [vmem:[%s8577_s16] ss:$0 sm:$0xff] }
 0x16e   : >> { %v1048_v61 = vpack.c.bf16 %v677_v58, %v674_v52  ;;  %v1107_v12 = vsel %vm1066_vm0, %v1057_v24, 0 }
 0x16f   : >> { %v6687_v34 = vpop.f32.mrb[12].mxu1  ;;  %v1104_v9 = vsel %vm1066_vm0, %v1056_v27, 0 }
 0x170   : >> { %6726 = vmatpush3.bf16.xpose.msra.mxu1 %v1098_v33  ;;  %v868_v38 = vadd.f32 %v6687_v34, %v8471_v41  ;;  %v859_v40 = vpop.f32.mrb[13].mxu1 }
 0x171   : >> { %7434 = vmatprep.subr.msk.bf16.mxu1 %vm1066_vm0, %v1055_v0  ;;  %v860_v43 = vadd.f32 %v8471_v41, %v859_v40  ;;  %v6688_v44 = vpop.f32.mrb[14].mxu1 }
 0x172   : >> { %v871_v45 = vadd.f32 %v6688_v44, %v8471_v41  ;;  %v862_v46 = vpop.f32.mrb[15].mxu1 }
 0x173   : >> { %v863_v48 = vadd.f32 %v8471_v41, %v862_v46  ;;  %v6655_v41 = vpop.f32.mrb[12].mxu0 }
 0x174   : >> { %v1059_v51 = vpack.c.bf16 %v871_v45, %v868_v38  ;;  %v698_v63 = vadd.f32 %v6655_v41, %v8483_v55  ;;  %v689_v1 = vpop.f32.mrb[13].mxu0  ;;  %v7562_v41 = vld [vmem:[%s10477_s2 + $0x148] sm:$0xff]  }
 0x175   : >> { %v1058_v54 = vpack.c.bf16 %v863_v48, %v860_v43  ;;  %v690_v2 = vadd.f32 %v8483_v55, %v689_v1  ;;  %v6656_v3 = vpop.f32.mrb[14].mxu0  ;;  %v7564_v1 = vld [vmem:[%s10477_s2 + $0x158] sm:$0xff]  }
 0x176   : >> { %v701_v5 = vadd.f32 %v6656_v3, %v8483_v55  ;;  %v692_v7 = vpop.f32.mrb[15].mxu0  ;;  %v1113_v14 = vsel %vm1066_vm0, %v1059_v51, 0  ;;  %v7566_v3 = vld [vmem:[%s10477_s2 + $0x168] sm:$0xff]  }
 0x177   : >> { %v693_v8 = vadd.f32 %v8483_v55, %v692_v7  ;;  %v1110_v13 = vsel %vm1066_vm0, %v1058_v54, 0  ;;  %v7553_v55 = vld [vmem:[%s10477_s2 + $0x200] sm:$0xff]   ;;  %v7568_v7 = vld [vmem:[%s10477_s2 + $0x178] sm:$0xff]  }
 0x178   : >> { %6728 = vmatpush3.bf16.xpose.msra.mxu1 %v1101_v59  ;;  %v1051_v0 = vpack.c.bf16 %v701_v5, %v698_v63  ;;  %6689 = vmatprep.subr.bf16.mxu0 %v7553_v55  ;;  %v7563_v63 = vld [vmem:[%s10477_s2 + $0x150] sm:$0xff]  }
 0x179   : >> { %7435 = vmatprep.subr.msk.bf16.mxu1 %vm1066_vm0, %v1056_v27  ;;  %v1050_v11 = vpack.c.bf16 %v693_v8, %v690_v2  ;;  %6690 = vmatpush3.bf16.msra.mxu0 %v7553_v55  ;;  %v7565_v2 = vld [vmem:[%s10477_s2 + $0x160] sm:$0xff]   ;;  %v7567_v5 = vld [vmem:[%s10477_s2 + $0x170] sm:$0xff]  }
 0x17a   : >> { %6691 = vmatprep.subr.bf16.mxu0 %v7554_v62 }
 0x17d   : >> { %6692 = vmatpush3.bf16.msra.mxu0 %v7554_v62 }
 0x17e   : >> { %6693 = vmatprep.subr.bf16.mxu0 %v7555_v4 }
 0x180   : >> { %6730 = vmatpush3.bf16.xpose.msra.mxu1 %v1104_v9 }
 0x181   : >> { %7436 = vmatprep.subr.msk.bf16.mxu1 %vm1066_vm0, %v1057_v24  ;;  %6694 = vmatpush3.bf16.msra.mxu0 %v7555_v4  ;;  %v8665_v4 = vld [vmem:[%s10478_s3 + $0x8] ss:$0 sm:$0xff] }
 0x188   : >> { %6732 = vmatpush3.bf16.xpose.msra.mxu1 %v1107_v12 }
 0x189   : >> { %7437 = vmatprep.subr.msk.bf16.mxu1 %vm1066_vm0, %v1058_v54 }
 0x190   : >> { %6734 = vmatpush3.bf16.xpose.msra.mxu1 %v1110_v13 }
 0x191   : >> { %7438 = vmatprep.subr.msk.bf16.mxu1 %vm1066_vm0, %v1059_v51 }
 0x198   : >> { %6736 = vmatpush3.bf16.xpose.msra.mxu1 %v1113_v14 }
 0x19f   : >> { %6738 = vmatmul.mubr.msk.bf16.vlgmr.msra.gmra.mrb[16].mxu1 %vm1066_vm0, %v1045_v10  ;;  %v7556_v10 = vld [vmem:[%s10477_s2 + $0x218] sm:$0xff]  }
 0x1a0   : >> { %6741 = vmatprep.mubr.msk.bf16.mxu1 %vm1066_vm0, %v1046_v42  ;;  %6695 = vmatprep.subr.bf16.mxu0 %v7556_v10 }
 0x1a1   : >> { %6696 = vmatpush3.bf16.msra.mxu0 %v7556_v10 }
 0x1a2   : >> { %6697 = vmatprep.subr.bf16.mxu0 %v7557_v15 }
 0x1a5   : >> { %6698 = vmatpush3.bf16.msra.mxu0 %v7557_v15 }
 0x1a6   : >> { %6699 = vmatprep.subr.bf16.mxu0 %v7558_v16 }
 0x1a7   : >> { %6742 = vmatmul.mubr.msk.bf16.gmra.mrb[20].mxu1 %vm1066_vm0, %v1047_v37 }
 0x1a8   : >> { %6745 = vmatprep.mubr.msk.bf16.mxu1 %vm1066_vm0, %v1048_v61  ;;  %v7561_v61 = vld [vmem:[%s10477_s2 + $0x140] sm:$0xff]  }
 0x1a9   : >> { %6700 = vmatpush3.bf16.msra.mxu0 %v7558_v16  ;;  %6817 = vmatprep.subr.bf16.mxu1 %v7561_v61 }
 0x1aa   : >> { %6701 = vmatprep.subr.bf16.mxu0 %v7559_v17  ;;  %6818 = vmatpush3.bf16.msra.mxu1 %v7561_v61 }
 0x1ab   : >> { %6819 = vmatprep.subr.bf16.mxu1 %v7562_v41 }
 0x1ad   : >> { %6702 = vmatpush3.bf16.msra.mxu0 %v7559_v17 }
 0x1ae   : >> { %6703 = vmatprep.subr.bf16.mxu0 %v7560_v18  ;;  %6820 = vmatpush3.bf16.msra.mxu1 %v7562_v41 }
 0x1af   : >> { %6746 = vmatmul.mubr.msk.bf16.gmra.mrb[24].mxu1 %vm1066_vm0, %v1049_v60  ;;  %6821 = vmatprep.subr.bf16.mxu1 %v7563_v63 }
 0x1b0   : >> { %6749 = vmatprep.mubr.msk.bf16.mxu1 %vm1066_vm0, %v1050_v11 }
 0x1b1   : >> { %6704 = vmatpush3.bf16.msra.mxu0 %v7560_v18 }
 0x1b2   : >> { %6822 = vmatpush3.bf16.msra.mxu1 %v7563_v63 }
 0x1b3   : >> { %6823 = vmatprep.subr.bf16.mxu1 %v7564_v1 }
 0x1b4   : >> { %6706 = vmatmul.mubr.bf16.vlgmr.msra.gmra.mrb[16].mxu0 %v8426_v22 }
 0x1b5   : >> { %6709 = vmatprep.mubr.bf16.mxu0 %v8428_v23 }
 0x1b6   : >> { %6824 = vmatpush3.bf16.msra.mxu1 %v7564_v1 }
 0x1b7   : >> { %6750 = vmatmul.mubr.msk.bf16.gmra.mrb[28].mxu1 %vm1066_vm0, %v1051_v0  ;;  %6825 = vmatprep.subr.bf16.mxu1 %v7565_v2 }
 0x1b8   : >> { %6833 = vmatprep.mubr.bf16.mxu1 %v8385_v6 }
 0x1ba   : >> { %6826 = vmatpush3.bf16.msra.mxu1 %v7565_v2 }
 0x1bb   : >> { %6827 = vmatprep.subr.bf16.mxu1 %v7566_v3 }
 0x1bc   : >> { %6710 = vmatmul.mubr.bf16.gmra.mrb[20].mxu0 %v8439_v29 }
 0x1bd   : >> { %6713 = vmatprep.mubr.bf16.mxu0 %v8441_v30 }
 0x1be   : >> { %6828 = vmatpush3.bf16.msra.mxu1 %v7566_v3 }
 0x1bf   : >> { %6829 = vmatprep.subr.bf16.mxu1 %v7567_v5 }
 0x1c2   : >> { %6830 = vmatpush3.bf16.msra.mxu1 %v7567_v5 }
 0x1c3   : >> { %6831 = vmatprep.subr.bf16.mxu1 %v7568_v7 }
 0x1c4   : >> { %6714 = vmatmul.mubr.bf16.gmra.mrb[24].mxu0 %v8450_v35 }
 0x1c5   : >> { %6717 = vmatprep.mubr.bf16.mxu0 %v8453_v36 }
 0x1c6   : >> { %6832 = vmatpush3.bf16.msra.mxu1 %v7568_v7 }
 0x1c9   : >> { %6834 = vmatmul.mubr.bf16.vlgmr.msra.gmra.mrb[32].mxu1 %v8426_v22 }
 0x1ca   : >> { %6837 = vmatprep.mubr.bf16.mxu1 %v8428_v23 }
 0x1cc   : >> { %6718 = vmatmul.mubr.bf16.gmra.mrb[28].mxu0 %v8460_v39 }
 0x1d1   : >> { %6838 = vmatmul.mubr.bf16.gmra.mrb[36].mxu1 %v8439_v29 }
 0x1d2   : >> { %6841 = vmatprep.mubr.bf16.mxu1 %v8441_v30 }
 0x1d9   : >> { %6842 = vmatmul.mubr.bf16.gmra.mrb[40].mxu1 %v8450_v35 }
 0x1da   : >> { %6845 = vmatprep.mubr.bf16.mxu1 %v8453_v36 }
 0x1e1   : >> { %6846 = vmatmul.mubr.bf16.gmra.mrb[44].mxu1 %v8460_v39 }
 0x272   : >> { %v6739_v20 = vpop.f32.mrb[16].mxu1 }
 0x273   : >> { %v8580_v21 = vadd.f32 %v6739_v20, %v5908_v19  ;;  %v1149_v24 = vpop.f32.mrb[17].mxu1 }
 0x274   : >> { %v8582_v25 = vadd.f32 %v5908_v19, %v1149_v24  ;;  %v6740_v26 = vpop.f32.mrb[18].mxu1 }
 0x275   : >> { %1216 = vmax.xlane.f32.xlu1 %v8580_v21  ;;  %v1152_v27 = vpop.f32.mrb[19].mxu1  ;;  %v8586_v28 = vadd.f32 %v6740_v26, %v5908_v19 }
 0x276   : >> { %1212 = vmax.xlane.f32.xlu0 %v8582_v25  ;;  %v8588_v31 = vadd.f32 %v5908_v19, %v1152_v27 }
 0x279   : >> { %1218 = vmax.xlane.f32.xlu1 %v8586_v28 }
 0x27a   : >> { %v6743_v32 = vpop.f32.mrb[20].mxu1  ;;  %1214 = vmax.xlane.f32.xlu0 %v8588_v31 }
 0x27b   : >> { %v1165_v33 = vpop.f32.mrb[21].mxu1  ;;  %v8597_v42 = vadd.f32 %v6743_v32, %v5908_v19 }
 0x27c   : >> { %v8592_v34 = vadd.f32 %v5908_v19, %v1165_v33  ;;  %v6744_v37 = vpop.f32.mrb[22].mxu1 }
 0x27d   : >> { %v1168_v38 = vpop.f32.mrb[23].mxu1  ;;  %v8600_v43 = vadd.f32 %v6744_v37, %v5908_v19 }
 0x27e   : >> { %v8594_v40 = vadd.f32 %v5908_v19, %v1168_v38  ;;  %1220 = vmax.xlane.f32.xlu0 %v8592_v34 }
 0x280   : >> { %1222 = vmax.xlane.f32.xlu1 %v8594_v40 }
 0x282   : >> { %v6747_v44 = vpop.f32.mrb[24].mxu1  ;;  %1224 = vmax.xlane.f32.xlu0 %v8597_v42 }
 0x283   : >> { %v1181_v45 = vpop.f32.mrb[25].mxu1  ;;  %v8609_v50 = vadd.f32 %v6747_v44, %v5908_v19 }
 0x284   : >> { %v8603_v46 = vadd.f32 %v5908_v19, %v1181_v45  ;;  %v6748_v47 = vpop.f32.mrb[26].mxu1  ;;  %1226 = vmax.xlane.f32.xlu1 %v8600_v43 }
 0x285   : >> { %v1184_v48 = vpop.f32.mrb[27].mxu1  ;;  %v8612_v51 = vadd.f32 %v6748_v47, %v5908_v19 }
 0x286   : >> { %v8606_v49 = vadd.f32 %v5908_v19, %v1184_v48  ;;  %1228 = vmax.xlane.f32.xlu0 %v8603_v46 }
 0x287   : >> { %v6707_v15 = vpop.f32.mrb[16].mxu0 }
 0x288   : >> { %1230 = vmax.xlane.f32.xlu1 %v8606_v49  ;;  %v990_v16 = vadd.f32 %v6707_v15, %v8665_v4  ;;  %v981_v17 = vpop.f32.mrb[17].mxu0 }
 0x289   : >> { %v6708_v20 = vpop.f32.mrb[18].mxu0 }
 0x28a   : >> { %v6751_v52 = vpop.f32.mrb[28].mxu1  ;;  %1232 = vmax.xlane.f32.xlu0 %v8609_v50  ;;  %v984_v26 = vpop.f32.mrb[19].mxu0 }
 0x28b   : >> { %v1197_v53 = vpop.f32.mrb[29].mxu1  ;;  %v8621_v59 = vadd.f32 %v6751_v52, %v5908_v19 }
 0x28c   : >> { %v8615_v54 = vadd.f32 %v5908_v19, %v1197_v53  ;;  %v6752_v56 = vpop.f32.mrb[30].mxu1  ;;  %1234 = vmax.xlane.f32.xlu1 %v8612_v51 }
 0x28d   : >> { %v1200_v57 = vpop.f32.mrb[31].mxu1  ;;  %v8624_v60 = vadd.f32 %v6752_v56, %v5908_v19 }
 0x28e   : >> { %v8618_v58 = vadd.f32 %v5908_v19, %v1200_v57  ;;  %1236 = vmax.xlane.f32.xlu0 %v8615_v54  ;;  %v982_v19 = vadd.f32 %v8665_v4, %v981_v17 }
 0x28f   : >> { %v6711_v48 = vpop.f32.mrb[20].mxu0 }
 0x290   : >> { %1238 = vmax.xlane.f32.xlu1 %v8618_v58  ;;  %v1006_v53 = vadd.f32 %v6711_v48, %v8665_v4 }
 0x292   : >> { %1240 = vmax.xlane.f32.xlu0 %v8621_v59 }
 0x294   : >> { %1242 = vmax.xlane.f32.xlu1 %v8624_v60 }
 0x302   : >> { %v1217_v8 = vpop.xlane.xlu1 %1216 }
 0x303   : >> { %v1246_v9 = vsub.f32 %v8580_v21, %v1217_v8  ;;  %v1213_v0 = vpop.xlane.xlu0 %1212 }
 0x304   : >> { %v1244_v11 = vsub.f32 %v8582_v25, %v1213_v0  ;;  %v993_v25 = vadd.f32 %v6708_v20, %v8665_v4 }
 0x305   : >> { %v1264_v14 = vmul.f32 1.442695, %v1246_v9 }
 0x306   : >> { %v1260_v12 = vmul.f32 1.442695, %v1244_v11  ;;  %v1219_v13 = vpop.xlane.xlu1 %1218  ;;  %v1365_v32 = vpack.c.bf16 %v993_v25, %v990_v16 }
 0x307   : >> { %v1247_v55 = vsub.f32 %v8586_v28, %v1219_v13  ;;  %v1215_v62 = vpop.xlane.xlu0 %1214  ;;  %v985_v28 = vadd.f32 %v8665_v4, %v984_v26 }
 0x308   : >> { %7649 = vpow2.f32 %v1260_v12  ;;  %v1245_v10 = vsub.f32 %v8588_v31, %v1215_v62 }
 0x309   : >> { %7651 = vpow2.f32 %v1264_v14  ;;  %v1266_v21 = vmul.f32 1.442695, %v1247_v55  ;;  %v1364_v38 = vpack.c.bf16 %v985_v28, %v982_v19 }
 0x30a   : >> { %v1262_v18 = vmul.f32 1.442695, %v1245_v10 }
 0x30b   : >> { %v1221_v24 = vpop.xlane.xlu0 %1220  ;;  %6753 = vmatprep.subr.bf16.mxu0 %v1364_v38 }
 0x30c   : >> { %7653 = vpow2.f32 %v1262_v18  ;;  %v1248_v27 = vsub.f32 %v8592_v34, %v1221_v24  ;;  %v997_v34 = vpop.f32.mrb[21].mxu0  ;;  %6754 = vmatpush3.bf16.msra.mxu0 %v1364_v38 }
 0x30d   : >> { %v1223_v31 = vpop.xlane.xlu1 %1222  ;;  %7655 = vpow2.f32 %v1266_v21  ;;  %v6712_v41 = vpop.f32.mrb[22].mxu0  ;;  %6755 = vmatprep.subr.bf16.mxu0 %v1365_v32 }
 0x30e   : >> { %v1268_v33 = vmul.f32 1.442695, %v1248_v27  ;;  %v1249_v37 = vsub.f32 %v8594_v40, %v1223_v31  ;;  %v998_v40 = vadd.f32 %v8665_v4, %v997_v34  ;;  %v1009_v63 = vadd.f32 %v6712_v41, %v8665_v4  ;;  %v1000_v1 = vpop.f32.mrb[23].mxu0 }
 0x30f   : >> { %v1225_v44 = vpop.xlane.xlu0 %1224  ;;  %v1001_v5 = vadd.f32 %v8665_v4, %v1000_v1  ;;  %v6715_v55 = vpop.f32.mrb[24].mxu0 }
 0x310   : >> { %7657 = vpow2.f32 %v1268_v33  ;;  %v1270_v45 = vmul.f32 1.442695, %v1249_v37  ;;  %v1250_v47 = vsub.f32 %v8597_v42, %v1225_v44  ;;  %v1367_v8 = vpack.c.bf16 %v1009_v63, %v1006_v53  ;;  %6756 = vmatpush3.bf16.msra.mxu0 %v1365_v32  ;;  %v1013_v16 = vpop.f32.mrb[25].mxu0 }
 0x311   : >> { %v1227_v52 = vpop.xlane.xlu1 %1226  ;;  %v1366_v12 = vpack.c.bf16 %v1001_v5, %v998_v40  ;;  %v1022_v15 = vadd.f32 %v6715_v55, %v8665_v4  ;;  %v1014_v19 = vadd.f32 %v8665_v4, %v1013_v16  ;;  %v6716_v20 = vpop.f32.mrb[26].mxu0  ;;  %v8753_v16 = vld [vmem:[%s10478_s3 + $0x5] ss:$0 sm:$0xff] }
 0x312   : >> { %v8676_v56 = vpop.eup %7649  ;;  %v1272_v57 = vmul.f32 1.442695, %v1250_v47  ;;  %v1251_v61 = vsub.f32 %v8600_v43, %v1227_v52  ;;  %7659 = vpow2.f32 %v1270_v45  ;;  %v1025_v21 = vadd.f32 %v6716_v20, %v8665_v4  ;;  %v1016_v24 = vpop.f32.mrb[27].mxu0 }
 0x313   : >> { %1292 = vadd.xlane.f32.xlu0 %v8676_v56  ;;  %v1229_v42 = vpop.xlane.xlu0 %1228  ;;  %v8684_v7 = vpop.eup %7651  ;;  %6757 = vmatprep.subr.bf16.mxu0 %v1366_v12  ;;  %v1017_v27 = vadd.f32 %v8665_v4, %v1016_v24 }
 0x314   : >> { %7661 = vpow2.f32 %v1272_v57  ;;  %v1274_v2 = vmul.f32 1.442695, %v1251_v61  ;;  %v1252_v3 = vsub.f32 %v8603_v46, %v1229_v42  ;;  %6758 = vmatpush3.bf16.msra.mxu0 %v1366_v12  ;;  %v1369_v31 = vpack.c.bf16 %v1025_v21, %v1022_v15  ;;  %v6719_v47 = vpop.f32.mrb[28].mxu0  ;;  %v8747_v12 = vld [vmem:[%s10477_s2 + $0x40] sm:$0xff]   ;;  %v6835_v15 = vpop.f32.mrb[32].mxu1 }
 0x315   : >> { %v1231_v43 = vpop.xlane.xlu1 %1230  ;;  %6759 = vmatprep.subr.bf16.mxu0 %v1367_v8  ;;  %v1368_v38 = vpack.c.bf16 %v1017_v27, %v1014_v19  ;;  %v1038_v53 = vadd.f32 %v6719_v47, %v8665_v4  ;;  %v1029_v34 = vpop.f32.mrb[29].mxu0 }
 0x316   : >> { %v8686_v9 = vpop.eup %7653  ;;  %v1276_v0 = vmul.f32 1.442695, %v1252_v3  ;;  %v1253_v11 = vsub.f32 %v8606_v49, %v1231_v43  ;;  %7663 = vpow2.f32 %v1274_v2  ;;  %v1030_v40 = vadd.f32 %v8665_v4, %v1029_v34  ;;  %v6720_v41 = vpop.f32.mrb[30].mxu0 }
 0x317   : >> { %1296 = vadd.xlane.f32.xlu0 %v8684_v7  ;;  %1294 = vadd.xlane.f32.xlu1 %v8686_v9  ;;  %v1233_v13 = vpop.xlane.xlu0 %1232  ;;  %v8692_v62 = vpop.eup %7655 }
 0x318   : >> { %7665 = vpow2.f32 %v1276_v0  ;;  %v1278_v46 = vmul.f32 1.442695, %v1253_v11  ;;  %v1254_v14 = vsub.f32 %v8609_v50, %v1233_v13  ;;  %6760 = vmatpush3.bf16.msra.mxu0 %v1367_v8  ;;  %v1032_v42 = vpop.f32.mrb[31].mxu0 }
 0x319   : >> { %v1235_v10 = vpop.xlane.xlu1 %1234  ;;  %6761 = vmatprep.subr.bf16.mxu0 %v1368_v38  ;;  %v1033_v1 = vadd.f32 %v8665_v4, %v1032_v42 }
 0x31a   : >> { %v8695_v49 = vpop.eup %7657  ;;  %v1280_v17 = vmul.f32 1.442695, %v1254_v14  ;;  %v1255_v18 = vsub.f32 %v8612_v51, %v1235_v10  ;;  %7667 = vpow2.f32 %v1278_v46 }
 0x31b   : >> { %1298 = vadd.xlane.f32.xlu1 %v8692_v62  ;;  %1300 = vadd.xlane.f32.xlu0 %v8695_v49  ;;  %v1237_v50 = vpop.xlane.xlu0 %1236  ;;  %v1370_v5 = vpack.c.bf16 %v1033_v1, %v1030_v40 }
 0x31c   : >> { %7669 = vpow2.f32 %v1280_v17  ;;  %v1282_v25 = vmul.f32 1.442695, %v1255_v18  ;;  %v1256_v26 = vsub.f32 %v8615_v54, %v1237_v50  ;;  %v8704_v51 = vpop.eup %7659  ;;  %6762 = vmatpush3.bf16.msra.mxu0 %v1368_v38  ;;  %v1767_v17 = vadd.f32 %v6835_v15, %v8753_v16  ;;  %v1758_v18 = vpop.f32.mrb[33].mxu1 }
 0x31d   : >> { %v1239_v28 = vpop.xlane.xlu1 %1238  ;;  %6763 = vmatprep.subr.bf16.mxu0 %v1369_v31  ;;  %v6836_v19 = vpop.f32.mrb[34].mxu1  ;;  %v1759_v21 = vadd.f32 %v8753_v16, %v1758_v18 }
 0x31e   : >> { %v8706_v32 = vpop.eup %7661  ;;  %v1284_v33 = vmul.f32 1.442695, %v1256_v26  ;;  %v1257_v37 = vsub.f32 %v8618_v58, %v1239_v28  ;;  %7671 = vpow2.f32 %v1282_v25  ;;  %v1770_v24 = vadd.f32 %v6836_v19, %v8753_v16  ;;  %v1761_v26 = vpop.f32.mrb[35].mxu1 }
 0x31f   : >> { %1302 = vadd.xlane.f32.xlu1 %v8704_v51  ;;  %1304 = vadd.xlane.f32.xlu0 %v8706_v32  ;;  %v1241_v44 = vpop.xlane.xlu0 %1240  ;;  %v1762_v28 = vadd.f32 %v8753_v16, %v1761_v26  ;;  %v6839_v47 = vpop.f32.mrb[36].mxu1 }
 0x320   : >> { %7673 = vpow2.f32 %v1284_v33  ;;  %v1286_v54 = vmul.f32 1.442695, %v1257_v37  ;;  %v1258_v45 = vsub.f32 %v8621_v59, %v1241_v44  ;;  %v8712_v48 = vpop.eup %7663  ;;  %v1041_v59 = vadd.f32 %v6720_v41, %v8665_v4  ;;  %6764 = vmatpush3.bf16.msra.mxu0 %v1369_v31 }
 0x321   : >> { %v1243_v52 = vpop.xlane.xlu1 %1242  ;;  %6765 = vmatprep.subr.bf16.mxu0 %v1370_v5  ;;  %v2000_v27 = vpack.c.bf16 %v1770_v24, %v1767_v17  ;;  %v1783_v34 = vadd.f32 %v6839_v47, %v8753_v16 }
 0x322   : >> { %v8715_v58 = vpop.eup %7665  ;;  %v1288_v57 = vmul.f32 1.442695, %v1258_v45  ;;  %v1259_v61 = vsub.f32 %v8624_v60, %v1243_v52  ;;  %7675 = vpow2.f32 %v1286_v54  ;;  %v1371_v3 = vpack.c.bf16 %v1041_v59, %v1038_v53 }
 0x323   : >> { %1306 = vadd.xlane.f32.xlu1 %v8712_v48  ;;  %1308 = vadd.xlane.f32.xlu0 %v8715_v58  ;;  %v1999_v45 = vpack.c.bf16 %v1762_v28, %v1759_v21  ;;  %v2035_v18 = vsel %vm1066_vm0, %v2000_v27, 0  ;;  %v7571_v21 = vld [vmem:[%s10477_s2 + $0x50] sm:$0xff]  }
 0x324   : >> { %7677 = vpow2.f32 %v1288_v57  ;;  %v1290_v63 = vmul.f32 1.442695, %v1259_v61  ;;  %v8723_v2 = vpop.eup %7667  ;;  %6766 = vmatpush3.bf16.msra.mxu0 %v1370_v5  ;;  %v1774_v57 = vpop.f32.mrb[37].mxu1 }
 0x325   : >> { %6767 = vmatprep.subr.bf16.mxu0 %v1371_v3  ;;  %7439 = vmatprep.subr.msk.bf16.mxu1 %vm1066_vm0, %v1999_v45  ;;  %v2032_v53 = vsel %vm1066_vm0, %v1999_v45, 0  ;;  %v6840_v41 = vpop.f32.mrb[38].mxu1  ;;  %v1775_v42 = vadd.f32 %v8753_v16, %v1774_v57 }
 0x326   : >> { %v8725_v60 = vpop.eup %7669  ;;  %7679 = vpow2.f32 %v1290_v63  ;;  %6882 = vmatpush3.bf16.xpose.msra.mxu1 %v2032_v53  ;;  %v1786_v63 = vadd.f32 %v6840_v41, %v8753_v16  ;;  %v7573_v41 = vld [vmem:[%s10477_s2 + $0x60] sm:$0xff]  }
 0x327   : >> { %1310 = vadd.xlane.f32.xlu1 %v8723_v2  ;;  %1312 = vadd.xlane.f32.xlu0 %v8725_v60 }
 0x328   : >> { %v8729_v43 = vpop.eup %7671  ;;  %6768 = vmatpush3.bf16.msra.mxu0 %v1371_v3  ;;  %7440 = vmatprep.subr.msk.bf16.mxu1 %vm1066_vm0, %v2000_v27  ;;  %v1777_v3 = vpop.f32.mrb[39].mxu1 }
 0x329   : >> { %6785 = vmatprep.subr.bf16.mxu0 %v8747_v12 }
 0x32a   : >> { %v8731_v8 = vpop.eup %7673 }
 0x32b   : >> { %1314 = vadd.xlane.f32.xlu1 %v8729_v43  ;;  %1316 = vadd.xlane.f32.xlu0 %v8731_v8 }
 0x32c   : >> { %v8735_v4 = vpop.eup %7675 }
 0x32e   : >> { %v8737_v0 = vpop.eup %7677  ;;  %6884 = vmatpush3.bf16.xpose.msra.mxu1 %v2035_v18 }
 0x32f   : >> { %1318 = vadd.xlane.f32.xlu1 %v8735_v4  ;;  %1320 = vadd.xlane.f32.xlu0 %v8737_v0 }
 0x330   : >> { %v8741_v11 = vpop.eup %7679 }
 0x333   : >> { %1322 = vadd.xlane.f32.xlu1 %v8741_v11 }
 0x3a0   : >> { %v1293_v13 = vpop.xlane.xlu0 %1292 }
 0x3a1   : >> { %7681 = vrcp.f32 %v1293_v13  ;;  %v8772_v13 = vpack.c.bf16 %v1786_v63, %v1783_v34 }
 0x3a4   : >> { %v1295_v46 = vpop.xlane.xlu1 %1294  ;;  %v1297_v14 = vpop.xlane.xlu0 %1296 }
 0x3a5   : >> { %7683 = vrcp.f32 %v1295_v46 }
 0x3a6   : >> { %7685 = vrcp.f32 %v1297_v14 }
 0x3a8   : >> { %v1299_v55 = vpop.xlane.xlu1 %1298  ;;  %v1301_v10 = vpop.xlane.xlu0 %1300 }
 0x3a9   : >> { %7687 = vrcp.f32 %v1299_v55 }
 0x3aa   : >> { %7689 = vrcp.f32 %v1301_v10 }
 0x3ab   : >> { %v7682_v25 = vpop.eup %7681 }
 0x3ac   : >> { %v1303_v20 = vpop.xlane.xlu1 %1302  ;;  %v1305_v50 = vpop.xlane.xlu0 %1304  ;;  %v1340_v44 = vmul.f32 %v7682_v25, %v8676_v56 }
 0x3ad   : >> { %7691 = vrcp.f32 %v1303_v20  ;;  %v6843_v20 = vpop.f32.mrb[40].mxu1 }
 0x3ae   : >> { %7693 = vrcp.f32 %v1305_v50  ;;  %v1799_v24 = vadd.f32 %v6843_v20, %v8753_v16  ;;  %v1790_v25 = vpop.f32.mrb[41].mxu1 }
 0x3af   : >> { %v7684_v31 = vpop.eup %7683 }
 0x3b0   : >> { %v7686_v33 = vpop.eup %7685  ;;  %v1307_v37 = vpop.xlane.xlu1 %1306  ;;  %v1341_v54 = vmul.f32 %v7684_v31, %v8686_v9  ;;  %v1791_v31 = vadd.f32 %v8753_v16, %v1790_v25 }
 0x3b1   : >> { %v1309_v38 = vpop.xlane.xlu0 %1308  ;;  %7695 = vrcp.f32 %v1307_v37  ;;  %v1342_v40 = vmul.f32 %v7686_v33, %v8684_v7  ;;  %v7570_v7 = vld [vmem:[%s10477_s2 + $0x48] sm:$0xff]  }
 0x3b2   : >> { %v1356_v52 = vpack.c.bf16 %v1341_v54, %v1340_v44  ;;  %7697 = vrcp.f32 %v1309_v38 }
 0x3b3   : >> { %v7688_v61 = vpop.eup %7687 }
 0x3b4   : >> { %v1343_v56 = vmul.f32 %v7688_v61, %v8692_v62  ;;  %v1311_v9 = vpop.xlane.xlu1 %1310  ;;  %6769 = vmatprep.mubr.bf16.mxu0 %v1356_v52  ;;  %v7690_v1 = vpop.eup %7689  ;;  %v1778_v62 = vadd.f32 %v8753_v16, %v1777_v3 }
 0x3b5   : >> { %v1313_v59 = vpop.xlane.xlu0 %1312  ;;  %7699 = vrcp.f32 %v1311_v9  ;;  %v1344_v15 = vmul.f32 %v7690_v1, %v8695_v49 }
 0x3b6   : >> { %v1357_v5 = vpack.c.bf16 %v1343_v56, %v1342_v40  ;;  %7701 = vrcp.f32 %v1313_v59  ;;  %v2001_v19 = vpack.c.bf16 %v1778_v62, %v1775_v42  ;;  %v7574_v42 = vld [vmem:[%s10477_s2 + $0x68] sm:$0xff]  }
 0x3b7   : >> { %v7692_v46 = vpop.eup %7691 }
 0x3b8   : >> { %v7694_v14 = vpop.eup %7693  ;;  %v1315_v55 = vpop.xlane.xlu1 %1314  ;;  %6770 = vmatmul.mubr.bf16.vlgmr.msra.gmra.mrb[32].mxu0 %v1357_v5  ;;  %v1345_v17 = vmul.f32 %v7692_v46, %v8704_v51  ;;  %7441 = vmatprep.subr.msk.bf16.mxu1 %vm1066_vm0, %v2001_v19  ;;  %v2038_v34 = vsel %vm1066_vm0, %v2001_v19, 0 }
 0x3b9   : >> { %v1317_v10 = vpop.xlane.xlu0 %1316  ;;  %7703 = vrcp.f32 %v1315_v55  ;;  %6786 = vmatpush3.bf16.msra.mxu0 %v8747_v12  ;;  %v1346_v49 = vmul.f32 %v7694_v14, %v8706_v32  ;;  %v6844_v51 = vpop.f32.mrb[42].mxu1  ;;  %v7572_v32 = vld [vmem:[%s10477_s2 + $0x58] sm:$0xff]   ;;  %6886 = vmatpush3.bf16.xpose.msra.mxu1 %v2038_v34 }
 0x3ba   : >> { %v1358_v50 = vpack.c.bf16 %v1345_v17, %v1344_v15  ;;  %6787 = vmatprep.subr.bf16.mxu0 %v7570_v7  ;;  %7705 = vrcp.f32 %v1317_v10  ;;  %v1802_v33 = vadd.f32 %v6844_v51, %v8753_v16  ;;  %v1793_v38 = vpop.f32.mrb[43].mxu1  ;;  %7442 = vmatprep.subr.msk.bf16.mxu1 %vm1066_vm0, %v8772_v13 }
 0x3bb   : >> { %v7696_v26 = vpop.eup %7695 }
 0x3bc   : >> { %v1319_v27 = vpop.xlane.xlu1 %1318  ;;  %6773 = vmatprep.mubr.bf16.mxu0 %v1358_v50  ;;  %v1347_v12 = vmul.f32 %v7696_v26, %v8712_v48  ;;  %v7698_v37 = vpop.eup %7697  ;;  %v8791_v54 = vpack.c.bf16 %v1802_v33, %v1799_v24  ;;  %v1794_v48 = vadd.f32 %v8753_v16, %v1793_v38  ;;  %v7577_v26 = vld [vmem:[%s10477_s2 + $0x80] sm:$0xff]  }
 0x3bd   : >> { %v1321_v28 = vpop.xlane.xlu0 %1320  ;;  %7707 = vrcp.f32 %v1319_v27  ;;  %6788 = vmatpush3.bf16.msra.mxu0 %v7570_v7  ;;  %v1348_v52 = vmul.f32 %v7698_v37, %v8715_v58  ;;  %v7575_v7 = vld [vmem:[%s10477_s2 + $0x70] sm:$0xff]  }
 0x3be   : >> { %v1359_v44 = vpack.c.bf16 %v1347_v12, %v1346_v49  ;;  %6789 = vmatprep.subr.bf16.mxu0 %v7571_v21  ;;  %7709 = vrcp.f32 %v1321_v28  ;;  %v2003_v57 = vpack.c.bf16 %v1794_v48, %v1791_v31 }
 0x3bf   : >> { %v7700_v45 = vpop.eup %7699 }
 0x3c0   : >> { %v1323_v47 = vpop.xlane.xlu1 %1322  ;;  %6774 = vmatmul.mubr.bf16.gmra.mrb[36].mxu0 %v1359_v44  ;;  %v1349_v53 = vmul.f32 %v7700_v45, %v8723_v2  ;;  %v7702_v61 = vpop.eup %7701  ;;  %v2044_v14 = vsel %vm1066_vm0, %v2003_v57, 0 }
 0x3c1   : >> { %7711 = vrcp.f32 %v1323_v47  ;;  %6790 = vmatpush3.bf16.msra.mxu0 %v7571_v21  ;;  %v1350_v9 = vmul.f32 %v7702_v61, %v8725_v60  ;;  %v2041_v60 = vsel %vm1066_vm0, %v8772_v13, 0  ;;  %v7576_v13 = vld [vmem:[%s10477_s2 + $0x78] sm:$0xff]  }
 0x3c2   : >> { %v1360_v40 = vpack.c.bf16 %v1349_v53, %v1348_v52  ;;  %6791 = vmatprep.subr.bf16.mxu0 %v7572_v32  ;;  %6888 = vmatpush3.bf16.xpose.msra.mxu1 %v2041_v60 }
 0x3c3   : >> { %v7704_v56 = vpop.eup %7703  ;;  %7443 = vmatprep.subr.msk.bf16.mxu1 %vm1066_vm0, %v2003_v57 }
 0x3c4   : >> { %6777 = vmatprep.mubr.bf16.mxu0 %v1360_v40  ;;  %v1351_v58 = vmul.f32 %v7704_v56, %v8729_v43  ;;  %v7706_v2 = vpop.eup %7705 }
 0x3c5   : >> { %6792 = vmatpush3.bf16.msra.mxu0 %v7572_v32  ;;  %v1352_v1 = vmul.f32 %v7706_v2, %v8731_v8 }
 0x3c6   : >> { %v1361_v59 = vpack.c.bf16 %v1351_v58, %v1350_v9  ;;  %6793 = vmatprep.subr.bf16.mxu0 %v7573_v41  ;;  %v5934_v58 = vld [vmem:[%s10478_s3 + $0x1] ss:$0 sm:$0xff] }
 0x3c7   : >> { %v7708_v63 = vpop.eup %7707 }
 0x3c8   : >> { %6778 = vmatmul.mubr.bf16.gmra.mrb[40].mxu0 %v1361_v59  ;;  %v1353_v3 = vmul.f32 %v7708_v63, %v8735_v4  ;;  %v7710_v43 = vpop.eup %7709 }
 0x3c9   : >> { %6794 = vmatpush3.bf16.msra.mxu0 %v7573_v41  ;;  %v1354_v46 = vmul.f32 %v7710_v43, %v8737_v0  ;;  %v6847_v0 = vpop.f32.mrb[44].mxu1 }
 0x3ca   : >> { %v1362_v5 = vpack.c.bf16 %v1353_v3, %v1352_v1  ;;  %6795 = vmatprep.subr.bf16.mxu0 %v7574_v42  ;;  %6890 = vmatpush3.bf16.xpose.msra.mxu1 %v2044_v14  ;;  %v1806_v55 = vpop.f32.mrb[45].mxu1  ;;  %v1815_v10 = vadd.f32 %v6847_v0, %v8753_v16  ;;  %v7579_v0 = vld [vmem:[%s10477_s2 + $0x90] sm:$0xff]  }
 0x3cb   : >> { %v7712_v62 = vpop.eup %7711  ;;  %7444 = vmatprep.subr.msk.bf16.mxu1 %vm1066_vm0, %v8791_v54  ;;  %v1807_v15 = vadd.f32 %v8753_v16, %v1806_v55  ;;  %v6848_v17 = vpop.f32.mrb[46].mxu1 }
 0x3cc   : >> { %6781 = vmatprep.mubr.bf16.mxu0 %v1362_v5  ;;  %v1355_v8 = vmul.f32 %v7712_v62, %v8741_v11  ;;  %v2047_v11 = vsel %vm1066_vm0, %v8791_v54, 0  ;;  %v1818_v18 = vadd.f32 %v6848_v17, %v8753_v16  ;;  %v1809_v19 = vpop.f32.mrb[47].mxu1  ;;  %v7580_v17 = vld [vmem:[%s10477_s2 + $0x98] sm:$0xff]  }
 0x3cd   : >> { %6796 = vmatpush3.bf16.msra.mxu0 %v7574_v42  ;;  %v1810_v20 = vadd.f32 %v8753_v16, %v1809_v19 }
 0x3ce   : >> { %v1363_v4 = vpack.c.bf16 %v1355_v8, %v1354_v46  ;;  %6797 = vmatprep.subr.bf16.mxu0 %v7575_v7  ;;  %v2006_v50 = vpack.c.bf16 %v1818_v18, %v1815_v10 }
 0x3cf   : >> { %v2005_v21 = vpack.c.bf16 %v1810_v20, %v1807_v15 }
 0x3d0   : >> { %6782 = vmatmul.mubr.bf16.gmra.mrb[44].mxu0 %v1363_v4  ;;  %v2053_v25 = vsel %vm1066_vm0, %v2006_v50, 0 }
 0x3d1   : >> { %6798 = vmatpush3.bf16.msra.mxu0 %v7575_v7  ;;  %6801 = vmatprep.mubr.bf16.mxu0 %v8385_v6  ;;  %v2050_v24 = vsel %vm1066_vm0, %v2005_v21, 0  ;;  %v7578_v7 = vld [vmem:[%s10477_s2 + $0x88] sm:$0xff]  }
 0x3d2   : >> { %6799 = vmatprep.subr.bf16.mxu0 %v7576_v13  ;;  %6892 = vmatpush3.bf16.xpose.msra.mxu1 %v2047_v11 }
 0x3d3   : >> { %7445 = vmatprep.subr.msk.bf16.mxu1 %vm1066_vm0, %v2005_v21 }
 0x3d5   : >> { %6800 = vmatpush3.bf16.msra.mxu0 %v7576_v13 }
 0x3d8   : >> { %6802 = vmatmul.mubr.bf16.vlgmr.msra.gmra.mrb[48].mxu0 %v8426_v22 }
 0x3d9   : >> { %6805 = vmatprep.mubr.bf16.mxu0 %v8428_v23 }
 0x3da   : >> { %6894 = vmatpush3.bf16.xpose.msra.mxu1 %v2050_v24 }
 0x3db   : >> { %7446 = vmatprep.subr.msk.bf16.mxu1 %vm1066_vm0, %v2006_v50 }
 0x3e0   : >> { %6806 = vmatmul.mubr.bf16.gmra.mrb[52].mxu0 %v8439_v29 }
 0x3e1   : >> { %6809 = vmatprep.mubr.bf16.mxu0 %v8441_v30 }
 0x3e2   : >> { %6896 = vmatpush3.bf16.xpose.msra.mxu1 %v2053_v25  ;;  %v7581_v25 = vld [vmem:[%s10477_s2 + $0xa0] sm:$0xff]  }
 0x3e3   : >> { %6985 = vmatprep.subr.bf16.mxu1 %v7577_v26 }
 0x3e8   : >> { %6810 = vmatmul.mubr.bf16.gmra.mrb[56].mxu0 %v8450_v35 }
 0x3e9   : >> { %6813 = vmatprep.mubr.bf16.mxu0 %v8453_v36 }
 0x3f0   : >> { %6814 = vmatmul.mubr.bf16.gmra.mrb[60].mxu0 %v8460_v39 }
 0x3f1   : >> { %6865 = vmatprep.mubr.bf16.mxu0 %v8385_v6 }
 0x48b   : >> { %v8845_v49 = vpop.f32.mrb[32].mxu0 }
 0x48c   : >> { %v8847_v16 = vpop.f32.mrb[33].mxu0 }
 0x48d   : >> { %v8849_v51 = vpop.f32.mrb[34].mxu0 }
 0x48e   : >> { %v8853_v28 = vpop.f32.mrb[35].mxu0 }
 0x493   : >> { %v8857_v31 = vpop.f32.mrb[36].mxu0 }
 0x494   : >> { %v8859_v33 = vpop.f32.mrb[37].mxu0 }
 0x495   : >> { %v8861_v37 = vpop.f32.mrb[38].mxu0 }
 0x496   : >> { %v8865_v44 = vpop.f32.mrb[39].mxu0 }
 0x49b   : >> { %v8869_v54 = vpop.f32.mrb[40].mxu0 }
 0x49c   : >> { %10544 = vst [vmem:[#allocation21_spill] sm:$0xff] %v8869_v54  ;;  %v8871_v48 = vpop.f32.mrb[41].mxu0 }
 0x49d   : >> { %v8873_v45 = vpop.f32.mrb[42].mxu0 }
 0x49e   : >> { %10545 = vst [vmem:[#allocation22_spill] sm:$0xff] %v8873_v45  ;;  %v8877_v52 = vpop.f32.mrb[43].mxu0 }
 0x4a3   : >> { %v8881_v34 = vpop.f32.mrb[44].mxu0 }
 0x4a4   : >> { %10546 = vst [vmem:[#allocation23_spill] sm:$0xff] %v8881_v34  ;;  %v8883_v57 = vpop.f32.mrb[45].mxu0 }
 0x4a5   : >> { %10547 = vst [vmem:[#allocation24_spill] sm:$0xff] %v8883_v57  ;;  %v8885_v61 = vpop.f32.mrb[46].mxu0 }
 0x4a6   : >> { %10548 = vst [vmem:[#allocation25_spill] sm:$0xff] %v8885_v61  ;;  %v8889_v41 = vpop.f32.mrb[47].mxu0 }
 0x4a7   : >> { %10549 = vst [vmem:[#allocation26_spill] sm:$0xff] %v8889_v41 }
 0x4ab   : >> { %v6803_v9 = vpop.f32.mrb[48].mxu0 }
 0x4ac   : >> { %v1588_v2 = vpop.f32.mrb[49].mxu0  ;;  %v1597_v42 = vadd.f32 %v6803_v9, %v5934_v58 }
 0x4ad   : >> { %v6804_v59 = vpop.f32.mrb[50].mxu0  ;;  %v1589_v3 = vadd.f32 %v5934_v58, %v1588_v2 }
 0x4ae   : >> { %v1600_v63 = vadd.f32 %v6804_v59, %v5934_v58  ;;  %v1591_v1 = vpop.f32.mrb[51].mxu0 }
 0x4af   : >> { %v1592_v60 = vadd.f32 %v5934_v58, %v1591_v1 }
 0x4b0   : >> { %v1992_v43 = vpack.c.bf16 %v1600_v63, %v1597_v42  ;;  %v7582_v42 = vld [vmem:[%s10477_s2 + $0xa8] sm:$0xff]  }
 0x4b1   : >> { %v1991_v5 = vpack.c.bf16 %v1592_v60, %v1589_v3 }
 0x4b3   : >> { %v6807_v62 = vpop.f32.mrb[52].mxu0  ;;  %6897 = vmatprep.mubr.msk.bf16.mxu1 %vm1066_vm0, %v1991_v5 }
 0x4b4   : >> { %v1604_v46 = vpop.f32.mrb[53].mxu0  ;;  %6898 = vmatmul.mubr.msk.bf16.vlgmr.msra.gmra.mrb[48].mxu1 %vm1066_vm0, %v1992_v43  ;;  %v1613_v4 = vadd.f32 %v6807_v62, %v5934_v58 }
 0x4b5   : >> { %v6808_v8 = vpop.f32.mrb[54].mxu0  ;;  %6986 = vmatpush3.bf16.msra.mxu1 %v7577_v26  ;;  %v1605_v11 = vadd.f32 %v5934_v58, %v1604_v46 }
 0x4b6   : >> { %v1616_v13 = vadd.f32 %v6808_v8, %v5934_v58  ;;  %v1607_v14 = vpop.f32.mrb[55].mxu0  ;;  %6987 = vmatprep.subr.bf16.mxu1 %v7578_v7 }
 0x4b7   : >> { %v1608_v55 = vadd.f32 %v5934_v58, %v1607_v14  ;;  %v7586_v14 = vld [vmem:[%s10477_s2 + $0x188] sm:$0xff]  }
 0x4b8   : >> { %v1994_v10 = vpack.c.bf16 %v1616_v13, %v1613_v4  ;;  %v7584_v13 = vld [vmem:[%s10477_s2 + $0xb8] sm:$0xff]  }
 0x4b9   : >> { %v1993_v15 = vpack.c.bf16 %v1608_v55, %v1605_v11  ;;  %6988 = vmatpush3.bf16.msra.mxu1 %v7578_v7  ;;  %v7583_v7 = vld [vmem:[%s10477_s2 + $0xb0] sm:$0xff]   ;;  %v7588_v11 = vld [vmem:[%s10477_s2 + $0x198] sm:$0xff]   ;;  %v7589_v55 = vld [vmem:[%s10477_s2 + $0x1a0] sm:$0xff]  }
 0x4ba   : >> { %6989 = vmatprep.subr.bf16.mxu1 %v7579_v0 }
 0x4bb   : >> { %v6811_v18 = vpop.f32.mrb[56].mxu0  ;;  %6901 = vmatprep.mubr.msk.bf16.mxu1 %vm1066_vm0, %v1993_v15  ;;  %v7591_v15 = vld [vmem:[%s10477_s2 + $0x1b0] sm:$0xff]  }
 0x4bc   : >> { %v1620_v19 = vpop.f32.mrb[57].mxu0  ;;  %6902 = vmatmul.mubr.msk.bf16.gmra.mrb[52].mxu1 %vm1066_vm0, %v1994_v10  ;;  %v1629_v50 = vadd.f32 %v6811_v18, %v5934_v58  ;;  %v7590_v10 = vld [vmem:[%s10477_s2 + $0x1a8] sm:$0xff]   ;;  %v7593_v18 = vld [vmem:[%s10477_s2 + $0x240] sm:$0xff]  }
 0x4bd   : >> { %v6812_v20 = vpop.f32.mrb[58].mxu0  ;;  %6990 = vmatpush3.bf16.msra.mxu1 %v7579_v0  ;;  %v1621_v26 = vadd.f32 %v5934_v58, %v1620_v19  ;;  %v7587_v0 = vld [vmem:[%s10477_s2 + $0x190] sm:$0xff]   ;;  %6849 = vmatprep.subr.bf16.mxu0 %v7593_v18  ;;  %v7594_v19 = vld [vmem:[%s10477_s2 + $0x248] sm:$0xff]  }
 0x4be   : >> { %v1632_v21 = vadd.f32 %v6812_v20, %v5934_v58  ;;  %v1623_v24 = vpop.f32.mrb[59].mxu0  ;;  %6991 = vmatprep.subr.bf16.mxu1 %v7580_v17  ;;  %6850 = vmatpush3.bf16.msra.mxu0 %v7593_v18  ;;  %v7595_v20 = vld [vmem:[%s10477_s2 + $0x250] sm:$0xff]  }
 0x4bf   : >> { %v1624_v9 = vadd.f32 %v5934_v58, %v1623_v24  ;;  %6851 = vmatprep.subr.bf16.mxu0 %v7594_v19  ;;  %v7598_v24 = vld [vmem:[%s10477_s2 + $0x268] sm:$0xff]  }
 0x4c0   : >> { %v1996_v2 = vpack.c.bf16 %v1632_v21, %v1629_v50  ;;  %v7596_v50 = vld [vmem:[%s10477_s2 + $0x258] sm:$0xff]   ;;  %v7597_v21 = vld [vmem:[%s10477_s2 + $0x260] sm:$0xff]  }
 0x4c1   : >> { %v1995_v59 = vpack.c.bf16 %v1624_v9, %v1621_v26  ;;  %6992 = vmatpush3.bf16.msra.mxu1 %v7580_v17  ;;  %v7592_v17 = vld [vmem:[%s10477_s2 + $0x1b8] sm:$0xff]  }
 0x4c2   : >> { %6993 = vmatprep.subr.bf16.mxu1 %v7581_v25  ;;  %6852 = vmatpush3.bf16.msra.mxu0 %v7594_v19  ;;  %v7600_v26 = vld [vmem:[%s10477_s2 + $0x278] sm:$0xff]  }
 0x4c3   : >> { %v6815_v63 = vpop.f32.mrb[60].mxu0  ;;  %6905 = vmatprep.mubr.msk.bf16.mxu1 %vm1066_vm0, %v1995_v59  ;;  %6853 = vmatprep.subr.bf16.mxu0 %v7595_v20  ;;  %v8997_v59 = vld [vmem:[%s8577_s16] ss:$0 sm:$0xff] }
 0x4c4   : >> { %v1636_v1 = vpop.f32.mrb[61].mxu0  ;;  %6906 = vmatmul.mubr.msk.bf16.gmra.mrb[56].mxu1 %vm1066_vm0, %v1996_v2  ;;  %v1645_v60 = vadd.f32 %v6815_v63, %v5934_v58 }
 0x4c5   : >> { %v6816_v3 = vpop.f32.mrb[62].mxu0  ;;  %6994 = vmatpush3.bf16.msra.mxu1 %v7581_v25  ;;  %v1637_v62 = vadd.f32 %v5934_v58, %v1636_v1  ;;  %v7599_v25 = vld [vmem:[%s10477_s2 + $0x270] sm:$0xff]  }
 0x4c6   : >> { %v1648_v43 = vadd.f32 %v6816_v3, %v5934_v58  ;;  %v1639_v5 = vpop.f32.mrb[63].mxu0  ;;  %6995 = vmatprep.subr.bf16.mxu1 %v7582_v42  ;;  %6854 = vmatpush3.bf16.msra.mxu0 %v7595_v20 }
 0x4c7   : >> { %v1640_v46 = vadd.f32 %v5934_v58, %v1639_v5  ;;  %v7585_v58 = vld [vmem:[%s10477_s2 + $0x180] sm:$0xff]   ;;  %6855 = vmatprep.subr.bf16.mxu0 %v7596_v50 }
 0x4c8   : >> { %v1998_v8 = vpack.c.bf16 %v1648_v43, %v1645_v60 }
 0x4c9   : >> { %v1997_v4 = vpack.c.bf16 %v1640_v46, %v1637_v62  ;;  %6996 = vmatpush3.bf16.msra.mxu1 %v7582_v42 }
 0x4ca   : >> { %6997 = vmatprep.subr.bf16.mxu1 %v7583_v7  ;;  %6856 = vmatpush3.bf16.msra.mxu0 %v7596_v50 }
 0x4cb   : >> { %6909 = vmatprep.mubr.msk.bf16.mxu1 %vm1066_vm0, %v1997_v4  ;;  %6857 = vmatprep.subr.bf16.mxu0 %v7597_v21 }
 0x4cc   : >> { %6910 = vmatmul.mubr.msk.bf16.gmra.mrb[60].mxu1 %vm1066_vm0, %v1998_v8 }
 0x4cd   : >> { %6998 = vmatpush3.bf16.msra.mxu1 %v7583_v7  ;;  %7001 = vmatprep.mubr.bf16.mxu1 %v8385_v6 }
 0x4ce   : >> { %6999 = vmatprep.subr.bf16.mxu1 %v7584_v13  ;;  %6858 = vmatpush3.bf16.msra.mxu0 %v7597_v21 }
 0x4cf   : >> { %6859 = vmatprep.subr.bf16.mxu0 %v7598_v24 }
 0x4d1   : >> { %7000 = vmatpush3.bf16.msra.mxu1 %v7584_v13 }
 0x4d2   : >> { %7017 = vmatprep.subr.bf16.mxu1 %v7585_v58  ;;  %6860 = vmatpush3.bf16.msra.mxu0 %v7598_v24 }
 0x4d3   : >> { %6861 = vmatprep.subr.bf16.mxu0 %v7599_v25 }
 0x4d4   : >> { %7002 = vmatmul.mubr.bf16.vlgmr.msra.gmra.mrb[64].mxu1 %v8426_v22 }
 0x4d5   : >> { %7018 = vmatpush3.bf16.msra.mxu1 %v7585_v58  ;;  %7005 = vmatprep.mubr.bf16.mxu1 %v8428_v23 }
 0x4d6   : >> { %7019 = vmatprep.subr.bf16.mxu1 %v7586_v14  ;;  %6862 = vmatpush3.bf16.msra.mxu0 %v7599_v25 }
 0x4d7   : >> { %6863 = vmatprep.subr.bf16.mxu0 %v7600_v26 }
 0x4d9   : >> { %7020 = vmatpush3.bf16.msra.mxu1 %v7586_v14 }
 0x4da   : >> { %7021 = vmatprep.subr.bf16.mxu1 %v7587_v0  ;;  %6864 = vmatpush3.bf16.msra.mxu0 %v7600_v26 }
 0x4dc   : >> { %7006 = vmatmul.mubr.bf16.gmra.mrb[68].mxu1 %v8439_v29 }
 0x4dd   : >> { %7022 = vmatpush3.bf16.msra.mxu1 %v7587_v0  ;;  %7009 = vmatprep.mubr.bf16.mxu1 %v8441_v30 }
 0x4de   : >> { %7023 = vmatprep.subr.bf16.mxu1 %v7588_v11  ;;  %6866 = vmatmul.mubr.bf16.vlgmr.msra.gmra.mrb[64].mxu0 %v8426_v22 }
 0x4df   : >> { %6869 = vmatprep.mubr.bf16.mxu0 %v8428_v23 }
 0x4e1   : >> { %7024 = vmatpush3.bf16.msra.mxu1 %v7588_v11 }
 0x4e2   : >> { %7025 = vmatprep.subr.bf16.mxu1 %v7589_v55 }
 0x4e4   : >> { %7010 = vmatmul.mubr.bf16.gmra.mrb[72].mxu1 %v8450_v35 }
 0x4e5   : >> { %7026 = vmatpush3.bf16.msra.mxu1 %v7589_v55  ;;  %7013 = vmatprep.mubr.bf16.mxu1 %v8453_v36 }
 0x4e6   : >> { %7027 = vmatprep.subr.bf16.mxu1 %v7590_v10  ;;  %6870 = vmatmul.mubr.bf16.gmra.mrb[68].mxu0 %v8439_v29 }
 0x4e7   : >> { %6873 = vmatprep.mubr.bf16.mxu0 %v8441_v30 }
 0x4e9   : >> { %7028 = vmatpush3.bf16.msra.mxu1 %v7590_v10 }
 0x4ea   : >> { %7029 = vmatprep.subr.bf16.mxu1 %v7591_v15 }
 0x4ec   : >> { %7014 = vmatmul.mubr.bf16.gmra.mrb[76].mxu1 %v8460_v39 }
 0x4ed   : >> { %7030 = vmatpush3.bf16.msra.mxu1 %v7591_v15  ;;  %7033 = vmatprep.mubr.bf16.mxu1 %v8385_v6 }
 0x4ee   : >> { %7031 = vmatprep.subr.bf16.mxu1 %v7592_v17  ;;  %6874 = vmatmul.mubr.bf16.gmra.mrb[72].mxu0 %v8450_v35 }
 0x4ef   : >> { %6877 = vmatprep.mubr.bf16.mxu0 %v8453_v36 }
 0x4f1   : >> { %7032 = vmatpush3.bf16.msra.mxu1 %v7592_v17 }
 0x4f4   : >> { %7034 = vmatmul.mubr.bf16.vlgmr.msra.gmra.mrb[80].mxu1 %v8426_v22 }
 0x4f5   : >> { %7037 = vmatprep.mubr.bf16.mxu1 %v8428_v23 }
 0x4f6   : >> { %6878 = vmatmul.mubr.bf16.gmra.mrb[76].mxu0 %v8460_v39 }
 0x4fc   : >> { %7038 = vmatmul.mubr.bf16.gmra.mrb[84].mxu1 %v8439_v29 }
 0x4fd   : >> { %7041 = vmatprep.mubr.bf16.mxu1 %v8441_v30 }
 0x504   : >> { %7042 = vmatmul.mubr.bf16.gmra.mrb[88].mxu1 %v8450_v35 }
 0x505   : >> { %7045 = vmatprep.mubr.bf16.mxu1 %v8453_v36 }
 0x50c   : >> { %7046 = vmatmul.mubr.bf16.gmra.mrb[92].mxu1 %v8460_v39 }
 0x587   : >> { %v6899_v9 = vpop.f32.mrb[48].mxu1 }
 0x588   : >> { %v2089_v2 = vpop.f32.mrb[49].mxu1  ;;  %v9007_v60 = vadd.f32 %v8997_v59, %v6899_v9  ;;  %v6040_v9 = vld [vmem:[%s10478_s3 + $0x2] ss:$0 sm:$0xff] }
 0x589   : >> { %v9000_v42 = vadd.f32 %v8997_v59, %v2089_v2  ;;  %v6900_v63 = vpop.f32.mrb[50].mxu1 }
 0x58a   : >> { %v2092_v1 = vpop.f32.mrb[51].mxu1  ;;  %v9011_v43 = vadd.f32 %v8997_v59, %v6900_v63 }
 0x58b   : >> { %v9003_v3 = vadd.f32 %v8997_v59, %v2092_v1  ;;  %2152 = vmax.xlane.f32.xlu0 %v9000_v42 }
 0x58d   : >> { %2154 = vmax.xlane.f32.xlu1 %v9003_v3 }
 0x58f   : >> { %v6903_v5 = vpop.f32.mrb[52].mxu1  ;;  %2156 = vmax.xlane.f32.xlu0 %v9007_v60 }
 0x590   : >> { %v2105_v7 = vpop.f32.mrb[53].mxu1  ;;  %v9023_v13 = vadd.f32 %v8997_v59, %v6903_v5 }
 0x591   : >> { %v9015_v62 = vadd.f32 %v8997_v59, %v2105_v7  ;;  %v6904_v46 = vpop.f32.mrb[54].mxu1  ;;  %2158 = vmax.xlane.f32.xlu1 %v9011_v43 }
 0x592   : >> { %v2108_v8 = vpop.f32.mrb[55].mxu1  ;;  %v9027_v58 = vadd.f32 %v8997_v59, %v6904_v46 }
 0x593   : >> { %v9019_v4 = vadd.f32 %v8997_v59, %v2108_v8  ;;  %2160 = vmax.xlane.f32.xlu0 %v9015_v62 }
 0x595   : >> { %2162 = vmax.xlane.f32.xlu1 %v9019_v4 }
 0x597   : >> { %v6907_v14 = vpop.f32.mrb[56].mxu1  ;;  %2164 = vmax.xlane.f32.xlu0 %v9023_v13 }
 0x598   : >> { %v2121_v0 = vpop.f32.mrb[57].mxu1  ;;  %v9039_v17 = vadd.f32 %v8997_v59, %v6907_v14 }
 0x599   : >> { %v9031_v11 = vadd.f32 %v8997_v59, %v2121_v0  ;;  %v6908_v55 = vpop.f32.mrb[58].mxu1  ;;  %2166 = vmax.xlane.f32.xlu1 %v9027_v58 }
 0x59a   : >> { %v2124_v10 = vpop.f32.mrb[59].mxu1  ;;  %v9043_v18 = vadd.f32 %v8997_v59, %v6908_v55 }
 0x59b   : >> { %v9035_v15 = vadd.f32 %v8997_v59, %v2124_v10  ;;  %2168 = vmax.xlane.f32.xlu0 %v9031_v11 }
 0x59d   : >> { %2170 = vmax.xlane.f32.xlu1 %v9035_v15 }
 0x59f   : >> { %v6911_v19 = vpop.f32.mrb[60].mxu1  ;;  %2172 = vmax.xlane.f32.xlu0 %v9039_v17 }
 0x5a0   : >> { %v2137_v20 = vpop.f32.mrb[61].mxu1  ;;  %v9055_v26 = vadd.f32 %v8997_v59, %v6911_v19 }
 0x5a1   : >> { %v9047_v50 = vadd.f32 %v8997_v59, %v2137_v20  ;;  %v6912_v21 = vpop.f32.mrb[62].mxu1  ;;  %2174 = vmax.xlane.f32.xlu1 %v9043_v18 }
 0x5a2   : >> { %v2140_v24 = vpop.f32.mrb[63].mxu1  ;;  %v9062_v2 = vadd.f32 %v8997_v59, %v6912_v21 }
 0x5a3   : >> { %v9051_v25 = vadd.f32 %v8997_v59, %v2140_v24  ;;  %2176 = vmax.xlane.f32.xlu0 %v9047_v50 }
 0x5a5   : >> { %2178 = vmax.xlane.f32.xlu1 %v9051_v25 }
 0x5a7   : >> { %2180 = vmax.xlane.f32.xlu0 %v9055_v26  ;;  %v7003_v63 = vpop.f32.mrb[64].mxu1 }
 0x5a8   : >> { %v9065_v1 = vadd.f32 %v7003_v63, %v6040_v9  ;;  %v2795_v5 = vpop.f32.mrb[65].mxu1 }
 0x5a9   : >> { %2182 = vmax.xlane.f32.xlu1 %v9062_v2  ;;  %v2796_v7 = vadd.f32 %v6040_v9, %v2795_v5  ;;  %v7004_v46 = vpop.f32.mrb[66].mxu1 }
 0x5aa   : >> { %v9068_v8 = vadd.f32 %v7004_v46, %v6040_v9  ;;  %v2798_v14 = vpop.f32.mrb[67].mxu1 }
 0x5ab   : >> { %v2799_v0 = vadd.f32 %v6040_v9, %v2798_v14 }
 0x5ad   : >> { %v3198_v10 = vpack.c.bf16 %v2799_v0, %v2796_v7 }
 0x5af   : >> { %v7007_v19 = vpop.f32.mrb[68].mxu1  ;;  %7097 = vmatprep.mubr.msk.bf16.mxu1 %vm1066_vm0, %v3198_v10 }
 0x5b0   : >> { %v9073_v20 = vadd.f32 %v7007_v19, %v6040_v9  ;;  %v2811_v21 = vpop.f32.mrb[69].mxu1 }
 0x5b1   : >> { %v9075_v24 = vadd.f32 %v6040_v9, %v2811_v21  ;;  %v7008_v63 = vpop.f32.mrb[70].mxu1 }
 0x5b2   : >> { %v9077_v40 = vadd.f32 %v7008_v63, %v6040_v9  ;;  %v2814_v5 = vpop.f32.mrb[71].mxu1 }
 0x5b3   : >> { %v9079_v46 = vadd.f32 %v6040_v9, %v2814_v5 }
 0x5b7   : >> { %v7011_v0 = vpop.f32.mrb[72].mxu1 }
 0x5b8   : >> { %v9085_v56 = vadd.f32 %v7011_v0, %v6040_v9  ;;  %v2827_v10 = vpop.f32.mrb[73].mxu1 }
 0x5b9   : >> { %v9087_v19 = vadd.f32 %v6040_v9, %v2827_v10  ;;  %v7012_v21 = vpop.f32.mrb[74].mxu1 }
 0x5ba   : >> { %v9089_v47 = vadd.f32 %v7012_v21, %v6040_v9  ;;  %v2830_v63 = vpop.f32.mrb[75].mxu1 }
 0x5bb   : >> { %v9091_v53 = vadd.f32 %v6040_v9, %v2830_v63 }
 0x5bf   : >> { %v7015_v32 = vpop.f32.mrb[76].mxu1 }
 0x5c0   : >> { %v9097_v27 = vadd.f32 %v7015_v32, %v6040_v9  ;;  %v2843_v0 = vpop.f32.mrb[77].mxu1  ;;  %v6066_v32 = vld [vmem:[%s10478_s3 + $0x6] ss:$0 sm:$0xff] }
 0x5c1   : >> { %v9099_v12 = vadd.f32 %v6040_v9, %v2843_v0  ;;  %v7016_v10 = vpop.f32.mrb[78].mxu1 }
 0x5c2   : >> { %v9101_v14 = vadd.f32 %v7016_v10, %v6040_v9  ;;  %v2846_v21 = vpop.f32.mrb[79].mxu1 }
 0x5c3   : >> { %v9103_v7 = vadd.f32 %v6040_v9, %v2846_v21 }
 0x5c7   : >> { %v7035_v38 = vpop.f32.mrb[80].mxu1 }
 0x5c8   : >> { %v2974_v55 = vadd.f32 %v7035_v38, %v6066_v32  ;;  %v2965_v0 = vpop.f32.mrb[81].mxu1 }
 0x5c9   : >> { %v2966_v39 = vadd.f32 %v6066_v32, %v2965_v0  ;;  %v7036_v36 = vpop.f32.mrb[82].mxu1 }
 0x5ca   : >> { %v2977_v10 = vadd.f32 %v7036_v36, %v6066_v32  ;;  %v2968_v35 = vpop.f32.mrb[83].mxu1 }
 0x5cb   : >> { %v2969_v30 = vadd.f32 %v6066_v32, %v2968_v35 }
 0x5cc   : >> { %v3207_v9 = vpack.c.bf16 %v2977_v10, %v2974_v55 }
 0x5cd   : >> { %v3206_v21 = vpack.c.bf16 %v2969_v30, %v2966_v39 }
 0x5ce   : >> { %v3242_v35 = vsel %vm1066_vm0, %v3207_v9, 0 }
 0x5cf   : >> { %7447 = vmatprep.subr.msk.bf16.mxu1 %vm1066_vm0, %v3206_v21  ;;  %v3239_v63 = vsel %vm1066_vm0, %v3206_v21, 0  ;;  %v7039_v29 = vpop.f32.mrb[84].mxu1 }
 0x5d0   : >> { %7082 = vmatpush3.bf16.xpose.msra.mxu1 %v3239_v63  ;;  %v2990_v5 = vadd.f32 %v7039_v29, %v6066_v32  ;;  %v2981_v23 = vpop.f32.mrb[85].mxu1 }
 0x5d1   : >> { %7448 = vmatprep.subr.msk.bf16.mxu1 %vm1066_vm0, %v3207_v9  ;;  %v2982_v22 = vadd.f32 %v6066_v32, %v2981_v23  ;;  %v7040_v38 = vpop.f32.mrb[86].mxu1 }
 0x5d2   : >> { %v2993_v34 = vadd.f32 %v7040_v38, %v6066_v32  ;;  %v2984_v0 = vpop.f32.mrb[87].mxu1 }
 0x5d3   : >> { %v2985_v61 = vadd.f32 %v6066_v32, %v2984_v0 }
 0x5d4   : >> { %v3209_v36 = vpack.c.bf16 %v2993_v34, %v2990_v5 }
 0x5d5   : >> { %v3208_v55 = vpack.c.bf16 %v2985_v61, %v2982_v22 }
 0x5d7   : >> { %v7043_v30 = vpop.f32.mrb[88].mxu1  ;;  %v3245_v38 = vsel %vm1066_vm0, %v3208_v55, 0 }
 0x5d8   : >> { %7084 = vmatpush3.bf16.xpose.msra.mxu1 %v3242_v35  ;;  %v3006_v39 = vadd.f32 %v7043_v30, %v6066_v32  ;;  %v2997_v10 = vpop.f32.mrb[89].mxu1 }
 0x5d9   : >> { %7449 = vmatprep.subr.msk.bf16.mxu1 %vm1066_vm0, %v3208_v55  ;;  %v2998_v63 = vadd.f32 %v6066_v32, %v2997_v10  ;;  %v7044_v29 = vpop.f32.mrb[90].mxu1 }
 0x5da   : >> { %v3009_v21 = vadd.f32 %v7044_v29, %v6066_v32  ;;  %v3000_v57 = vpop.f32.mrb[91].mxu1  ;;  %v3248_v29 = vsel %vm1066_vm0, %v3209_v36, 0 }
 0x5db   : >> { %v3001_v41 = vadd.f32 %v6066_v32, %v3000_v57 }
 0x5dc   : >> { %v3211_v23 = vpack.c.bf16 %v3009_v21, %v3006_v39  ;;  %v10552_v39 = vpack.c.bf16 %v9077_v40, %v9073_v20  ;;  %v6867_v20 = vpop.f32.mrb[64].mxu0 }
 0x5dd   : >> { %v3210_v54 = vpack.c.bf16 %v3001_v41, %v2998_v63  ;;  %v10553_v63 = vpack.c.bf16 %v9091_v53, %v9087_v19  ;;  %v1928_v19 = vpop.f32.mrb[65].mxu0 }
 0x5de   : >> { %v3254_v41 = vsel %vm1066_vm0, %v3211_v23, 0 }
 0x5df   : >> { %v7047_v0 = vpop.f32.mrb[92].mxu1  ;;  %v3251_v57 = vsel %vm1066_vm0, %v3210_v54, 0 }
 0x5e0   : >> { %7086 = vmatpush3.bf16.xpose.msra.mxu1 %v3245_v38  ;;  %v3022_v34 = vadd.f32 %v7047_v0, %v6066_v32  ;;  %v3013_v5 = vpop.f32.mrb[93].mxu1 }
 0x5e1   : >> { %7450 = vmatprep.subr.msk.bf16.mxu1 %vm1066_vm0, %v3209_v36  ;;  %v3014_v22 = vadd.f32 %v6066_v32, %v3013_v5  ;;  %v7048_v61 = vpop.f32.mrb[94].mxu1  ;;  %v10550_v36 = vpack.c.bf16 %v9068_v8, %v9065_v1 }
 0x5e2   : >> { %v3025_v9 = vadd.f32 %v7048_v61, %v6066_v32  ;;  %v3016_v35 = vpop.f32.mrb[95].mxu1 }
 0x5e3   : >> { %v3017_v30 = vadd.f32 %v6066_v32, %v3016_v35  ;;  %v10555_v35 = vpack.c.bf16 %v9103_v7, %v9099_v12 }
 0x5e4   : >> { %v3213_v10 = vpack.c.bf16 %v3025_v9, %v3022_v34  ;;  %v6868_v34 = vpop.f32.mrb[66].mxu0 }
 0x5e5   : >> { %v3212_v45 = vpack.c.bf16 %v3017_v30, %v3014_v22  ;;  %v10554_v22 = vpack.c.bf16 %v9089_v47, %v9085_v56  ;;  %v1931_v9 = vpop.f32.mrb[67].mxu0 }
 0x5e6   : >> { %v3260_v32 = vsel %vm1066_vm0, %v3213_v10, 0 }
 0x5e7   : >> { %v3257_v55 = vsel %vm1066_vm0, %v3212_v45, 0 }
 0x5e8   : >> { %7088 = vmatpush3.bf16.xpose.msra.mxu1 %v3248_v29 }
 0x5e9   : >> { %7451 = vmatprep.subr.msk.bf16.mxu1 %vm1066_vm0, %v3210_v54  ;;  %v10551_v54 = vpack.c.bf16 %v9079_v46, %v9075_v24  ;;  %v9149_v24 = vld [vmem:[%s10478_s3 + $0x9] ss:$0 sm:$0xff] }
 0x5ea   : >> { %v1937_v53 = vadd.f32 %v6867_v20, %v9149_v24  ;;  %v1940_v61 = vadd.f32 %v6868_v34, %v9149_v24  ;;  %v1932_v30 = vadd.f32 %v9149_v24, %v1931_v9 }
 0x5ec   : >> { %v2305_v29 = vpack.c.bf16 %v1940_v61, %v1937_v53 }
 0x5f0   : >> { %7090 = vmatpush3.bf16.xpose.msra.mxu1 %v3251_v57 }
 0x5f1   : >> { %7452 = vmatprep.subr.msk.bf16.mxu1 %vm1066_vm0, %v3211_v23 }
 0x5f8   : >> { %7092 = vmatpush3.bf16.xpose.msra.mxu1 %v3254_v41 }
 0x5f9   : >> { %7453 = vmatprep.subr.msk.bf16.mxu1 %vm1066_vm0, %v3212_v45 }
 0x600   : >> { %7094 = vmatpush3.bf16.xpose.msra.mxu1 %v3257_v55 }
 0x601   : >> { %7454 = vmatprep.subr.msk.bf16.mxu1 %vm1066_vm0, %v3213_v10 }
 0x608   : >> { %7096 = vmatpush3.bf16.xpose.msra.mxu1 %v3260_v32  ;;  %v6871_v32 = vpop.f32.mrb[68].mxu0 }
 0x60f   : >> { %7098 = vmatmul.mubr.msk.bf16.vlgmr.msra.gmra.mrb[96].mxu1 %vm1066_vm0, %v10550_v36  ;;  %v1953_v36 = vadd.f32 %v6871_v32, %v9149_v24 }
 0x610   : >> { %7101 = vmatprep.mubr.msk.bf16.mxu1 %vm1066_vm0, %v10551_v54  ;;  %v1944_v54 = vpop.f32.mrb[69].mxu0 }
 0x617   : >> { %7102 = vmatmul.mubr.msk.bf16.gmra.mrb[100].mxu1 %vm1066_vm0, %v10552_v39 }
 0x618   : >> { %v2153_v45 = vpop.xlane.xlu0 %2152  ;;  %7105 = vmatprep.mubr.msk.bf16.mxu1 %vm1066_vm0, %v10553_v63 }
 0x619   : >> { %v2184_v1 = vsub.f32 %v9000_v42, %v2153_v45  ;;  %v1929_v42 = vadd.f32 %v9149_v24, %v1928_v19  ;;  %v6872_v45 = vpop.f32.mrb[70].mxu0 }
 0x61a   : >> { %v2155_v8 = vpop.xlane.xlu1 %2154 }
 0x61b   : >> { %v2200_v21 = vmul.f32 1.442695, %v2184_v1  ;;  %v2185_v23 = vsub.f32 %v9003_v3, %v2155_v8  ;;  %v2304_v47 = vpack.c.bf16 %v1932_v30, %v1929_v42  ;;  %v10556_v8 = vpack.c.bf16 %v9101_v14, %v9097_v27 }
 0x61c   : >> { %v2157_v40 = vpop.xlane.xlu0 %2156 }
 0x61d   : >> { %7713 = vpow2.f32 %v2200_v21  ;;  %v2202_v46 = vmul.f32 1.442695, %v2185_v23  ;;  %v2186_v38 = vsub.f32 %v9007_v60, %v2157_v40  ;;  %6913 = vmatprep.subr.bf16.mxu0 %v2304_v47  ;;  %v1947_v21 = vpop.f32.mrb[71].mxu0 }
 0x61e   : >> { %v2159_v0 = vpop.xlane.xlu1 %2158  ;;  %6914 = vmatpush3.bf16.msra.mxu0 %v2304_v47  ;;  %v1948_v40 = vadd.f32 %v9149_v24, %v1947_v21  ;;  %v6875_v34 = vpop.f32.mrb[72].mxu0 }
 0x61f   : >> { %7715 = vpow2.f32 %v2202_v46  ;;  %v2204_v3 = vmul.f32 1.442695, %v2186_v38  ;;  %v2187_v5 = vsub.f32 %v9011_v43, %v2159_v0  ;;  %7106 = vmatmul.mubr.msk.bf16.gmra.mrb[104].mxu1 %vm1066_vm0, %v10554_v22  ;;  %6915 = vmatprep.subr.bf16.mxu0 %v2305_v29  ;;  %v1969_v22 = vadd.f32 %v6875_v34, %v9149_v24  ;;  %v1960_v61 = vpop.f32.mrb[73].mxu0 }
 0x620   : >> { %v2161_v60 = vpop.xlane.xlu0 %2160  ;;  %7109 = vmatprep.mubr.msk.bf16.mxu1 %vm1066_vm0, %v10555_v35 }
 0x621   : >> { %7717 = vpow2.f32 %v2204_v3  ;;  %v2206_v10 = vmul.f32 1.442695, %v2187_v5  ;;  %v2188_v43 = vsub.f32 %v9015_v62, %v2161_v60  ;;  %v1945_v62 = vadd.f32 %v9149_v24, %v1944_v54  ;;  %v6876_v60 = vpop.f32.mrb[74].mxu0 }
 0x622   : >> { %v2163_v57 = vpop.xlane.xlu1 %2162  ;;  %6916 = vmatpush3.bf16.msra.mxu0 %v2305_v29 }
 0x623   : >> { %7719 = vpow2.f32 %v2206_v10  ;;  %v2208_v56 = vmul.f32 1.442695, %v2188_v43  ;;  %v2189_v41 = vsub.f32 %v9019_v4, %v2163_v57  ;;  %v2306_v14 = vpack.c.bf16 %v1948_v40, %v1945_v62 }
 0x624   : >> { %v2165_v55 = vpop.xlane.xlu0 %2164  ;;  %v1972_v43 = vadd.f32 %v6876_v60, %v9149_v24 }
 0x625   : >> { %7721 = vpow2.f32 %v2208_v56  ;;  %v2210_v12 = vmul.f32 1.442695, %v2189_v41  ;;  %v2190_v7 = vsub.f32 %v9023_v13, %v2165_v55  ;;  %v1956_v13 = vadd.f32 %v6872_v45, %v9149_v24  ;;  %6917 = vmatprep.subr.bf16.mxu0 %v2306_v14 }
 0x626   : >> { %v2167_v39 = vpop.xlane.xlu1 %2166  ;;  %6918 = vmatpush3.bf16.msra.mxu0 %v2306_v14  ;;  %v2309_v55 = vpack.c.bf16 %v1972_v43, %v1969_v22 }
 0x627   : >> { %v9170_v63 = vpop.eup %7713  ;;  %7723 = vpow2.f32 %v2210_v12  ;;  %v2212_v4 = vmul.f32 1.442695, %v2190_v7  ;;  %v2191_v1 = vsub.f32 %v9027_v58, %v2167_v39  ;;  %7110 = vmatmul.mubr.msk.bf16.gmra.mrb[108].mxu1 %vm1066_vm0, %v10556_v8  ;;  %v2307_v38 = vpack.c.bf16 %v1956_v13, %v1953_v36 }
 0x628   : >> { %2232 = vadd.xlane.f32.xlu0 %v9170_v63  ;;  %v2169_v23 = vpop.xlane.xlu0 %2168  ;;  %7181 = vmatprep.mubr.bf16.mxu1 %v8385_v6 }
 0x629   : >> { %v9181_v20 = vpop.eup %7715  ;;  %7725 = vpow2.f32 %v2212_v4  ;;  %v2214_v46 = vmul.f32 1.442695, %v2191_v1  ;;  %v2192_v58 = vsub.f32 %v9031_v11, %v2169_v23  ;;  %6919 = vmatprep.subr.bf16.mxu0 %v2307_v38 }
 0x62a   : >> { %2234 = vadd.xlane.f32.xlu1 %v9181_v20  ;;  %v2171_v27 = vpop.xlane.xlu1 %2170  ;;  %6920 = vmatpush3.bf16.msra.mxu0 %v2307_v38 }
 0x62b   : >> { %v9185_v53 = vpop.eup %7717  ;;  %7727 = vpow2.f32 %v2214_v46  ;;  %v2216_v19 = vmul.f32 1.442695, %v2192_v58  ;;  %v2193_v0 = vsub.f32 %v9035_v15, %v2171_v27  ;;  %v1961_v15 = vadd.f32 %v9149_v24, %v1960_v61 }
 0x62c   : >> { %2236 = vadd.xlane.f32.xlu0 %v9185_v53  ;;  %v2173_v42 = vpop.xlane.xlu0 %2172 }
 0x62d   : >> { %v9189_v3 = vpop.eup %7719  ;;  %7729 = vpow2.f32 %v2216_v19  ;;  %v2218_v11 = vmul.f32 1.442695, %v2193_v0  ;;  %v2194_v5 = vsub.f32 %v9039_v17, %v2173_v42  ;;  %v1963_v17 = vpop.f32.mrb[75].mxu0 }
 0x62e   : >> { %2238 = vadd.xlane.f32.xlu1 %v9189_v3  ;;  %v2175_v9 = vpop.xlane.xlu1 %2174  ;;  %v1964_v57 = vadd.f32 %v9149_v24, %v1963_v17  ;;  %v6879_v39 = vpop.f32.mrb[76].mxu0 }
 0x62f   : >> { %v9195_v35 = vpop.eup %7721  ;;  %7731 = vpow2.f32 %v2218_v11  ;;  %v2220_v30 = vmul.f32 1.442695, %v2194_v5  ;;  %v2195_v10 = vsub.f32 %v9043_v18, %v2175_v9  ;;  %v1985_v4 = vadd.f32 %v6879_v39, %v9149_v24  ;;  %v1976_v1 = vpop.f32.mrb[77].mxu0 }
 0x630   : >> { %2240 = vadd.xlane.f32.xlu0 %v9195_v35  ;;  %v2177_v29 = vpop.xlane.xlu0 %2176  ;;  %v2308_v18 = vpack.c.bf16 %v1964_v57, %v1961_v15  ;;  %v6880_v13 = vpop.f32.mrb[78].mxu0 }
 0x631   : >> { %v9201_v47 = vpop.eup %7723  ;;  %7733 = vpow2.f32 %v2220_v30  ;;  %v2222_v56 = vmul.f32 1.442695, %v2195_v10  ;;  %v2196_v41 = vsub.f32 %v9047_v50, %v2177_v29  ;;  %v1988_v46 = vadd.f32 %v6880_v13, %v9149_v24 }
 0x632   : >> { %2242 = vadd.xlane.f32.xlu1 %v9201_v47  ;;  %v2179_v32 = vpop.xlane.xlu1 %2178  ;;  %6921 = vmatprep.subr.bf16.mxu0 %v2308_v18 }
 0x633   : >> { %v9205_v12 = vpop.eup %7725  ;;  %7735 = vpow2.f32 %v2222_v56  ;;  %v2224_v7 = vmul.f32 1.442695, %v2196_v41  ;;  %v2197_v36 = vsub.f32 %v9051_v25, %v2179_v32  ;;  %6922 = vmatpush3.bf16.msra.mxu0 %v2308_v18  ;;  %v1977_v25 = vadd.f32 %v9149_v24, %v1976_v1 }
 0x634   : >> { %2244 = vadd.xlane.f32.xlu0 %v9205_v12  ;;  %v2181_v54 = vpop.xlane.xlu0 %2180  ;;  %6923 = vmatprep.subr.bf16.mxu0 %v2309_v55  ;;  %v2311_v14 = vpack.c.bf16 %v1988_v46, %v1985_v4 }
 0x635   : >> { %v9209_v62 = vpop.eup %7727  ;;  %7737 = vpow2.f32 %v2224_v7  ;;  %v2226_v50 = vmul.f32 1.442695, %v2197_v36  ;;  %v2198_v45 = vsub.f32 %v9055_v26, %v2181_v54  ;;  %v1979_v26 = vpop.f32.mrb[79].mxu0 }
 0x636   : >> { %2246 = vadd.xlane.f32.xlu1 %v9209_v62  ;;  %v2183_v8 = vpop.xlane.xlu1 %2182  ;;  %v1980_v58 = vadd.f32 %v9149_v24, %v1979_v26 }
 0x637   : >> { %v9215_v21 = vpop.eup %7729  ;;  %7739 = vpow2.f32 %v2226_v50  ;;  %v2228_v23 = vmul.f32 1.442695, %v2198_v45  ;;  %v2199_v40 = vsub.f32 %v9062_v2, %v2183_v8  ;;  %6924 = vmatpush3.bf16.msra.mxu0 %v2309_v55 }
 0x638   : >> { %2248 = vadd.xlane.f32.xlu0 %v9215_v21  ;;  %v2310_v19 = vpack.c.bf16 %v1980_v58, %v1977_v25 }
 0x639   : >> { %v9221_v38 = vpop.eup %7731  ;;  %7741 = vpow2.f32 %v2228_v23  ;;  %v2230_v27 = vmul.f32 1.442695, %v2199_v40 }
 0x63a   : >> { %2250 = vadd.xlane.f32.xlu1 %v9221_v38  ;;  %6925 = vmatprep.subr.bf16.mxu0 %v2310_v19 }
 0x63b   : >> { %v9224_v0 = vpop.eup %7733  ;;  %7743 = vpow2.f32 %v2230_v27  ;;  %6926 = vmatpush3.bf16.msra.mxu0 %v2310_v19 }
 0x63c   : >> { %2252 = vadd.xlane.f32.xlu0 %v9224_v0  ;;  %6927 = vmatprep.subr.bf16.mxu0 %v2311_v14 }
 0x63d   : >> { %v9227_v2 = vpop.eup %7735 }
 0x63e   : >> { %2254 = vadd.xlane.f32.xlu1 %v9227_v2 }
 0x63f   : >> { %v9230_v24 = vpop.eup %7737  ;;  %6928 = vmatpush3.bf16.msra.mxu0 %v2311_v14 }
 0x640   : >> { %2256 = vadd.xlane.f32.xlu0 %v9230_v24 }
 0x641   : >> { %v9233_v42 = vpop.eup %7739 }
 0x642   : >> { %2258 = vadd.xlane.f32.xlu1 %v9233_v42 }
 0x643   : >> { %v9236_v34 = vpop.eup %7741 }
 0x644   : >> { %2260 = vadd.xlane.f32.xlu0 %v9236_v34 }
 0x645   : >> { %v9239_v11 = vpop.eup %7743 }
 0x646   : >> { %2262 = vadd.xlane.f32.xlu1 %v9239_v11 }
 0x6b5   : >> { %v2233_v5 = vpop.xlane.xlu0 %2232 }
 0x6b6   : >> { %7745 = vrcp.f32 %v2233_v5 }
 0x6b7   : >> { %v2235_v22 = vpop.xlane.xlu1 %2234 }
 0x6b8   : >> { %7747 = vrcp.f32 %v2235_v22 }
 0x6b9   : >> { %v2237_v61 = vpop.xlane.xlu0 %2236 }
 0x6ba   : >> { %7749 = vrcp.f32 %v2237_v61 }
 0x6bb   : >> { %v2239_v9 = vpop.xlane.xlu1 %2238 }
 0x6bc   : >> { %7751 = vrcp.f32 %v2239_v9 }
 0x6bd   : >> { %v2241_v15 = vpop.xlane.xlu0 %2240 }
 0x6be   : >> { %7753 = vrcp.f32 %v2241_v15 }
 0x6bf   : >> { %v2243_v60 = vpop.xlane.xlu1 %2242 }
 0x6c0   : >> { %v7746_v30 = vpop.eup %7745  ;;  %7755 = vrcp.f32 %v2243_v60 }
 0x6c1   : >> { %v2245_v10 = vpop.xlane.xlu0 %2244  ;;  %v2280_v29 = vmul.f32 %v7746_v30, %v9170_v63 }
 0x6c2   : >> { %v7748_v43 = vpop.eup %7747  ;;  %7757 = vrcp.f32 %v2245_v10 }
 0x6c3   : >> { %v2247_v17 = vpop.xlane.xlu1 %2246  ;;  %v2281_v57 = vmul.f32 %v7748_v43, %v9181_v20 }
 0x6c4   : >> { %v7750_v56 = vpop.eup %7749  ;;  %7759 = vrcp.f32 %v2247_v17 }
 0x6c5   : >> { %v2249_v41 = vpop.xlane.xlu0 %2248  ;;  %v2296_v55 = vpack.c.bf16 %v2281_v57, %v2280_v29  ;;  %v2282_v18 = vmul.f32 %v7750_v56, %v9185_v53 }
 0x6c6   : >> { %v7752_v32 = vpop.eup %7751  ;;  %7761 = vrcp.f32 %v2249_v41 }
 0x6c7   : >> { %v2283_v7 = vmul.f32 %v7752_v32, %v9189_v3  ;;  %v2251_v36 = vpop.xlane.xlu1 %2250  ;;  %6929 = vmatprep.mubr.bf16.mxu0 %v2296_v55 }
 0x6c8   : >> { %v7754_v54 = vpop.eup %7753  ;;  %7763 = vrcp.f32 %v2251_v36 }
 0x6c9   : >> { %v2253_v39 = vpop.xlane.xlu0 %2252  ;;  %v2297_v50 = vpack.c.bf16 %v2283_v7, %v2282_v18  ;;  %v2284_v20 = vmul.f32 %v7754_v54, %v9195_v35 }
 0x6ca   : >> { %v7756_v45 = vpop.eup %7755  ;;  %7765 = vrcp.f32 %v2253_v39 }
 0x6cb   : >> { %v2255_v63 = vpop.xlane.xlu1 %2254  ;;  %6930 = vmatmul.mubr.bf16.vlgmr.msra.gmra.mrb[80].mxu0 %v2297_v50  ;;  %v2285_v4 = vmul.f32 %v7756_v45, %v9201_v47 }
 0x6cc   : >> { %v7758_v1 = vpop.eup %7757  ;;  %7767 = vrcp.f32 %v2255_v63 }
 0x6cd   : >> { %v2257_v8 = vpop.xlane.xlu0 %2256  ;;  %v2298_v53 = vpack.c.bf16 %v2285_v4, %v2284_v20  ;;  %v2286_v13 = vmul.f32 %v7758_v1, %v9205_v12 }
 0x6ce   : >> { %v7760_v25 = vpop.eup %7759  ;;  %7769 = vrcp.f32 %v2257_v8 }
 0x6cf   : >> { %v2259_v3 = vpop.xlane.xlu1 %2258  ;;  %6933 = vmatprep.mubr.bf16.mxu0 %v2298_v53  ;;  %v2287_v23 = vmul.f32 %v7760_v25, %v9209_v62 }
 0x6d0   : >> { %v7762_v40 = vpop.eup %7761  ;;  %7771 = vrcp.f32 %v2259_v3 }
 0x6d1   : >> { %v2261_v46 = vpop.xlane.xlu0 %2260  ;;  %v2299_v26 = vpack.c.bf16 %v2287_v23, %v2286_v13  ;;  %v2288_v47 = vmul.f32 %v7762_v40, %v9215_v21 }
 0x6d2   : >> { %v7764_v58 = vpop.eup %7763  ;;  %7773 = vrcp.f32 %v2261_v46 }
 0x6d3   : >> { %v2263_v35 = vpop.xlane.xlu1 %2262  ;;  %6934 = vmatmul.mubr.bf16.gmra.mrb[84].mxu0 %v2299_v26  ;;  %v2289_v27 = vmul.f32 %v7764_v58, %v9221_v38  ;;  %v7601_v58 = vld [vmem:[#allocation5 + $0x10] sm:$0xff]  }
 0x6d4   : >> { %v7766_v14 = vpop.eup %7765  ;;  %7775 = vrcp.f32 %v2263_v35  ;;  %6945 = vmatprep.subr.bf16.mxu0 %v7601_v58  ;;  %v7602_v35 = vld [vmem:[#allocation5 + $0x18] sm:$0xff]  }
 0x6d5   : >> { %v2300_v19 = vpack.c.bf16 %v2289_v27, %v2288_v47  ;;  %v2290_v12 = vmul.f32 %v7766_v14, %v9224_v0  ;;  %6946 = vmatpush3.bf16.msra.mxu0 %v7601_v58  ;;  %v9307_v47 = vld [vmem:[#allocation5] sm:$0xff]  }
 0x6d6   : >> { %v7768_v5 = vpop.eup %7767  ;;  %6947 = vmatprep.subr.bf16.mxu0 %v7602_v35 }
 0x6d7   : >> { %6937 = vmatprep.mubr.bf16.mxu0 %v2300_v19  ;;  %v2291_v62 = vmul.f32 %v7768_v5, %v9227_v2 }
 0x6d8   : >> { %v7770_v22 = vpop.eup %7769 }
 0x6d9   : >> { %v2301_v61 = vpack.c.bf16 %v2291_v62, %v2290_v12  ;;  %v2292_v15 = vmul.f32 %v7770_v22, %v9230_v24  ;;  %6948 = vmatpush3.bf16.msra.mxu0 %v7602_v35 }
 0x6da   : >> { %v7772_v9 = vpop.eup %7771  ;;  %6965 = vmatprep.subr.bf16.mxu0 %v9307_v47 }
 0x6db   : >> { %6938 = vmatmul.mubr.bf16.gmra.mrb[88].mxu0 %v2301_v61  ;;  %v2293_v60 = vmul.f32 %v7772_v9, %v9233_v42 }
 0x6dc   : >> { %v7774_v21 = vpop.eup %7773 }
 0x6dd   : >> { %v2302_v30 = vpack.c.bf16 %v2293_v60, %v2292_v15  ;;  %v2294_v10 = vmul.f32 %v7774_v21, %v9236_v34 }
 0x6de   : >> { %v7776_v38 = vpop.eup %7775 }
 0x6df   : >> { %6941 = vmatprep.mubr.bf16.mxu0 %v2302_v30  ;;  %v2295_v43 = vmul.f32 %v7776_v38, %v9239_v11 }
 0x6e1   : >> { %v2303_v17 = vpack.c.bf16 %v2295_v43, %v2294_v10 }
 0x6e2   : >> { %v7099_v0 = vpop.f32.mrb[96].mxu1 }
 0x6e3   : >> { %6942 = vmatmul.mubr.bf16.gmra.mrb[92].mxu0 %v2303_v17  ;;  %v3296_v2 = vpop.f32.mrb[97].mxu1  ;;  %v3305_v24 = vadd.f32 %v8997_v59, %v7099_v0 }
 0x6e4   : >> { %v3297_v29 = vadd.f32 %v8997_v59, %v3296_v2  ;;  %v7100_v57 = vpop.f32.mrb[98].mxu1 }
 0x6e5   : >> { %v3299_v56 = vpop.f32.mrb[99].mxu1  ;;  %v9262_v41 = vadd.f32 %v8997_v59, %v7100_v57 }
 0x6e6   : >> { %v3300_v42 = vadd.f32 %v8997_v59, %v3299_v56  ;;  %3359 = vmax.xlane.f32.xlu0 %v3297_v29 }
 0x6e8   : >> { %3361 = vmax.xlane.f32.xlu1 %v3300_v42 }
 0x6ea   : >> { %v7103_v34 = vpop.f32.mrb[100].mxu1  ;;  %3363 = vmax.xlane.f32.xlu0 %v3305_v24 }
 0x6eb   : >> { %v3312_v11 = vpop.f32.mrb[101].mxu1  ;;  %v9267_v7 = vadd.f32 %v8997_v59, %v7103_v34 }
 0x6ec   : >> { %v3313_v55 = vadd.f32 %v8997_v59, %v3312_v11  ;;  %v7104_v32 = vpop.f32.mrb[102].mxu1  ;;  %3365 = vmax.xlane.f32.xlu1 %v9262_v41 }
 0x6ed   : >> { %v3315_v18 = vpop.f32.mrb[103].mxu1  ;;  %v9271_v54 = vadd.f32 %v8997_v59, %v7104_v32 }
 0x6ee   : >> { %v3316_v36 = vadd.f32 %v8997_v59, %v3315_v18  ;;  %3367 = vmax.xlane.f32.xlu0 %v3313_v55 }
 0x6f0   : >> { %3369 = vmax.xlane.f32.xlu1 %v3316_v36 }
 0x6f2   : >> { %v7107_v39 = vpop.f32.mrb[104].mxu1  ;;  %3371 = vmax.xlane.f32.xlu0 %v9267_v7 }
 0x6f3   : >> { %v3328_v50 = vpop.f32.mrb[105].mxu1  ;;  %v9279_v4 = vadd.f32 %v8997_v59, %v7107_v39 }
 0x6f4   : >> { %v9275_v45 = vadd.f32 %v8997_v59, %v3328_v50  ;;  %v7108_v63 = vpop.f32.mrb[106].mxu1  ;;  %3373 = vmax.xlane.f32.xlu1 %v9271_v54 }
 0x6f5   : >> { %v3331_v20 = vpop.f32.mrb[107].mxu1  ;;  %v9286_v8 = vadd.f32 %v8997_v59, %v7108_v63 }
 0x6f6   : >> { %v9282_v1 = vadd.f32 %v8997_v59, %v3331_v20  ;;  %3375 = vmax.xlane.f32.xlu0 %v9275_v45 }
 0x6f8   : >> { %3377 = vmax.xlane.f32.xlu1 %v9282_v1 }
 0x6fa   : >> { %v7111_v53 = vpop.f32.mrb[108].mxu1  ;;  %3379 = vmax.xlane.f32.xlu0 %v9279_v4 }
 0x6fb   : >> { %v3344_v25 = vpop.f32.mrb[109].mxu1  ;;  %v9295_v40 = vadd.f32 %v8997_v59, %v7111_v53 }
 0x6fc   : >> { %v9291_v3 = vadd.f32 %v8997_v59, %v3344_v25  ;;  %v7112_v13 = vpop.f32.mrb[110].mxu1  ;;  %3381 = vmax.xlane.f32.xlu1 %v9286_v8 }
 0x6fd   : >> { %v3347_v23 = vpop.f32.mrb[111].mxu1  ;;  %v9302_v26 = vadd.f32 %v8997_v59, %v7112_v13 }
 0x6fe   : >> { %v9298_v46 = vadd.f32 %v8997_v59, %v3347_v23  ;;  %3383 = vmax.xlane.f32.xlu0 %v9291_v3 }
 0x700   : >> { %3385 = vmax.xlane.f32.xlu1 %v9298_v46 }
 0x702   : >> { %3387 = vmax.xlane.f32.xlu0 %v9295_v40 }
 0x704   : >> { %3389 = vmax.xlane.f32.xlu1 %v9302_v26 }
 0x773   : >> { %v3360_v27 = vpop.xlane.xlu0 %3359 }
 0x774   : >> { %v3391_v14 = vsub.f32 %v3297_v29, %v3360_v27 }
 0x775   : >> { %v3362_v59 = vpop.xlane.xlu1 %3361 }
 0x776   : >> { %v3407_v19 = vmul.f32 1.442695, %v3391_v14  ;;  %v3392_v5 = vsub.f32 %v3300_v42, %v3362_v59 }
 0x777   : >> { %v3364_v12 = vpop.xlane.xlu0 %3363 }
 0x778   : >> { %7777 = vpow2.f32 %v3407_v19  ;;  %v3409_v62 = vmul.f32 1.442695, %v3392_v5  ;;  %v3393_v22 = vsub.f32 %v3305_v24, %v3364_v12 }
 0x779   : >> { %v3366_v61 = vpop.xlane.xlu1 %3365 }
 0x77a   : >> { %7779 = vpow2.f32 %v3409_v62  ;;  %v3411_v9 = vmul.f32 1.442695, %v3393_v22  ;;  %v3394_v15 = vsub.f32 %v9262_v41, %v3366_v61 }
 0x77b   : >> { %v3368_v60 = vpop.xlane.xlu0 %3367 }
 0x77c   : >> { %7781 = vpow2.f32 %v3411_v9  ;;  %v3413_v21 = vmul.f32 1.442695, %v3394_v15  ;;  %v3395_v30 = vsub.f32 %v3313_v55, %v3368_v60 }
 0x77d   : >> { %v3370_v38 = vpop.xlane.xlu1 %3369 }
 0x77e   : >> { %7783 = vpow2.f32 %v3413_v21  ;;  %v3415_v10 = vmul.f32 1.442695, %v3395_v30  ;;  %v3396_v43 = vsub.f32 %v3316_v36, %v3370_v38 }
 0x77f   : >> { %v3372_v17 = vpop.xlane.xlu0 %3371 }
 0x780   : >> { %7785 = vpow2.f32 %v3415_v10  ;;  %v3417_v0 = vmul.f32 1.442695, %v3396_v43  ;;  %v3397_v2 = vsub.f32 %v9267_v7, %v3372_v17 }
 0x781   : >> { %v3374_v29 = vpop.xlane.xlu1 %3373 }
 0x782   : >> { %v9312_v57 = vpop.eup %7777  ;;  %7787 = vpow2.f32 %v3417_v0  ;;  %v3419_v56 = vmul.f32 1.442695, %v3397_v2  ;;  %v3398_v24 = vsub.f32 %v9271_v54, %v3374_v29  ;;  %v7604_v0 = vld [vmem:[#allocation5 + $0x8] sm:$0xff]  }
 0x783   : >> { %3439 = vadd.xlane.f32.xlu0 %v9312_v57  ;;  %v3376_v42 = vpop.xlane.xlu0 %3375 }
 0x784   : >> { %v9316_v41 = vpop.eup %7779  ;;  %7789 = vpow2.f32 %v3419_v56  ;;  %v3421_v34 = vmul.f32 1.442695, %v3398_v24  ;;  %v3399_v11 = vsub.f32 %v9275_v45, %v3376_v42  ;;  %v7605_v56 = vld [vmem:[%s10477_s2 + $0x280] sm:$0xff]  }
 0x785   : >> { %3441 = vadd.xlane.f32.xlu1 %v9316_v41  ;;  %v3378_v55 = vpop.xlane.xlu1 %3377 }
 0x786   : >> { %v9320_v32 = vpop.eup %7781  ;;  %7791 = vpow2.f32 %v3421_v34  ;;  %v3423_v18 = vmul.f32 1.442695, %v3399_v11  ;;  %v3400_v7 = vsub.f32 %v9282_v1, %v3378_v55 }
 0x787   : >> { %3443 = vadd.xlane.f32.xlu0 %v9320_v32  ;;  %v3380_v36 = vpop.xlane.xlu0 %3379 }
 0x788   : >> { %v9324_v54 = vpop.eup %7783  ;;  %7793 = vpow2.f32 %v3423_v18  ;;  %v3425_v39 = vmul.f32 1.442695, %v3400_v7  ;;  %v3401_v50 = vsub.f32 %v9279_v4, %v3380_v36 }
 0x789   : >> { %3445 = vadd.xlane.f32.xlu1 %v9324_v54  ;;  %v3382_v45 = vpop.xlane.xlu1 %3381 }
 0x78a   : >> { %v9328_v63 = vpop.eup %7785  ;;  %7795 = vpow2.f32 %v3425_v39  ;;  %v3427_v20 = vmul.f32 1.442695, %v3401_v50  ;;  %v3402_v53 = vsub.f32 %v9286_v8, %v3382_v45 }
 0x78b   : >> { %3447 = vadd.xlane.f32.xlu0 %v9328_v63  ;;  %v3384_v1 = vpop.xlane.xlu0 %3383 }
 0x78c   : >> { %v9332_v25 = vpop.eup %7787  ;;  %7797 = vpow2.f32 %v3427_v20  ;;  %v3429_v13 = vmul.f32 1.442695, %v3402_v53  ;;  %v3403_v23 = vsub.f32 %v9291_v3, %v3384_v1 }
 0x78d   : >> { %3449 = vadd.xlane.f32.xlu1 %v9332_v25  ;;  %v3386_v4 = vpop.xlane.xlu1 %3385 }
 0x78e   : >> { %v9336_v58 = vpop.eup %7789  ;;  %7799 = vpow2.f32 %v3429_v13  ;;  %v3431_v35 = vmul.f32 1.442695, %v3403_v23  ;;  %v3404_v27 = vsub.f32 %v9298_v46, %v3386_v4  ;;  %v10557_v23 = vpack.c.bf16 %v8853_v28, %v8847_v16  ;;  %v7606_v4 = vld [vmem:[%s10477_s2 + $0x288] sm:$0xff]   ;;  %v7607_v16 = vld [vmem:[%s10477_s2 + $0x290] sm:$0xff]   ;;  %v7608_v28 = vld [vmem:[%s10477_s2 + $0x298] sm:$0xff]  }
 0x78f   : >> { %3451 = vadd.xlane.f32.xlu0 %v9336_v58  ;;  %v3388_v8 = vpop.xlane.xlu0 %3387 }
 0x790   : >> { %v9340_v14 = vpop.eup %7791  ;;  %7801 = vpow2.f32 %v3431_v35  ;;  %v3433_v59 = vmul.f32 1.442695, %v3404_v27  ;;  %v3405_v19 = vsub.f32 %v9295_v40, %v3388_v8  ;;  %v10558_v35 = vpack.c.bf16 %v8849_v51, %v8845_v49 }
 0x791   : >> { %3453 = vadd.xlane.f32.xlu1 %v9340_v14  ;;  %v3390_v3 = vpop.xlane.xlu1 %3389  ;;  %v10559_v27 = vpack.c.bf16 %v8865_v44, %v8859_v33  ;;  %v10560_v49 = vpack.c.bf16 %v8861_v37, %v8857_v31  ;;  %v10561_v51 = vpack.c.bf16 %v8877_v52, %v8871_v48  ;;  %v7609_v33 = vld [vmem:[%s10477_s2 + $0x2a0] sm:$0xff]   ;;  %v7610_v44 = vld [vmem:[%s10477_s2 + $0x2a8] sm:$0xff]   ;;  %v10566_v52 = vld [vmem:[#allocation24_spill] sm:$0xff] }
 0x792   : >> { %v9344_v5 = vpop.eup %7793  ;;  %7803 = vpow2.f32 %v3433_v59  ;;  %v3435_v12 = vmul.f32 1.442695, %v3405_v19  ;;  %v3406_v62 = vsub.f32 %v9302_v26, %v3390_v3  ;;  %v10562_v31 = vld [vmem:[#allocation22_spill] sm:$0xff]  ;;  %v10563_v37 = vld [vmem:[#allocation21_spill] sm:$0xff]  ;;  %v7611_v19 = vld [vmem:[%s10477_s2 + $0x2b0] sm:$0xff]  }
 0x793   : >> { %3455 = vadd.xlane.f32.xlu0 %v9344_v5  ;;  %v10564_v8 = vpack.c.bf16 %v10562_v31, %v10563_v37  ;;  %v10565_v48 = vld [vmem:[#allocation26_spill] sm:$0xff]  ;;  %v7612_v3 = vld [vmem:[%s10477_s2 + $0x2b8] sm:$0xff]  }
 0x794   : >> { %v9348_v46 = vpop.eup %7795  ;;  %7805 = vpow2.f32 %v3435_v12  ;;  %v3437_v22 = vmul.f32 1.442695, %v3406_v62  ;;  %v10567_v59 = vpack.c.bf16 %v10565_v48, %v10566_v52  ;;  %v10568_v12 = vld [vmem:[#allocation25_spill] sm:$0xff]  ;;  %v10569_v62 = vld [vmem:[#allocation23_spill] sm:$0xff] }
 0x795   : >> { %3457 = vadd.xlane.f32.xlu1 %v9348_v46 }
 0x796   : >> { %v9351_v61 = vpop.eup %7797  ;;  %7807 = vpow2.f32 %v3437_v22  ;;  %v10570_v22 = vpack.c.bf16 %v10568_v12, %v10569_v62 }
 0x797   : >> { %3459 = vadd.xlane.f32.xlu0 %v9351_v61 }
 0x798   : >> { %v9354_v40 = vpop.eup %7799 }
 0x799   : >> { %3461 = vadd.xlane.f32.xlu1 %v9354_v40 }
 0x79a   : >> { %v9357_v9 = vpop.eup %7801 }
 0x79b   : >> { %3463 = vadd.xlane.f32.xlu0 %v9357_v9 }
 0x79c   : >> { %v9360_v26 = vpop.eup %7803 }
 0x79d   : >> { %3465 = vadd.xlane.f32.xlu1 %v9360_v26 }
 0x79e   : >> { %v9363_v15 = vpop.eup %7805  ;;  %v6931_v60 = vpop.f32.mrb[80].mxu0 }
 0x79f   : >> { %v2346_v21 = vpop.f32.mrb[81].mxu0  ;;  %3467 = vadd.xlane.f32.xlu0 %v9363_v15 }
 0x7a0   : >> { %v9366_v30 = vpop.eup %7807  ;;  %v6932_v38 = vpop.f32.mrb[82].mxu0 }
 0x7a1   : >> { %v2410_v10 = vpack.c.bf16 %v6932_v38, %v6931_v60  ;;  %3469 = vadd.xlane.f32.xlu1 %v9366_v30  ;;  %v2349_v43 = vpop.f32.mrb[83].mxu0  ;;  %v10571_v60 = vld [vmem:[#allocation14_spill] sm:$0xff]  ;;  %v10573_v38 = vld [vmem:[#allocation16_spill] sm:$0xff] }
 0x7a2   : >> { %v2409_v17 = vpack.c.bf16 %v2349_v43, %v2346_v21  ;;  %v10572_v21 = vld [vmem:[#allocation15_spill] sm:$0xff]  ;;  %v10575_v43 = vld [vmem:[#allocation18_spill] sm:$0xff] }
 0x7a4   : >> { %6949 = vmatprep.mubr.msk.bf16.mxu0 %vm1066_vm0, %v2409_v17  ;;  %v10576_v17 = vld [vmem:[#allocation19_spill] sm:$0xff] }
 0x7a5   : >> { %6950 = vmatmul.mubr.msk.bf16.vlgmr.msra.gmra.mrb[96].mxu0 %vm1066_vm0, %v2410_v10  ;;  %v10574_v10 = vld [vmem:[#allocation17_spill] sm:$0xff] }
 0x7a6   : >> { %v6935_v2 = vpop.f32.mrb[84].mxu0  ;;  %6966 = vmatpush3.bf16.msra.mxu0 %v9307_v47 }
 0x7a7   : >> { %v2362_v29 = vpop.f32.mrb[85].mxu0  ;;  %6967 = vmatprep.subr.bf16.mxu0 %v7604_v0 }
 0x7a8   : >> { %v6936_v24 = vpop.f32.mrb[86].mxu0 }
 0x7a9   : >> { %v2412_v42 = vpack.c.bf16 %v6936_v24, %v6935_v2  ;;  %v2365_v34 = vpop.f32.mrb[87].mxu0 }
 0x7aa   : >> { %v2411_v11 = vpack.c.bf16 %v2365_v34, %v2362_v29  ;;  %6968 = vmatpush3.bf16.msra.mxu0 %v7604_v0  ;;  %v10577_v0 = vld [vmem:[#allocation20_spill] sm:$0xff] }
 0x7ab   : >> { %7049 = vmatprep.subr.bf16.mxu0 %v7605_v56 }
 0x7ac   : >> { %6953 = vmatprep.mubr.msk.bf16.mxu0 %vm1066_vm0, %v2411_v11 }
 0x7ad   : >> { %6954 = vmatmul.mubr.msk.bf16.gmra.mrb[100].mxu0 %vm1066_vm0, %v2412_v42 }
 0x7ae   : >> { %v6939_v55 = vpop.f32.mrb[88].mxu0 }
 0x7af   : >> { %v2378_v18 = vpop.f32.mrb[89].mxu0 }
 0x7b0   : >> { %v6940_v7 = vpop.f32.mrb[90].mxu0 }
 0x7b1   : >> { %v2414_v47 = vpack.c.bf16 %v6940_v7, %v6939_v55  ;;  %v2381_v36 = vpop.f32.mrb[91].mxu0 }
 0x7b2   : >> { %v2413_v39 = vpack.c.bf16 %v2381_v36, %v2378_v18  ;;  %v6092_v18 = vld [vmem:[%s10478_s3 + $0xa] ss:$0 sm:$0xff] }
 0x7b4   : >> { %6957 = vmatprep.mubr.msk.bf16.mxu0 %vm1066_vm0, %v2413_v39 }
 0x7b5   : >> { %6958 = vmatmul.mubr.msk.bf16.gmra.mrb[104].mxu0 %vm1066_vm0, %v2414_v47 }
 0x7b6   : >> { %v6943_v50 = vpop.f32.mrb[92].mxu0 }
 0x7b7   : >> { %v2394_v45 = vpop.f32.mrb[93].mxu0 }
 0x7b8   : >> { %v6944_v20 = vpop.f32.mrb[94].mxu0 }
 0x7b9   : >> { %v2416_v53 = vpack.c.bf16 %v6944_v20, %v6943_v50  ;;  %v2397_v1 = vpop.f32.mrb[95].mxu0 }
 0x7ba   : >> { %v2415_v13 = vpack.c.bf16 %v2397_v1, %v2394_v45 }
 0x7bc   : >> { %6961 = vmatprep.mubr.msk.bf16.mxu0 %vm1066_vm0, %v2415_v13 }
 0x7bd   : >> { %6962 = vmatmul.mubr.msk.bf16.gmra.mrb[108].mxu0 %vm1066_vm0, %v2416_v53 }
 0x7be   : >> { %6969 = vmatprep.mubr.msk.bf16.mxu0 %vm1066_vm0, %v10557_v23 }
 0x7c5   : >> { %6970 = vmatmul.mubr.msk.bf16.vlgmr.msra.gmra.mrb[96].mxu0 %vm1066_vm0, %v10558_v35 }
 0x7c6   : >> { %6973 = vmatprep.mubr.msk.bf16.mxu0 %vm1066_vm0, %v10559_v27  ;;  %7050 = vmatpush3.bf16.msra.mxu0 %v7605_v56 }
 0x7c7   : >> { %7051 = vmatprep.subr.bf16.mxu0 %v7606_v4 }
 0x7ca   : >> { %7052 = vmatpush3.bf16.msra.mxu0 %v7606_v4 }
 0x7cb   : >> { %7053 = vmatprep.subr.bf16.mxu0 %v7607_v16 }
 0x7cd   : >> { %6974 = vmatmul.mubr.msk.bf16.gmra.mrb[100].mxu0 %vm1066_vm0, %v10560_v49 }
 0x7ce   : >> { %6977 = vmatprep.mubr.msk.bf16.mxu0 %vm1066_vm0, %v10561_v51  ;;  %7054 = vmatpush3.bf16.msra.mxu0 %v7607_v16 }
 0x7cf   : >> { %7055 = vmatprep.subr.bf16.mxu0 %v7608_v28 }
 0x7d2   : >> { %7056 = vmatpush3.bf16.msra.mxu0 %v7608_v28 }
 0x7d3   : >> { %7057 = vmatprep.subr.bf16.mxu0 %v7609_v33 }
 0x7d5   : >> { %6978 = vmatmul.mubr.msk.bf16.gmra.mrb[104].mxu0 %vm1066_vm0, %v10564_v8 }
 0x7d6   : >> { %6981 = vmatprep.mubr.msk.bf16.mxu0 %vm1066_vm0, %v10567_v59  ;;  %7058 = vmatpush3.bf16.msra.mxu0 %v7609_v33 }
 0x7d7   : >> { %7059 = vmatprep.subr.bf16.mxu0 %v7610_v44 }
 0x7da   : >> { %7060 = vmatpush3.bf16.msra.mxu0 %v7610_v44 }
 0x7db   : >> { %7061 = vmatprep.subr.bf16.mxu0 %v7611_v19 }
 0x7dd   : >> { %6982 = vmatmul.mubr.msk.bf16.gmra.mrb[108].mxu0 %vm1066_vm0, %v10570_v22 }
 0x7de   : >> { %7062 = vmatpush3.bf16.msra.mxu0 %v7611_v19  ;;  %7065 = vmatprep.mubr.bf16.mxu0 %v8385_v6 }
 0x7df   : >> { %7063 = vmatprep.subr.bf16.mxu0 %v7612_v3 }
 0x7e2   : >> { %7064 = vmatpush3.bf16.msra.mxu0 %v7612_v3 }
 0x7e5   : >> { %7066 = vmatmul.mubr.bf16.vlgmr.msra.gmra.mrb[112].mxu0 %v10571_v60 }
 0x7e6   : >> { %7069 = vmatprep.mubr.bf16.mxu0 %v10572_v21 }
 0x7ed   : >> { %7070 = vmatmul.mubr.bf16.gmra.mrb[116].mxu0 %v10573_v38 }
 0x7ee   : >> { %7073 = vmatprep.mubr.bf16.mxu0 %v10574_v10 }
 0x7f5   : >> { %7074 = vmatmul.mubr.bf16.gmra.mrb[120].mxu0 %v10575_v43 }
 0x7f6   : >> { %7077 = vmatprep.mubr.bf16.mxu0 %v10576_v17 }
 0x7fd   : >> { %7078 = vmatmul.mubr.bf16.gmra.mrb[124].mxu0 %v10577_v0 }
 0x810   : >> { %v3440_v2 = vpop.xlane.xlu0 %3439 }
 0x811   : >> { %7809 = vrcp.f32 %v3440_v2 }
 0x812   : >> { %v3442_v29 = vpop.xlane.xlu1 %3441 }
 0x813   : >> { %7811 = vrcp.f32 %v3442_v29 }
 0x816   : >> { %v3446_v53 = vpop.xlane.xlu1 %3445 }
 0x817   : >> { %7813 = vrcp.f32 %v3446_v53 }
 0x81a   : >> { %v3450_v35 = vpop.xlane.xlu1 %3449 }
 0x81b   : >> { %v7810_v56 = vpop.eup %7809  ;;  %7815 = vrcp.f32 %v3450_v35 }
 0x81c   : >> { %v3487_v42 = vmul.f32 %v7810_v56, %v9312_v57  ;;  %v3444_v57 = vpop.xlane.xlu0 %3443 }
 0x81d   : >> { %v7812_v24 = vpop.eup %7811  ;;  %7817 = vrcp.f32 %v3444_v57 }
 0x81e   : >> { %v3488_v34 = vmul.f32 %v7812_v24, %v9316_v41  ;;  %v3454_v8 = vpop.xlane.xlu1 %3453 }
 0x820   : >> { %v3503_v11 = vpack.c.bf16 %v3488_v34, %v3487_v42  ;;  %v3448_v33 = vpop.xlane.xlu0 %3447 }
 0x821   : >> { %7819 = vrcp.f32 %v3448_v33  ;;  %v7814_v53 = vpop.eup %7813 }
 0x822   : >> { %7129 = vmatprep.mubr.bf16.mxu0 %v3503_v11  ;;  %v3458_v56 = vpop.xlane.xlu1 %3457  ;;  %7821 = vrcp.f32 %v3454_v8 }
 0x823   : >> { %7823 = vrcp.f32 %v3458_v56 }
 0x824   : >> { %v3452_v59 = vpop.xlane.xlu0 %3451 }
 0x825   : >> { %7825 = vrcp.f32 %v3452_v59 }
 0x828   : >> { %v3456_v42 = vpop.xlane.xlu0 %3455 }
 0x829   : >> { %7827 = vrcp.f32 %v3456_v42 }
 0x8b8   : >> { %v7067_v55 = vpop.f32.mrb[112].mxu0 }
 0x8b9   : >> { %v3135_v7 = vpop.f32.mrb[113].mxu0  ;;  %v3144_v36 = vadd.f32 %v7067_v55, %v6092_v18 }
 0x8ba   : >> { %v7068_v47 = vpop.f32.mrb[114].mxu0  ;;  %v3136_v45 = vadd.f32 %v6092_v18, %v3135_v7 }
 0x8bb   : >> { %v3147_v39 = vadd.f32 %v7068_v47, %v6092_v18  ;;  %v3138_v50 = vpop.f32.mrb[115].mxu0 }
 0x8bc   : >> { %v3139_v20 = vadd.f32 %v6092_v18, %v3138_v50  ;;  %v3462_v50 = vpop.xlane.xlu1 %3461 }
 0x8bd   : >> { %v3512_v1 = vpack.c.bf16 %v3147_v39, %v3144_v36  ;;  %7829 = vrcp.f32 %v3462_v50 }
 0x8be   : >> { %v3511_v13 = vpack.c.bf16 %v3139_v20, %v3136_v45 }
 0x8c0   : >> { %v7071_v23 = vpop.f32.mrb[116].mxu0  ;;  %7113 = vmatprep.subr.bf16.mxu0 %v3511_v13 }
 0x8c1   : >> { %v3151_v41 = vpop.f32.mrb[117].mxu0  ;;  %7114 = vmatpush3.bf16.msra.mxu0 %v3511_v13  ;;  %v3160_v27 = vadd.f32 %v7071_v23, %v6092_v18  ;;  %v7816_v13 = vpop.eup %7815 }
 0x8c2   : >> { %v7072_v4 = vpop.f32.mrb[118].mxu0  ;;  %7115 = vmatprep.subr.bf16.mxu0 %v3512_v1  ;;  %v3152_v49 = vadd.f32 %v6092_v18, %v3151_v41  ;;  %v7818_v57 = vpop.eup %7817  ;;  %v3490_v41 = vmul.f32 %v7814_v53, %v9324_v54  ;;  %v3492_v35 = vmul.f32 %v7816_v13, %v9332_v25 }
 0x8c3   : >> { %v3163_v16 = vadd.f32 %v7072_v4, %v6092_v18  ;;  %v3154_v28 = vpop.f32.mrb[119].mxu0  ;;  %v7820_v23 = vpop.eup %7819  ;;  %v7613_v4 = vld [vmem:[#allocation5 + $0x20] sm:$0xff]  }
 0x8c4   : >> { %v3155_v51 = vadd.f32 %v6092_v18, %v3154_v28  ;;  %v3491_v28 = vmul.f32 %v7820_v23, %v9328_v63  ;;  %v7822_v33 = vpop.eup %7821  ;;  %v7617_v23 = vld [vmem:[%s10477_s2 + $0x1d0] sm:$0xff]  }
 0x8c5   : >> { %v3514_v44 = vpack.c.bf16 %v3163_v16, %v3160_v27  ;;  %7116 = vmatpush3.bf16.msra.mxu0 %v3512_v1  ;;  %v3460_v1 = vpop.xlane.xlu0 %3459  ;;  %v3489_v27 = vmul.f32 %v7818_v57, %v9320_v32  ;;  %v7824_v54 = vpop.eup %7823 }
 0x8c6   : >> { %v3513_v31 = vpack.c.bf16 %v3155_v51, %v3152_v49  ;;  %v7614_v51 = vld [vmem:[#allocation5 + $0x28] sm:$0xff]   ;;  %v3496_v63 = vmul.f32 %v7824_v54, %v9348_v46 }
 0x8c7   : >> { %v3504_v49 = vpack.c.bf16 %v3490_v41, %v3489_v27  ;;  %v7618_v27 = vld [vmem:[%s10477_s2 + $0x1d8] sm:$0xff]  }
 0x8c8   : >> { %v7075_v37 = vpop.f32.mrb[120].mxu0  ;;  %7117 = vmatprep.subr.bf16.mxu0 %v3513_v31 }
 0x8c9   : >> { %v3167_v48 = vpop.f32.mrb[121].mxu0  ;;  %7118 = vmatpush3.bf16.msra.mxu0 %v3513_v31  ;;  %v3176_v19 = vadd.f32 %v7075_v37, %v6092_v18  ;;  %v3464_v16 = vpop.xlane.xlu0 %3463  ;;  %v3494_v37 = vmul.f32 %v7822_v33, %v9340_v14 }
 0x8ca   : >> { %v7076_v52 = vpop.f32.mrb[122].mxu0  ;;  %7119 = vmatprep.subr.bf16.mxu0 %v3514_v44  ;;  %v3168_v62 = vadd.f32 %v6092_v18, %v3167_v48  ;;  %v7826_v31 = vpop.eup %7825 }
 0x8cb   : >> { %v3179_v3 = vadd.f32 %v7076_v52, %v6092_v18  ;;  %v3170_v12 = vpop.f32.mrb[123].mxu0  ;;  %v7828_v25 = vpop.eup %7827  ;;  %v3493_v48 = vmul.f32 %v7826_v31, %v9336_v58  ;;  %v7620_v31 = vld [vmem:[%s10477_s2 + $0x1e8] sm:$0xff]  }
 0x8cc   : >> { %v3171_v22 = vadd.f32 %v6092_v18, %v3170_v12  ;;  %v3495_v52 = vmul.f32 %v7828_v25, %v9344_v5 }
 0x8cd   : >> { %v3516_v2 = vpack.c.bf16 %v3179_v3, %v3176_v19  ;;  %7120 = vmatpush3.bf16.msra.mxu0 %v3514_v44  ;;  %v3505_v44 = vpack.c.bf16 %v3492_v35, %v3491_v28  ;;  %v3468_v8 = vpop.xlane.xlu0 %3467  ;;  %v3506_v59 = vpack.c.bf16 %v3494_v37, %v3493_v48  ;;  %v7830_v19 = vpop.eup %7829  ;;  %v7621_v37 = vld [vmem:[%s10477_s2 + $0x1f0] sm:$0xff]  }
 0x8ce   : >> { %v3515_v29 = vpack.c.bf16 %v3171_v22, %v3168_v62  ;;  %v3507_v3 = vpack.c.bf16 %v3496_v63, %v3495_v52  ;;  %v3498_v14 = vmul.f32 %v7830_v19, %v9354_v40  ;;  %v7615_v40 = vld [vmem:[%s10477_s2 + $0x1c0] sm:$0xff]  }
 0x8d0   : >> { %v7079_v24 = vpop.f32.mrb[124].mxu0  ;;  %7121 = vmatprep.subr.bf16.mxu0 %v3515_v29 }
 0x8d1   : >> { %v3183_v34 = vpop.f32.mrb[125].mxu0  ;;  %7122 = vmatpush3.bf16.msra.mxu0 %v3515_v29  ;;  %v3192_v55 = vadd.f32 %v7079_v24, %v6092_v18 }
 0x8d2   : >> { %v7080_v11 = vpop.f32.mrb[126].mxu0  ;;  %7123 = vmatprep.subr.bf16.mxu0 %v3516_v2  ;;  %v3184_v36 = vadd.f32 %v6092_v18, %v3183_v34 }
 0x8d3   : >> { %v3195_v7 = vadd.f32 %v7080_v11, %v6092_v18  ;;  %v3186_v47 = vpop.f32.mrb[127].mxu0 }
 0x8d4   : >> { %v3187_v39 = vadd.f32 %v6092_v18, %v3186_v47  ;;  %v3466_v18 = vpop.xlane.xlu1 %3465  ;;  %v7630_v47 = vld [vmem:[%s10477_s2 + $0xf8] sm:$0xff]  }
 0x8d5   : >> { %v3518_v45 = vpack.c.bf16 %v3195_v7, %v3192_v55  ;;  %7124 = vmatpush3.bf16.msra.mxu0 %v3516_v2  ;;  %7831 = vrcp.f32 %v3466_v18  ;;  %v7628_v55 = vld [vmem:[%s10477_s2 + $0xe8] sm:$0xff]   ;;  %v7629_v7 = vld [vmem:[%s10477_s2 + $0xf0] sm:$0xff]  }
 0x8d6   : >> { %v3517_v20 = vpack.c.bf16 %v3187_v39, %v3184_v36  ;;  %7833 = vrcp.f32 %v3460_v1  ;;  %v7616_v1 = vld [vmem:[%s10477_s2 + $0x1c8] sm:$0xff]  }
 0x8d7   : >> { %7835 = vrcp.f32 %v3464_v16 }
 0x8d8   : >> { %7125 = vmatprep.subr.bf16.mxu0 %v3517_v20  ;;  %v3470_v32 = vpop.xlane.xlu1 %3469 }
 0x8d9   : >> { %7126 = vmatpush3.bf16.msra.mxu0 %v3517_v20  ;;  %7837 = vrcp.f32 %v3470_v32 }
 0x8da   : >> { %7127 = vmatprep.subr.bf16.mxu0 %v3518_v45  ;;  %7839 = vrcp.f32 %v3468_v8 }
 0x8dd   : >> { %7128 = vmatpush3.bf16.msra.mxu0 %v3518_v45 }
 0x8de   : >> { %7145 = vmatprep.subr.bf16.mxu0 %v7613_v4 }
 0x8df   : >> { %v7832_v12 = vpop.eup %7831 }
 0x8e0   : >> { %7130 = vmatmul.mubr.bf16.vlgmr.msra.gmra.mrb[128].mxu0 %v3504_v49  ;;  %v7834_v62 = vpop.eup %7833  ;;  %v3500_v46 = vmul.f32 %v7832_v12, %v9360_v26  ;;  %v7625_v26 = vld [vmem:[%s10477_s2 + $0xd0] sm:$0xff]   ;;  %v7619_v49 = vld [vmem:[%s10477_s2 + $0x1e0] sm:$0xff]  }
 0x8e1   : >> { %7133 = vmatprep.mubr.bf16.mxu0 %v3505_v44  ;;  %7146 = vmatpush3.bf16.msra.mxu0 %v7613_v4  ;;  %v7836_v22 = vpop.eup %7835  ;;  %v3497_v2 = vmul.f32 %v7834_v62, %v9351_v61  ;;  %v7623_v61 = vld [vmem:[%s10477_s2 + $0xc0] sm:$0xff]  }
 0x8e2   : >> { %7147 = vmatprep.subr.bf16.mxu0 %v7614_v51  ;;  %v3499_v58 = vmul.f32 %v7836_v22, %v9357_v9  ;;  %7165 = vmatprep.subr.bf16.mxu1 %v7623_v61  ;;  %v7624_v9 = vld [vmem:[%s10477_s2 + $0xc8] sm:$0xff]  }
 0x8e3   : >> { %v3508_v29 = vpack.c.bf16 %v3498_v14, %v3497_v2  ;;  %v7838_v5 = vpop.eup %7837  ;;  %7166 = vmatpush3.bf16.msra.mxu1 %v7623_v61 }
 0x8e4   : >> { %v3509_v56 = vpack.c.bf16 %v3500_v46, %v3499_v58  ;;  %v7840_v24 = vpop.eup %7839  ;;  %v3502_v42 = vmul.f32 %v7838_v5, %v9366_v30  ;;  %7167 = vmatprep.subr.bf16.mxu1 %v7624_v9  ;;  %v7627_v30 = vld [vmem:[%s10477_s2 + $0xe0] sm:$0xff]  }
 0x8e5   : >> { %7148 = vmatpush3.bf16.msra.mxu0 %v7614_v51  ;;  %v3501_v34 = vmul.f32 %v7840_v24, %v9363_v15  ;;  %v7626_v15 = vld [vmem:[%s10477_s2 + $0xd8] sm:$0xff]  }
 0x8e6   : >> { %7197 = vmatprep.subr.bf16.mxu0 %v7615_v40 }
 0x8e7   : >> { %v3510_v11 = vpack.c.bf16 %v3502_v42, %v3501_v34  ;;  %7168 = vmatpush3.bf16.msra.mxu1 %v7624_v9 }
 0x8e8   : >> { %7134 = vmatmul.mubr.bf16.gmra.mrb[132].mxu0 %v3506_v59  ;;  %7169 = vmatprep.subr.bf16.mxu1 %v7625_v26  ;;  %v7622_v59 = vld [vmem:[%s10477_s2 + $0x1f8] sm:$0xff]  }
 0x8e9   : >> { %7137 = vmatprep.mubr.bf16.mxu0 %v3507_v3  ;;  %v6136_v3 = vld [vmem:[%s10478_s3 + $0x3] ss:$0 sm:$0xff] }
 0x8eb   : >> { %7170 = vmatpush3.bf16.msra.mxu1 %v7625_v26 }
 0x8ec   : >> { %7171 = vmatprep.subr.bf16.mxu1 %v7626_v15 }
 0x8ef   : >> { %7172 = vmatpush3.bf16.msra.mxu1 %v7626_v15 }
 0x8f0   : >> { %7138 = vmatmul.mubr.bf16.gmra.mrb[136].mxu0 %v3508_v29  ;;  %7173 = vmatprep.subr.bf16.mxu1 %v7627_v30 }
 0x8f1   : >> { %7141 = vmatprep.mubr.bf16.mxu0 %v3509_v56 }
 0x8f3   : >> { %7174 = vmatpush3.bf16.msra.mxu1 %v7627_v30 }
 0x8f4   : >> { %7175 = vmatprep.subr.bf16.mxu1 %v7628_v55 }
 0x8f7   : >> { %7176 = vmatpush3.bf16.msra.mxu1 %v7628_v55 }
 0x8f8   : >> { %7142 = vmatmul.mubr.bf16.gmra.mrb[140].mxu0 %v3510_v11  ;;  %7177 = vmatprep.subr.bf16.mxu1 %v7629_v7 }
 0x8fb   : >> { %7178 = vmatpush3.bf16.msra.mxu1 %v7629_v7 }
 0x8fc   : >> { %7179 = vmatprep.subr.bf16.mxu1 %v7630_v47 }
 0x8ff   : >> { %7180 = vmatpush3.bf16.msra.mxu1 %v7630_v47 }
 0x902   : >> { %7182 = vmatmul.mubr.bf16.vlgmr.msra.gmra.mrb[112].mxu1 %v10571_v60 }
 0x903   : >> { %7185 = vmatprep.mubr.bf16.mxu1 %v10572_v21 }
 0x90a   : >> { %7186 = vmatmul.mubr.bf16.gmra.mrb[116].mxu1 %v10573_v38 }
 0x90b   : >> { %7189 = vmatprep.mubr.bf16.mxu1 %v10574_v10 }
 0x912   : >> { %7190 = vmatmul.mubr.bf16.gmra.mrb[120].mxu1 %v10575_v43 }
 0x913   : >> { %7193 = vmatprep.mubr.bf16.mxu1 %v10576_v17 }
 0x91a   : >> { %7194 = vmatmul.mubr.bf16.gmra.mrb[124].mxu1 %v10577_v0 }
 0x91b   : >> { %7245 = vmatprep.mubr.bf16.mxu1 %v8385_v6 }
 0x9b3   : >> { %v7131_v36 = vpop.f32.mrb[128].mxu0 }
 0x9b4   : >> { %v3553_v39 = vpop.f32.mrb[129].mxu0 }
 0x9b5   : >> { %v7132_v50 = vpop.f32.mrb[130].mxu0 }
 0x9b6   : >> { %v3617_v45 = vpack.c.bf16 %v7132_v50, %v7131_v36  ;;  %v3556_v20 = vpop.f32.mrb[131].mxu0 }
 0x9b7   : >> { %v3616_v53 = vpack.c.bf16 %v3556_v20, %v3553_v39 }
 0x9b9   : >> { %7149 = vmatprep.mubr.msk.bf16.mxu0 %vm1066_vm0, %v3616_v53 }
 0x9ba   : >> { %7150 = vmatmul.mubr.msk.bf16.vlgmr.msra.gmra.mrb[96].mxu0 %vm1066_vm0, %v3617_v45 }
 0x9bb   : >> { %v7135_v13 = vpop.f32.mrb[132].mxu0  ;;  %7198 = vmatpush3.bf16.msra.mxu0 %v7615_v40 }
 0x9bc   : >> { %v3569_v57 = vpop.f32.mrb[133].mxu0  ;;  %7199 = vmatprep.subr.bf16.mxu0 %v7616_v1 }
 0x9bd   : >> { %v7136_v41 = vpop.f32.mrb[134].mxu0 }
 0x9be   : >> { %v3619_v4 = vpack.c.bf16 %v7136_v41, %v7135_v13  ;;  %v3572_v18 = vpop.f32.mrb[135].mxu0 }
 0x9bf   : >> { %v3618_v35 = vpack.c.bf16 %v3572_v18, %v3569_v57  ;;  %7200 = vmatpush3.bf16.msra.mxu0 %v7616_v1 }
 0x9c0   : >> { %7201 = vmatprep.subr.bf16.mxu0 %v7617_v23 }
 0x9c1   : >> { %7153 = vmatprep.mubr.msk.bf16.mxu0 %vm1066_vm0, %v3618_v35 }
 0x9c2   : >> { %7154 = vmatmul.mubr.msk.bf16.gmra.mrb[100].mxu0 %vm1066_vm0, %v3619_v4 }
 0x9c3   : >> { %v7139_v16 = vpop.f32.mrb[136].mxu0  ;;  %7202 = vmatpush3.bf16.msra.mxu0 %v7617_v23 }
 0x9c4   : >> { %v3585_v28 = vpop.f32.mrb[137].mxu0  ;;  %7203 = vmatprep.subr.bf16.mxu0 %v7618_v27 }
 0x9c5   : >> { %v7140_v51 = vpop.f32.mrb[138].mxu0 }
 0x9c6   : >> { %v3621_v33 = vpack.c.bf16 %v7140_v51, %v7139_v16  ;;  %v3588_v44 = vpop.f32.mrb[139].mxu0 }
 0x9c7   : >> { %v3620_v54 = vpack.c.bf16 %v3588_v44, %v3585_v28  ;;  %7204 = vmatpush3.bf16.msra.mxu0 %v7618_v27 }
 0x9c8   : >> { %7205 = vmatprep.subr.bf16.mxu0 %v7619_v49 }
 0x9c9   : >> { %7157 = vmatprep.mubr.msk.bf16.mxu0 %vm1066_vm0, %v3620_v54 }
 0x9ca   : >> { %7158 = vmatmul.mubr.msk.bf16.gmra.mrb[104].mxu0 %vm1066_vm0, %v3621_v33 }
 0x9cb   : >> { %v7143_v25 = vpop.f32.mrb[140].mxu0  ;;  %7206 = vmatpush3.bf16.msra.mxu0 %v7619_v49  ;;  %v6162_v49 = vld [vmem:[%s10478_s3 + $0x7] ss:$0 sm:$0xff] }
 0x9cc   : >> { %v3601_v32 = vpop.f32.mrb[141].mxu0  ;;  %7207 = vmatprep.subr.bf16.mxu0 %v7620_v31 }
 0x9cd   : >> { %v7144_v63 = vpop.f32.mrb[142].mxu0 }
 0x9ce   : >> { %v3623_v8 = vpack.c.bf16 %v7144_v63, %v7143_v25  ;;  %v3604_v48 = vpop.f32.mrb[143].mxu0 }
 0x9cf   : >> { %v3622_v52 = vpack.c.bf16 %v3604_v48, %v3601_v32  ;;  %7208 = vmatpush3.bf16.msra.mxu0 %v7620_v31 }
 0x9d0   : >> { %7209 = vmatprep.subr.bf16.mxu0 %v7621_v37 }
 0x9d1   : >> { %7161 = vmatprep.mubr.msk.bf16.mxu0 %vm1066_vm0, %v3622_v52 }
 0x9d2   : >> { %7162 = vmatmul.mubr.msk.bf16.gmra.mrb[108].mxu0 %vm1066_vm0, %v3623_v8 }
 0x9d3   : >> { %7210 = vmatpush3.bf16.msra.mxu0 %v7621_v37  ;;  %7213 = vmatprep.mubr.bf16.mxu0 %v8385_v6 }
 0x9d4   : >> { %7211 = vmatprep.subr.bf16.mxu0 %v7622_v59 }
 0x9d5   : >> { %v7183_v19 = vpop.f32.mrb[112].mxu1 }
 0x9d6   : >> { %v9536_v12 = vadd.f32 %v7183_v19, %v6136_v3  ;;  %v3885_v62 = vpop.f32.mrb[113].mxu1 }
 0x9d7   : >> { %7212 = vmatpush3.bf16.msra.mxu0 %v7622_v59  ;;  %v3886_v22 = vadd.f32 %v6136_v3, %v3885_v62  ;;  %v7184_v14 = vpop.f32.mrb[114].mxu1 }
 0x9d8   : >> { %v9538_v46 = vadd.f32 %v7184_v14, %v6136_v3  ;;  %v3888_v2 = vpop.f32.mrb[115].mxu1 }
 0x9d9   : >> { %v3889_v58 = vadd.f32 %v6136_v3, %v3888_v2 }
 0x9da   : >> { %7214 = vmatmul.mubr.bf16.vlgmr.msra.gmra.mrb[144].mxu0 %v10571_v60  ;;  %v4289_v29 = vpack.c.bf16 %v9538_v46, %v9536_v12  ;;  %v7631_v12 = vld [vmem:[%s10477_s2 + $0x2c0] sm:$0xff]   ;;  %v7632_v46 = vld [vmem:[%s10477_s2 + $0x2c8] sm:$0xff]  }
 0x9db   : >> { %7217 = vmatprep.mubr.bf16.mxu0 %v10572_v21  ;;  %v4288_v5 = vpack.c.bf16 %v3889_v58, %v3886_v22  ;;  %7229 = vmatprep.subr.bf16.mxu1 %v7631_v12 }
 0x9dc   : >> { %7230 = vmatpush3.bf16.msra.mxu1 %v7631_v12 }
 0x9dd   : >> { %v7187_v56 = vpop.f32.mrb[116].mxu1  ;;  %7231 = vmatprep.subr.bf16.mxu1 %v7632_v46 }
 0x9de   : >> { %v9542_v24 = vadd.f32 %v7187_v56, %v6136_v3  ;;  %v3901_v42 = vpop.f32.mrb[117].mxu1 }
 0x9df   : >> { %v9545_v34 = vadd.f32 %v6136_v3, %v3901_v42  ;;  %v7188_v11 = vpop.f32.mrb[118].mxu1 }
 0x9e0   : >> { %v9547_v40 = vadd.f32 %v7188_v11, %v6136_v3  ;;  %v3904_v61 = vpop.f32.mrb[119].mxu1  ;;  %7232 = vmatpush3.bf16.msra.mxu1 %v7632_v46 }
 0x9e1   : >> { %v9549_v9 = vadd.f32 %v6136_v3, %v3904_v61 }
 0x9e2   : >> { %7218 = vmatmul.mubr.bf16.gmra.mrb[148].mxu0 %v10573_v38  ;;  %v4291_v26 = vpack.c.bf16 %v9547_v40, %v9542_v24  ;;  %v7634_v24 = vld [vmem:[%s10477_s2 + $0x2d8] sm:$0xff]   ;;  %v7636_v40 = vld [vmem:[%s10477_s2 + $0x2e8] sm:$0xff]  }
 0x9e3   : >> { %7221 = vmatprep.mubr.bf16.mxu0 %v10574_v10  ;;  %v4290_v15 = vpack.c.bf16 %v9549_v9, %v9545_v34  ;;  %v7635_v34 = vld [vmem:[%s10477_s2 + $0x2e0] sm:$0xff]   ;;  %v7637_v9 = vld [vmem:[%s10477_s2 + $0x2f0] sm:$0xff]  }
 0x9e5   : >> { %v7191_v30 = vpop.f32.mrb[120].mxu1 }
 0x9e6   : >> { %v9555_v55 = vadd.f32 %v7191_v30, %v6136_v3  ;;  %v3917_v7 = vpop.f32.mrb[121].mxu1 }
 0x9e7   : >> { %v9557_v47 = vadd.f32 %v6136_v3, %v3917_v7  ;;  %v7192_v36 = vpop.f32.mrb[122].mxu1 }
 0x9e8   : >> { %v9559_v39 = vadd.f32 %v7192_v36, %v6136_v3  ;;  %v3920_v50 = vpop.f32.mrb[123].mxu1 }
 0x9e9   : >> { %v9561_v45 = vadd.f32 %v6136_v3, %v3920_v50 }
 0x9ea   : >> { %7222 = vmatmul.mubr.bf16.gmra.mrb[152].mxu0 %v10575_v43  ;;  %v4293_v20 = vpack.c.bf16 %v9559_v39, %v9555_v55 }
 0x9eb   : >> { %7225 = vmatprep.mubr.bf16.mxu0 %v10576_v17  ;;  %v4292_v53 = vpack.c.bf16 %v9561_v45, %v9557_v47  ;;  %v7970_v47 = vld [vmem:[%s8577_s16] ss:$0 sm:$0xff] }
 0x9ed   : >> { %v7195_v1 = vpop.f32.mrb[124].mxu1 }
 0x9ee   : >> { %v9567_v13 = vadd.f32 %v7195_v1, %v6136_v3  ;;  %v3933_v57 = vpop.f32.mrb[125].mxu1 }
 0x9ef   : >> { %v9569_v23 = vadd.f32 %v6136_v3, %v3933_v57  ;;  %v7196_v41 = vpop.f32.mrb[126].mxu1 }
 0x9f0   : >> { %v9571_v4 = vadd.f32 %v7196_v41, %v6136_v3  ;;  %v3936_v18 = vpop.f32.mrb[127].mxu1 }
 0x9f1   : >> { %v9573_v35 = vadd.f32 %v6136_v3, %v3936_v18 }
 0x9f2   : >> { %7226 = vmatmul.mubr.bf16.gmra.mrb[156].mxu0 %v10577_v0  ;;  %v4295_v27 = vpack.c.bf16 %v9571_v4, %v9567_v13 }
 0x9f3   : >> { %7277 = vmatprep.mubr.msk.bf16.mxu0 %vm1066_vm0, %v4288_v5  ;;  %v4294_v16 = vpack.c.bf16 %v9573_v35, %v9569_v23 }
 0xaad   : >> { %v7215_v28 = vpop.f32.mrb[144].mxu0 }
 0xaae   : >> { %v4055_v51 = vpop.f32.mrb[145].mxu0  ;;  %v4064_v44 = vadd.f32 %v7215_v28, %v6162_v49 }
 0xaaf   : >> { %v7216_v33 = vpop.f32.mrb[146].mxu0  ;;  %v4056_v25 = vadd.f32 %v6162_v49, %v4055_v51 }
 0xab0   : >> { %v4067_v54 = vadd.f32 %v7216_v33, %v6162_v49  ;;  %v4058_v31 = vpop.f32.mrb[147].mxu0 }
 0xab1   : >> { %v4059_v32 = vadd.f32 %v6162_v49, %v4058_v31 }
 0xab2   : >> { %v4297_v37 = vpack.c.bf16 %v4067_v54, %v4064_v44 }
 0xab3   : >> { %v4296_v63 = vpack.c.bf16 %v4059_v32, %v4056_v25 }
 0xab4   : >> { %v4332_v5 = vsel %vm1066_vm0, %v4297_v37, 0 }
 0xab5   : >> { %7455 = vmatprep.subr.msk.bf16.mxu0 %vm1066_vm0, %v4296_v63  ;;  %v4329_v8 = vsel %vm1066_vm0, %v4296_v63, 0  ;;  %v7219_v48 = vpop.f32.mrb[148].mxu0 }
 0xab6   : >> { %7262 = vmatpush3.bf16.xpose.msra.mxu0 %v4329_v8  ;;  %v4080_v52 = vadd.f32 %v7219_v48, %v6162_v49  ;;  %v4071_v59 = vpop.f32.mrb[149].mxu0 }
 0xab7   : >> { %7456 = vmatprep.subr.msk.bf16.mxu0 %vm1066_vm0, %v4297_v37  ;;  %v4072_v19 = vadd.f32 %v6162_v49, %v4071_v59  ;;  %v7220_v3 = vpop.f32.mrb[150].mxu0 }
 0xab8   : >> { %v4083_v62 = vadd.f32 %v7220_v3, %v6162_v49  ;;  %v4074_v22 = vpop.f32.mrb[151].mxu0 }
 0xab9   : >> { %v4075_v14 = vadd.f32 %v6162_v49, %v4074_v22 }
 0xaba   : >> { %v4299_v2 = vpack.c.bf16 %v4083_v62, %v4080_v52 }
 0xabb   : >> { %v4298_v58 = vpack.c.bf16 %v4075_v14, %v4072_v19 }
 0xabc   : >> { %v4338_v63 = vsel %vm1066_vm0, %v4299_v2, 0 }
 0xabd   : >> { %v7223_v56 = vpop.f32.mrb[152].mxu0  ;;  %v4335_v41 = vsel %vm1066_vm0, %v4298_v58, 0 }
 0xabe   : >> { %7264 = vmatpush3.bf16.xpose.msra.mxu0 %v4332_v5  ;;  %v4096_v42 = vadd.f32 %v7223_v56, %v6162_v49  ;;  %v4087_v11 = vpop.f32.mrb[153].mxu0 }
 0xabf   : >> { %7457 = vmatprep.subr.msk.bf16.mxu0 %vm1066_vm0, %v4298_v58  ;;  %v4088_v61 = vadd.f32 %v6162_v49, %v4087_v11  ;;  %v7224_v30 = vpop.f32.mrb[154].mxu0 }
 0xac0   : >> { %v4099_v7 = vadd.f32 %v7224_v30, %v6162_v49  ;;  %v4090_v36 = vpop.f32.mrb[155].mxu0 }
 0xac1   : >> { %v4091_v50 = vadd.f32 %v6162_v49, %v4090_v36 }
 0xac2   : >> { %v4301_v1 = vpack.c.bf16 %v4099_v7, %v4096_v42 }
 0xac3   : >> { %v4300_v57 = vpack.c.bf16 %v4091_v50, %v4088_v61 }
 0xac4   : >> { %v4344_v48 = vsel %vm1066_vm0, %v4301_v1, 0 }
 0xac5   : >> { %v7227_v18 = vpop.f32.mrb[156].mxu0  ;;  %v4341_v8 = vsel %vm1066_vm0, %v4300_v57, 0 }
 0xac6   : >> { %7266 = vmatpush3.bf16.xpose.msra.mxu0 %v4335_v41  ;;  %v4112_v28 = vadd.f32 %v7227_v18, %v6162_v49  ;;  %v4103_v51 = vpop.f32.mrb[157].mxu0 }
 0xac7   : >> { %7458 = vmatprep.subr.msk.bf16.mxu0 %vm1066_vm0, %v4299_v2  ;;  %v4104_v33 = vadd.f32 %v6162_v49, %v4103_v51  ;;  %v7228_v44 = vpop.f32.mrb[158].mxu0 }
 0xac8   : >> { %v4115_v54 = vadd.f32 %v7228_v44, %v6162_v49  ;;  %v4106_v31 = vpop.f32.mrb[159].mxu0 }
 0xac9   : >> { %v4107_v25 = vadd.f32 %v6162_v49, %v4106_v31 }
 0xaca   : >> { %v4303_v32 = vpack.c.bf16 %v4115_v54, %v4112_v28  ;;  %v9700_v54 = vld [vmem:[%s10478_s3 + $0xb] ss:$0 sm:$0xff] }
 0xacb   : >> { %v4302_v37 = vpack.c.bf16 %v4107_v25, %v4104_v33 }
 0xacc   : >> { %v4350_v49 = vsel %vm1066_vm0, %v4303_v32, 0 }
 0xacd   : >> { %v4347_v52 = vsel %vm1066_vm0, %v4302_v37, 0 }
 0xace   : >> { %7268 = vmatpush3.bf16.xpose.msra.mxu0 %v4338_v63 }
 0xacf   : >> { %7459 = vmatprep.subr.msk.bf16.mxu0 %vm1066_vm0, %v4300_v57 }
 0xad6   : >> { %7270 = vmatpush3.bf16.xpose.msra.mxu0 %v4341_v8 }
 0xad7   : >> { %7460 = vmatprep.subr.msk.bf16.mxu0 %vm1066_vm0, %v4301_v1 }
 0xade   : >> { %7272 = vmatpush3.bf16.xpose.msra.mxu0 %v4344_v48 }
 0xadf   : >> { %7461 = vmatprep.subr.msk.bf16.mxu0 %vm1066_vm0, %v4302_v37 }
 0xae6   : >> { %7274 = vmatpush3.bf16.xpose.msra.mxu0 %v4347_v52 }
 0xae7   : >> { %7462 = vmatprep.subr.msk.bf16.mxu0 %vm1066_vm0, %v4303_v32 }
 0xaee   : >> { %7276 = vmatpush3.bf16.xpose.msra.mxu0 %v4350_v49 }
 0xaf5   : >> { %7278 = vmatmul.mubr.msk.bf16.vlgmr.msra.gmra.mrb[160].mxu0 %vm1066_vm0, %v4289_v29  ;;  %v7633_v29 = vld [vmem:[%s10477_s2 + $0x2d0] sm:$0xff]  }
 0xaf6   : >> { %7281 = vmatprep.mubr.msk.bf16.mxu0 %vm1066_vm0, %v4290_v15  ;;  %7233 = vmatprep.subr.bf16.mxu1 %v7633_v29 }
 0xaf7   : >> { %7234 = vmatpush3.bf16.msra.mxu1 %v7633_v29 }
 0xaf8   : >> { %7235 = vmatprep.subr.bf16.mxu1 %v7634_v24 }
 0xafb   : >> { %7236 = vmatpush3.bf16.msra.mxu1 %v7634_v24 }
 0xafc   : >> { %7237 = vmatprep.subr.bf16.mxu1 %v7635_v34 }
 0xafd   : >> { %7282 = vmatmul.mubr.msk.bf16.gmra.mrb[164].mxu0 %vm1066_vm0, %v4291_v26  ;;  %v7638_v26 = vld [vmem:[%s10477_s2 + $0x2f8] sm:$0xff]  }
 0xafe   : >> { %7285 = vmatprep.mubr.msk.bf16.mxu0 %vm1066_vm0, %v4292_v53 }
 0xaff   : >> { %7238 = vmatpush3.bf16.msra.mxu1 %v7635_v34 }
 0xb00   : >> { %7239 = vmatprep.subr.bf16.mxu1 %v7636_v40 }
 0xb03   : >> { %7240 = vmatpush3.bf16.msra.mxu1 %v7636_v40 }
 0xb04   : >> { %7241 = vmatprep.subr.bf16.mxu1 %v7637_v9 }
 0xb05   : >> { %7286 = vmatmul.mubr.msk.bf16.gmra.mrb[168].mxu0 %vm1066_vm0, %v4293_v20 }
 0xb06   : >> { %7289 = vmatprep.mubr.msk.bf16.mxu0 %vm1066_vm0, %v4294_v16 }
 0xb07   : >> { %7242 = vmatpush3.bf16.msra.mxu1 %v7637_v9 }
 0xb08   : >> { %7243 = vmatprep.subr.bf16.mxu1 %v7638_v26 }
 0xb0b   : >> { %7244 = vmatpush3.bf16.msra.mxu1 %v7638_v26 }
 0xb0d   : >> { %7290 = vmatmul.mubr.msk.bf16.gmra.mrb[172].mxu0 %vm1066_vm0, %v4295_v27 }
 0xb0e   : >> { %7246 = vmatmul.mubr.bf16.vlgmr.msra.gmra.mrb[128].mxu1 %v10571_v60 }
 0xb0f   : >> { %7249 = vmatprep.mubr.bf16.mxu1 %v10572_v21 }
 0xb16   : >> { %7250 = vmatmul.mubr.bf16.gmra.mrb[132].mxu1 %v10573_v38 }
 0xb17   : >> { %7253 = vmatprep.mubr.bf16.mxu1 %v10574_v10 }
 0xb1e   : >> { %7254 = vmatmul.mubr.bf16.gmra.mrb[136].mxu1 %v10575_v43 }
 0xb1f   : >> { %7257 = vmatprep.mubr.bf16.mxu1 %v10576_v17 }
 0xb26   : >> { %7258 = vmatmul.mubr.bf16.gmra.mrb[140].mxu1 %v10577_v0 }
 0xbc8   : >> { %v7279_v15 = vpop.f32.mrb[160].mxu0 }
 0xbc9   : >> { %v4386_v55 = vpop.f32.mrb[161].mxu0  ;;  %v4395_v13 = vadd.f32 %v7970_v47, %v7279_v15 }
 0xbca   : >> { %v4387_v39 = vadd.f32 %v7970_v47, %v4386_v55  ;;  %v7280_v45 = vpop.f32.mrb[162].mxu0 }
 0xbcb   : >> { %v4389_v20 = vpop.f32.mrb[163].mxu0  ;;  %v9658_v23 = vadd.f32 %v7970_v47, %v7280_v45 }
 0xbcc   : >> { %v4390_v53 = vadd.f32 %v7970_v47, %v4389_v20  ;;  %4449 = vmax.xlane.f32.xlu0 %v4387_v39 }
 0xbce   : >> { %4451 = vmax.xlane.f32.xlu1 %v4390_v53 }
 0xbd0   : >> { %v7283_v4 = vpop.f32.mrb[164].mxu0  ;;  %4453 = vmax.xlane.f32.xlu0 %v4395_v13 }
 0xbd1   : >> { %v4402_v35 = vpop.f32.mrb[165].mxu0  ;;  %v9666_v3 = vadd.f32 %v7970_v47, %v7283_v4 }
 0xbd2   : >> { %v9660_v27 = vadd.f32 %v7970_v47, %v4402_v35  ;;  %v7284_v16 = vpop.f32.mrb[166].mxu0  ;;  %4455 = vmax.xlane.f32.xlu1 %v9658_v23 }
 0xbd3   : >> { %v4405_v59 = vpop.f32.mrb[167].mxu0  ;;  %v9669_v62 = vadd.f32 %v7970_v47, %v7284_v16 }
 0xbd4   : >> { %v9663_v19 = vadd.f32 %v7970_v47, %v4405_v59  ;;  %4457 = vmax.xlane.f32.xlu0 %v9660_v27 }
 0xbd6   : >> { %4459 = vmax.xlane.f32.xlu1 %v9663_v19 }
 0xbd8   : >> { %v7287_v22 = vpop.f32.mrb[168].mxu0  ;;  %4461 = vmax.xlane.f32.xlu0 %v9666_v3 }
 0xbd9   : >> { %v4418_v14 = vpop.f32.mrb[169].mxu0  ;;  %v9678_v42 = vadd.f32 %v7970_v47, %v7287_v22 }
 0xbda   : >> { %v9672_v2 = vadd.f32 %v7970_v47, %v4418_v14  ;;  %v7288_v58 = vpop.f32.mrb[170].mxu0  ;;  %4463 = vmax.xlane.f32.xlu1 %v9669_v62 }
 0xbdb   : >> { %v4421_v5 = vpop.f32.mrb[171].mxu0  ;;  %v9681_v11 = vadd.f32 %v7970_v47, %v7288_v58 }
 0xbdc   : >> { %v9675_v56 = vadd.f32 %v7970_v47, %v4421_v5  ;;  %4465 = vmax.xlane.f32.xlu0 %v9672_v2 }
 0xbde   : >> { %4467 = vmax.xlane.f32.xlu1 %v9675_v56 }
 0xbe0   : >> { %v7291_v61 = vpop.f32.mrb[172].mxu0  ;;  %4469 = vmax.xlane.f32.xlu0 %v9678_v42 }
 0xbe1   : >> { %v4434_v30 = vpop.f32.mrb[173].mxu0  ;;  %v9690_v57 = vadd.f32 %v7970_v47, %v7291_v61  ;;  %v7247_v25 = vpop.f32.mrb[128].mxu1 }
 0xbe2   : >> { %v9684_v7 = vadd.f32 %v7970_v47, %v4434_v30  ;;  %v7292_v36 = vpop.f32.mrb[174].mxu0  ;;  %4471 = vmax.xlane.f32.xlu1 %v9681_v11  ;;  %v4234_v63 = vadd.f32 %v7247_v25, %v9700_v54  ;;  %v4225_v8 = vpop.f32.mrb[129].mxu1 }
 0xbe3   : >> { %v4437_v50 = vpop.f32.mrb[175].mxu0  ;;  %v9693_v41 = vadd.f32 %v7970_v47, %v7292_v36  ;;  %v4226_v52 = vadd.f32 %v9700_v54, %v4225_v8  ;;  %v7248_v49 = vpop.f32.mrb[130].mxu1 }
 0xbe4   : >> { %v9687_v1 = vadd.f32 %v7970_v47, %v4437_v50  ;;  %4473 = vmax.xlane.f32.xlu0 %v9684_v7  ;;  %v4237_v29 = vadd.f32 %v7248_v49, %v9700_v54  ;;  %v4228_v24 = vpop.f32.mrb[131].mxu1 }
 0xbe5   : >> { %v4229_v40 = vadd.f32 %v9700_v54, %v4228_v24 }
 0xbe6   : >> { %4475 = vmax.xlane.f32.xlu1 %v9687_v1  ;;  %v4602_v15 = vpack.c.bf16 %v4237_v29, %v4234_v63 }
 0xbe7   : >> { %v4601_v47 = vpack.c.bf16 %v4229_v40, %v4226_v52 }
 0xbe8   : >> { %4477 = vmax.xlane.f32.xlu0 %v9690_v57 }
 0xbe9   : >> { %7293 = vmatprep.subr.bf16.mxu1 %v4601_v47 }
 0xbea   : >> { %4479 = vmax.xlane.f32.xlu1 %v9693_v41  ;;  %7294 = vmatpush3.bf16.msra.mxu1 %v4601_v47 }
 0xbeb   : >> { %7295 = vmatprep.subr.bf16.mxu1 %v4602_v15 }
 0xbee   : >> { %7296 = vmatpush3.bf16.msra.mxu1 %v4602_v15 }
 0xc59   : >> { %v4450_v18 = vpop.xlane.xlu0 %4449 }
 0xc5a   : >> { %v4481_v28 = vsub.f32 %v4387_v39, %v4450_v18 }
 0xc5b   : >> { %v4452_v51 = vpop.xlane.xlu1 %4451 }
 0xc5c   : >> { %v4497_v33 = vmul.f32 1.442695, %v4481_v28  ;;  %v4482_v44 = vsub.f32 %v4390_v53, %v4452_v51  ;;  %v7251_v53 = vpop.f32.mrb[132].mxu1 }
 0xc5d   : >> { %v4454_v31 = vpop.xlane.xlu0 %4453  ;;  %v4250_v4 = vadd.f32 %v7251_v53, %v9700_v54  ;;  %v4241_v35 = vpop.f32.mrb[133].mxu1 }
 0xc5e   : >> { %7841 = vpow2.f32 %v4497_v33  ;;  %v4499_v32 = vmul.f32 1.442695, %v4482_v44  ;;  %v4483_v37 = vsub.f32 %v4395_v13, %v4454_v31  ;;  %v7252_v59 = vpop.f32.mrb[134].mxu1 }
 0xc5f   : >> { %v4456_v48 = vpop.xlane.xlu1 %4455  ;;  %v4253_v58 = vadd.f32 %v7252_v59, %v9700_v54  ;;  %v4244_v5 = vpop.f32.mrb[135].mxu1 }
 0xc60   : >> { %7843 = vpow2.f32 %v4499_v32  ;;  %v4501_v12 = vmul.f32 1.442695, %v4483_v37  ;;  %v4484_v46 = vsub.f32 %v9658_v23, %v4456_v48  ;;  %v4245_v61 = vadd.f32 %v9700_v54, %v4244_v5  ;;  %v7255_v25 = vpop.f32.mrb[136].mxu1 }
 0xc61   : >> { %v4458_v34 = vpop.xlane.xlu0 %4457  ;;  %v4604_v18 = vpack.c.bf16 %v4253_v58, %v4250_v4  ;;  %v4266_v63 = vadd.f32 %v7255_v25, %v9700_v54  ;;  %v4257_v8 = vpop.f32.mrb[137].mxu1 }
 0xc62   : >> { %7845 = vpow2.f32 %v4501_v12  ;;  %v4503_v9 = vmul.f32 1.442695, %v4484_v46  ;;  %v4485_v26 = vsub.f32 %v9660_v27, %v4458_v34  ;;  %v4242_v27 = vadd.f32 %v9700_v54, %v4241_v35  ;;  %v7256_v52 = vpop.f32.mrb[138].mxu1 }
 0xc63   : >> { %v4460_v55 = vpop.xlane.xlu1 %4459  ;;  %v4269_v29 = vadd.f32 %v7256_v52, %v9700_v54 }
 0xc64   : >> { %7847 = vpow2.f32 %v4503_v9  ;;  %v4505_v39 = vmul.f32 1.442695, %v4485_v26  ;;  %v4486_v45 = vsub.f32 %v9663_v19, %v4460_v55 }
 0xc65   : >> { %v4462_v20 = vpop.xlane.xlu0 %4461  ;;  %v4606_v15 = vpack.c.bf16 %v4269_v29, %v4266_v63 }
 0xc66   : >> { %7849 = vpow2.f32 %v4505_v39  ;;  %v4507_v13 = vmul.f32 1.442695, %v4486_v45  ;;  %v4487_v23 = vsub.f32 %v9666_v3, %v4462_v20 }
 0xc67   : >> { %v4464_v16 = vpop.xlane.xlu1 %4463 }
 0xc68   : >> { %v9712_v22 = vpop.eup %7841  ;;  %7851 = vpow2.f32 %v4507_v13  ;;  %v4509_v19 = vmul.f32 1.442695, %v4487_v23  ;;  %v4488_v14 = vsub.f32 %v9669_v62, %v4464_v16  ;;  %v4603_v62 = vpack.c.bf16 %v4245_v61, %v4242_v27 }
 0xc69   : >> { %4529 = vadd.xlane.f32.xlu0 %v9712_v22  ;;  %v4466_v3 = vpop.xlane.xlu0 %4465 }
 0xc6a   : >> { %v9718_v30 = vpop.eup %7843  ;;  %7853 = vpow2.f32 %v4509_v19  ;;  %v4511_v36 = vmul.f32 1.442695, %v4488_v14  ;;  %v4489_v50 = vsub.f32 %v9672_v2, %v4466_v3  ;;  %7297 = vmatprep.subr.bf16.mxu1 %v4603_v62 }
 0xc6b   : >> { %4531 = vadd.xlane.f32.xlu1 %v9718_v30  ;;  %v4468_v28 = vpop.xlane.xlu1 %4467  ;;  %7298 = vmatpush3.bf16.msra.mxu1 %v4603_v62 }
 0xc6c   : >> { %v9722_v51 = vpop.eup %7845  ;;  %7855 = vpow2.f32 %v4511_v36  ;;  %v4513_v33 = vmul.f32 1.442695, %v4489_v50  ;;  %v4490_v44 = vsub.f32 %v9675_v56, %v4468_v28  ;;  %v4258_v56 = vadd.f32 %v9700_v54, %v4257_v8  ;;  %7299 = vmatprep.subr.bf16.mxu1 %v4604_v18 }
 0xc6d   : >> { %4533 = vadd.xlane.f32.xlu0 %v9722_v51  ;;  %v4470_v31 = vpop.xlane.xlu0 %4469 }
 0xc6e   : >> { %v9726_v32 = vpop.eup %7847  ;;  %7857 = vpow2.f32 %v4513_v33  ;;  %v4515_v2 = vmul.f32 1.442695, %v4490_v44  ;;  %v4491_v37 = vsub.f32 %v9678_v42, %v4470_v31  ;;  %v4260_v42 = vpop.f32.mrb[139].mxu1  ;;  %v8131_v44 = vmov 0.0   ;;  %v7639_v31 = vld [vmem:[#allocation5 + $0x30] sm:$0xff]  }
 0xc6f   : >> { %4535 = vadd.xlane.f32.xlu1 %v9726_v32  ;;  %v4472_v48 = vpop.xlane.xlu1 %4471  ;;  %v4261_v34 = vadd.f32 %v9700_v54, %v4260_v42  ;;  %7300 = vmatpush3.bf16.msra.mxu1 %v4604_v18  ;;  %v7259_v53 = vpop.f32.mrb[140].mxu1 }
 0xc70   : >> { %v9732_v49 = vpop.eup %7849  ;;  %7859 = vpow2.f32 %v4515_v2  ;;  %v4517_v12 = vmul.f32 1.442695, %v4491_v37  ;;  %v4492_v46 = vsub.f32 %v9681_v11, %v4472_v48  ;;  %v4282_v4 = vadd.f32 %v7259_v53, %v9700_v54  ;;  %v4273_v35 = vpop.f32.mrb[141].mxu1  ;;  %7325 = vmatprep.subr.bf16.mxu0 %v7639_v31 }
 0xc71   : >> { %4537 = vadd.xlane.f32.xlu0 %v9732_v49  ;;  %v4474_v24 = vpop.xlane.xlu0 %4473  ;;  %v4605_v11 = vpack.c.bf16 %v4261_v34, %v4258_v56  ;;  %v7260_v27 = vpop.f32.mrb[142].mxu1  ;;  %7326 = vmatpush3.bf16.msra.mxu0 %v7639_v31 }
 0xc72   : >> { %v9738_v40 = vpop.eup %7851  ;;  %7861 = vpow2.f32 %v4517_v12  ;;  %v4519_v9 = vmul.f32 1.442695, %v4492_v46  ;;  %v4493_v26 = vsub.f32 %v9684_v7, %v4474_v24  ;;  %v4285_v58 = vadd.f32 %v7260_v27, %v9700_v54 }
 0xc73   : >> { %4539 = vadd.xlane.f32.xlu1 %v9738_v40  ;;  %v4476_v55 = vpop.xlane.xlu1 %4475  ;;  %7301 = vmatprep.subr.bf16.mxu1 %v4605_v11 }
 0xc74   : >> { %v9742_v47 = vpop.eup %7853  ;;  %7863 = vpow2.f32 %v4519_v9  ;;  %v4521_v39 = vmul.f32 1.442695, %v4493_v26  ;;  %v4494_v45 = vsub.f32 %v9687_v1, %v4476_v55  ;;  %7302 = vmatpush3.bf16.msra.mxu1 %v4605_v11  ;;  %v4274_v1 = vadd.f32 %v9700_v54, %v4273_v35 }
 0xc75   : >> { %4541 = vadd.xlane.f32.xlu0 %v9742_v47  ;;  %v4478_v20 = vpop.xlane.xlu0 %4477  ;;  %7303 = vmatprep.subr.bf16.mxu1 %v4606_v15  ;;  %v4608_v36 = vpack.c.bf16 %v4285_v58, %v4282_v4 }
 0xc76   : >> { %v9746_v13 = vpop.eup %7855  ;;  %7865 = vpow2.f32 %v4521_v39  ;;  %v4523_v7 = vmul.f32 1.442695, %v4494_v45  ;;  %v4495_v23 = vsub.f32 %v9690_v57, %v4478_v20  ;;  %v4276_v57 = vpop.f32.mrb[143].mxu1 }
 0xc77   : >> { %4543 = vadd.xlane.f32.xlu1 %v9746_v13  ;;  %v4480_v16 = vpop.xlane.xlu1 %4479  ;;  %v4277_v5 = vadd.f32 %v9700_v54, %v4276_v57 }
 0xc78   : >> { %v9752_v59 = vpop.eup %7857  ;;  %7867 = vpow2.f32 %v4523_v7  ;;  %v4525_v19 = vmul.f32 1.442695, %v4495_v23  ;;  %v4496_v14 = vsub.f32 %v9693_v41, %v4480_v16  ;;  %7304 = vmatpush3.bf16.msra.mxu1 %v4606_v15 }
 0xc79   : >> { %4545 = vadd.xlane.f32.xlu0 %v9752_v59  ;;  %v4607_v50 = vpack.c.bf16 %v4277_v5, %v4274_v1 }
 0xc7a   : >> { %v9758_v3 = vpop.eup %7859  ;;  %7869 = vpow2.f32 %v4525_v19  ;;  %v4527_v61 = vmul.f32 1.442695, %v4496_v14 }
 0xc7b   : >> { %4547 = vadd.xlane.f32.xlu1 %v9758_v3  ;;  %7305 = vmatprep.subr.bf16.mxu1 %v4607_v50 }
 0xc7c   : >> { %v9761_v18 = vpop.eup %7861  ;;  %7871 = vpow2.f32 %v4527_v61  ;;  %7306 = vmatpush3.bf16.msra.mxu1 %v4607_v50 }
 0xc7d   : >> { %4549 = vadd.xlane.f32.xlu0 %v9761_v18  ;;  %7307 = vmatprep.subr.bf16.mxu1 %v4608_v36 }
 0xc7e   : >> { %v9764_v41 = vpop.eup %7863 }
 0xc7f   : >> { %4551 = vadd.xlane.f32.xlu1 %v9764_v41 }
 0xc80   : >> { %v9767_v54 = vpop.eup %7865  ;;  %7308 = vmatpush3.bf16.msra.mxu1 %v4608_v36 }
 0xc81   : >> { %4553 = vadd.xlane.f32.xlu0 %v9767_v54  ;;  %7345 = vmatprep.subr.bf16.mxu1 %v8131_v44 }
 0xc82   : >> { %v9770_v28 = vpop.eup %7867 }
 0xc83   : >> { %4555 = vadd.xlane.f32.xlu1 %v9770_v28 }
 0xc84   : >> { %v9773_v62 = vpop.eup %7869 }
 0xc85   : >> { %4557 = vadd.xlane.f32.xlu0 %v9773_v62 }
 0xc86   : >> { %v9776_v33 = vpop.eup %7871 }
 0xc87   : >> { %4559 = vadd.xlane.f32.xlu1 %v9776_v33 }
 0xcf6   : >> { %v4530_v25 = vpop.xlane.xlu0 %4529 }
 0xcf7   : >> { %7873 = vrcp.f32 %v4530_v25 }
 0xcf8   : >> { %v4532_v2 = vpop.xlane.xlu1 %4531 }
 0xcf9   : >> { %7875 = vrcp.f32 %v4532_v2 }
 0xcfa   : >> { %v4534_v37 = vpop.xlane.xlu0 %4533 }
 0xcfb   : >> { %7877 = vrcp.f32 %v4534_v37 }
 0xcfc   : >> { %v4536_v63 = vpop.xlane.xlu1 %4535 }
 0xcfd   : >> { %7879 = vrcp.f32 %v4536_v63 }
 0xcfe   : >> { %v4538_v8 = vpop.xlane.xlu0 %4537 }
 0xcff   : >> { %7881 = vrcp.f32 %v4538_v8 }
 0xd00   : >> { %v4540_v48 = vpop.xlane.xlu1 %4539 }
 0xd01   : >> { %v7874_v56 = vpop.eup %7873  ;;  %7883 = vrcp.f32 %v4540_v48 }
 0xd02   : >> { %v4542_v52 = vpop.xlane.xlu0 %4541  ;;  %v4577_v29 = vmul.f32 %v7874_v56, %v9712_v22 }
 0xd03   : >> { %v7876_v12 = vpop.eup %7875  ;;  %7885 = vrcp.f32 %v4542_v52 }
 0xd04   : >> { %v4544_v46 = vpop.xlane.xlu1 %4543  ;;  %v4578_v42 = vmul.f32 %v7876_v12, %v9718_v30 }
 0xd05   : >> { %v7878_v24 = vpop.eup %7877  ;;  %7887 = vrcp.f32 %v4544_v46 }
 0xd06   : >> { %v4546_v34 = vpop.xlane.xlu0 %4545  ;;  %v4593_v9 = vpack.c.bf16 %v4578_v42, %v4577_v29  ;;  %v4579_v15 = vmul.f32 %v7878_v24, %v9722_v51 }
 0xd07   : >> { %v7880_v26 = vpop.eup %7879  ;;  %7889 = vrcp.f32 %v4546_v34 }
 0xd08   : >> { %v4580_v55 = vmul.f32 %v7880_v26, %v9726_v32  ;;  %v4548_v11 = vpop.xlane.xlu1 %4547  ;;  %7309 = vmatprep.mubr.bf16.mxu1 %v4593_v9 }
 0xd09   : >> { %v7882_v39 = vpop.eup %7881  ;;  %7891 = vrcp.f32 %v4548_v11 }
 0xd0a   : >> { %v4550_v45 = vpop.xlane.xlu0 %4549  ;;  %v4594_v20 = vpack.c.bf16 %v4580_v55, %v4579_v15  ;;  %v4581_v30 = vmul.f32 %v7882_v39, %v9732_v49 }
 0xd0b   : >> { %v7884_v53 = vpop.eup %7883  ;;  %7893 = vrcp.f32 %v4550_v45 }
 0xd0c   : >> { %v4552_v22 = vpop.xlane.xlu1 %4551  ;;  %7310 = vmatmul.mubr.bf16.vlgmr.msra.gmra.mrb[144].mxu1 %v4594_v20  ;;  %v4582_v7 = vmul.f32 %v7884_v53, %v9738_v40 }
 0xd0d   : >> { %v7886_v23 = vpop.eup %7885  ;;  %7895 = vrcp.f32 %v4552_v22  ;;  %7346 = vmatpush3.bf16.msra.mxu1 %v8385_v6 }
 0xd0e   : >> { %v4554_v51 = vpop.xlane.xlu0 %4553  ;;  %v4595_v32 = vpack.c.bf16 %v4582_v7, %v4581_v30  ;;  %7347 = vmatprep.subr.bf16.mxu1 %v8131_v44  ;;  %v4583_v16 = vmul.f32 %v7886_v23, %v9742_v47  ;;  %v7642_v7 = vld [vmem:[%s10483_s8 + $0x8] sm:$0xff]   ;;  %v7643_v23 = vld [vmem:[%s10483_s8 + $0x10] sm:$0xff]  }
 0xd0f   : >> { %v7888_v4 = vpop.eup %7887  ;;  %7897 = vrcp.f32 %v4554_v51  ;;  %v7644_v51 = vld [vmem:[%s10483_s8 + $0x18] sm:$0xff]  }
 0xd10   : >> { %v4556_v35 = vpop.xlane.xlu1 %4555  ;;  %7313 = vmatprep.mubr.bf16.mxu1 %v4595_v32  ;;  %v4584_v1 = vmul.f32 %v7888_v4, %v9746_v13  ;;  %v7645_v32 = vld [vmem:[%s10483_s8 + $0x20] sm:$0xff]   ;;  %v7646_v4 = vld [vmem:[%s10483_s8 + $0x28] sm:$0xff]  }
 0xd11   : >> { %v7890_v27 = vpop.eup %7889  ;;  %7899 = vrcp.f32 %v4556_v35  ;;  %7348 = vmatpush3.bf16.msra.mxu1 %v10571_v60  ;;  %v7647_v35 = vld [vmem:[%s10483_s8 + $0x30] sm:$0xff]  }
 0xd12   : >> { %v4558_v49 = vpop.xlane.xlu0 %4557  ;;  %v4596_v40 = vpack.c.bf16 %v4584_v1, %v4583_v16  ;;  %7349 = vmatprep.subr.bf16.mxu1 %v8131_v44  ;;  %v4585_v14 = vmul.f32 %v7890_v27, %v9752_v59  ;;  %v7648_v16 = vld [vmem:[%s10483_s8 + $0x38] sm:$0xff]   ;;  %v9858_v1 = vld [vmem:[%s10480_s5] ss:$0 sm:$0xff] }
 0xd13   : >> { %v7892_v6 = vpop.eup %7891  ;;  %7901 = vrcp.f32 %v4558_v49 }
 0xd14   : >> { %v4560_v19 = vpop.xlane.xlu1 %4559  ;;  %7314 = vmatmul.mubr.bf16.gmra.mrb[148].mxu1 %v4596_v40  ;;  %v4586_v58 = vmul.f32 %v7892_v6, %v9758_v3 }
 0xd15   : >> { %v7894_v57 = vpop.eup %7893  ;;  %7903 = vrcp.f32 %v4560_v19  ;;  %7350 = vmatpush3.bf16.msra.mxu1 %v10572_v21  ;;  %v9862_v19 = vld [vmem:[%s8378_s22 + $0x10] sm:$0xff] }
 0xd16   : >> { %v4597_v47 = vpack.c.bf16 %v4586_v58, %v4585_v14  ;;  %7351 = vmatprep.subr.bf16.mxu1 %v8131_v44  ;;  %v4587_v13 = vmul.f32 %v7894_v57, %v9761_v18 }
 0xd17   : >> { %v7896_v60 = vpop.eup %7895 }
 0xd18   : >> { %7317 = vmatprep.mubr.bf16.mxu1 %v4597_v47  ;;  %v4588_v5 = vmul.f32 %v7896_v60, %v9764_v41  ;;  %v9870_v60 = vld [vmem:[%s8378_s22 + $0x18] sm:$0xff] }
 0xd19   : >> { %v7898_v61 = vpop.eup %7897  ;;  %7352 = vmatpush3.bf16.msra.mxu1 %v10573_v38 }
 0xd1a   : >> { %v4598_v36 = vpack.c.bf16 %v4588_v5, %v4587_v13  ;;  %7353 = vmatprep.subr.bf16.mxu1 %v8131_v44  ;;  %v4589_v3 = vmul.f32 %v7898_v61, %v9767_v54  ;;  %v7640_v54 = vld [vmem:[#allocation5 + $0x38] sm:$0xff]  }
 0xd1b   : >> { %v7900_v59 = vpop.eup %7899  ;;  %7327 = vmatprep.subr.bf16.mxu0 %v7640_v54  ;;  %v9878_v61 = vld [vmem:[%s8378_s22] sm:$0xff] }
 0xd1c   : >> { %7318 = vmatmul.mubr.bf16.gmra.mrb[152].mxu1 %v4598_v36  ;;  %v4590_v21 = vmul.f32 %v7900_v59, %v9770_v28  ;;  %7328 = vmatpush3.bf16.msra.mxu0 %v7640_v54 }
 0xd1d   : >> { %v7902_v50 = vpop.eup %7901  ;;  %7354 = vmatpush3.bf16.msra.mxu1 %v10574_v10  ;;  %v5130_v10 = vld [vmem:[%s10484_s9] sm:$0xf] }
 0xd1e   : >> { %v4599_v31 = vpack.c.bf16 %v4590_v21, %v4589_v3  ;;  %7355 = vmatprep.subr.bf16.mxu1 %v8131_v44  ;;  %v4591_v41 = vmul.f32 %v7902_v50, %v9773_v62  ;;  %v9885_v3 = vld [vmem:[%s8378_s22 + $0x8] sm:$0xff] }
 0xd1f   : >> { %v7904_v18 = vpop.eup %7903 }
 0xd20   : >> { %7321 = vmatprep.mubr.bf16.mxu1 %v4599_v31  ;;  %v4592_v38 = vmul.f32 %v7904_v18, %v9776_v33 }
 0xd21   : >> { %7356 = vmatpush3.bf16.msra.mxu1 %v10575_v43  ;;  %v7641_v43 = vld [vmem:[%s10483_s8] sm:$0xff]  }
 0xd22   : >> { %v4600_v25 = vpack.c.bf16 %v4592_v38, %v4591_v41  ;;  %7357 = vmatprep.subr.bf16.mxu1 %v8131_v44  ;;  %v9893_v41 = vld [vmem:[%s8378_s22 + $0x30] sm:$0xff] }
 0xd24   : >> { %7322 = vmatmul.mubr.bf16.gmra.mrb[156].mxu1 %v4600_v25 }
 0xd25   : >> { %7358 = vmatpush3.bf16.msra.mxu1 %v10576_v17  ;;  %7361 = vmatprep.mubr.msk.bf16.mxu1 %vm8132_vm1, %v8131_v44 }
 0xd26   : >> { %7359 = vmatprep.subr.bf16.mxu1 %v8131_v44 }
 0xd29   : >> { %7360 = vmatpush3.bf16.msra.mxu1 %v10577_v0 }
 0xd2c   : >> { %7362 = vmatmul.mubr.bf16.vlgmr.msra.gmra.mrb[160].mxu1 %v5130_v10 }
 0xd2d   : >> { %7367 = vmatprep.mubr.msk.bf16.mxu1 %vm5228_vm2, %v7641_v43  ;;  %v9902_v43 = vld [vmem:[%s8378_s22 + $0x38] sm:$0xff] }
 0xddf   : >> { %v7311_v17 = vpop.f32.mrb[144].mxu1 }
 0xde0   : >> { %v4643_v28 = vpop.f32.mrb[145].mxu1 }
 0xde1   : >> { %v7312_v62 = vpop.f32.mrb[146].mxu1 }
 0xde2   : >> { %v4707_v33 = vpack.c.bf16 %v7312_v62, %v7311_v17  ;;  %v4646_v0 = vpop.f32.mrb[147].mxu1  ;;  %v9910_v62 = vld [vmem:[%s8378_s22 + $0x20] sm:$0xff] }
 0xde3   : >> { %v4706_v44 = vpack.c.bf16 %v4646_v0, %v4643_v28 }
 0xde5   : >> { %7329 = vmatprep.mubr.msk.bf16.mxu0 %vm1066_vm0, %v4706_v44  ;;  %v9917_v44 = vld [vmem:[%s8378_s22 + $0x28] sm:$0xff] }
 0xde6   : >> { %7330 = vmatmul.mubr.msk.bf16.vlgmr.msra.gmra.mrb[96].mxu0 %vm1066_vm0, %v4707_v33 }
 0xde7   : >> { %v7315_v2 = vpop.f32.mrb[148].mxu1 }
 0xde8   : >> { %v4659_v37 = vpop.f32.mrb[149].mxu1 }
 0xde9   : >> { %v7316_v63 = vpop.f32.mrb[150].mxu1 }
 0xdea   : >> { %v4709_v8 = vpack.c.bf16 %v7316_v63, %v7315_v2  ;;  %v4662_v48 = vpop.f32.mrb[151].mxu1 }
 0xdeb   : >> { %v4708_v56 = vpack.c.bf16 %v4662_v48, %v4659_v37  ;;  %v9925_v48 = vld [vmem:[%s8378_s22 + $0x50] sm:$0xff] }
 0xded   : >> { %7333 = vmatprep.mubr.msk.bf16.mxu0 %vm1066_vm0, %v4708_v56 }
 0xdee   : >> { %7334 = vmatmul.mubr.msk.bf16.gmra.mrb[100].mxu0 %vm1066_vm0, %v4709_v8 }
 0xdef   : >> { %v7319_v52 = vpop.f32.mrb[152].mxu1 }
 0xdf0   : >> { %v4675_v12 = vpop.f32.mrb[153].mxu1 }
 0xdf1   : >> { %v7320_v46 = vpop.f32.mrb[154].mxu1 }
 0xdf2   : >> { %v4711_v29 = vpack.c.bf16 %v7320_v46, %v7319_v52  ;;  %v4678_v42 = vpop.f32.mrb[155].mxu1 }
 0xdf3   : >> { %v4710_v24 = vpack.c.bf16 %v4678_v42, %v4675_v12 }
 0xdf5   : >> { %7337 = vmatprep.mubr.msk.bf16.mxu0 %vm1066_vm0, %v4710_v24 }
 0xdf6   : >> { %7338 = vmatmul.mubr.msk.bf16.gmra.mrb[104].mxu0 %vm1066_vm0, %v4711_v29  ;;  %v9934_v29 = vld [vmem:[%s8378_s22 + $0x58] sm:$0xff] }
 0xdf7   : >> { %v7323_v34 = vpop.f32.mrb[156].mxu1 }
 0xdf8   : >> { %v4691_v9 = vpop.f32.mrb[157].mxu1 }
 0xdf9   : >> { %v7324_v26 = vpop.f32.mrb[158].mxu1 }
 0xdfa   : >> { %v4713_v15 = vpack.c.bf16 %v7324_v26, %v7323_v34  ;;  %v4694_v55 = vpop.f32.mrb[159].mxu1  ;;  %v9942_v34 = vld [vmem:[%s8378_s22 + $0x40] sm:$0xff] }
 0xdfb   : >> { %v4712_v11 = vpack.c.bf16 %v4694_v55, %v4691_v9 }
 0xdfd   : >> { %7341 = vmatprep.mubr.msk.bf16.mxu0 %vm1066_vm0, %v4712_v11 }
 0xdfe   : >> { %7342 = vmatmul.mubr.msk.bf16.gmra.mrb[108].mxu0 %vm1066_vm0, %v4713_v15  ;;  %v9949_v15 = vld [vmem:[%s8378_s22 + $0x48] sm:$0xff] }
 0xdff   : >> { %v5165_v39 = vpop.f32.mrb[160].mxu1 }
 0xe00   : >> { %v5187_v45 = vpack.c.bf16 %v5165_v39, %v5165_v39  ;;  %v7363_v20 = vpop.f32.mrb[161].mxu1 }
 0xe01   : >> { %v5168_v53 = vpop.f32.mrb[162].mxu1  ;;  %v9957_v20 = vld [vmem:[%s8378_s22 + $0x70] sm:$0xff] }
 0xe02   : >> { %v5255_v22 = vsel %vm5253_vm3, %v5187_v45, 0  ;;  %v7364_v30 = vpop.f32.mrb[163].mxu1  ;;  %7463 = vmatprep.subr.msk.bf16.mxu1 %vm5253_vm3, %v5187_v45 }
 0xe03   : >> { %7366 = vmatpush3.bf16.msra.mxu1 %v5255_v22 }
 0xe06   : >> { %7368 = vmatmul.mubr.msk.bf16.vlgmr.msra.gmra.mrb[164].mxu1 %vm5228_vm2, %v7642_v7 }
 0xe07   : >> { %7371 = vmatprep.mubr.msk.bf16.mxu1 %vm5228_vm2, %v7643_v23  ;;  %v9966_v23 = vld [vmem:[%s8378_s22 + $0x78] sm:$0xff] }
 0xe0e   : >> { %7372 = vmatmul.mubr.msk.bf16.gmra.mrb[168].mxu1 %vm5228_vm2, %v7644_v51 }
 0xe0f   : >> { %7375 = vmatprep.mubr.msk.bf16.mxu1 %vm5228_vm2, %v7645_v32 }
 0xe16   : >> { %7376 = vmatmul.mubr.msk.bf16.gmra.mrb[172].mxu1 %vm5228_vm2, %v7646_v4  ;;  %v9974_v4 = vld [vmem:[%s8378_s22 + $0x60] sm:$0xff] }
 0xe17   : >> { %7379 = vmatprep.mubr.msk.bf16.mxu1 %vm5228_vm2, %v7647_v35 }
 0xe1e   : >> { %7380 = vmatmul.mubr.msk.bf16.gmra.mrb[176].mxu1 %vm5228_vm2, %v7648_v16 }
 0xeb9   : >> { %v7331_v27 = vpop.f32.mrb[96].mxu0 }
 0xeba   : >> { %v4877_v49 = vadd.f32 %v7331_v27, %v9858_v1  ;;  %v4789_v40 = vpop.f32.mrb[97].mxu0  ;;  %v9983_v27 = vld [vmem:[%s10485_s10] ss:$0 sm:$0xff] }
 0xebb   : >> { %v7332_v6 = vpop.f32.mrb[98].mxu0  ;;  %v4875_v58 = vadd.f32 %v9858_v1, %v4789_v40 }
 0xebc   : >> { %v9865_v14 = vadd.f32 %v9862_v19, %v4877_v49  ;;  %v4878_v57 = vadd.f32 %v7332_v6, %v9858_v1  ;;  %v4792_v47 = vpop.f32.mrb[99].mxu0  ;;  %v9986_v49 = vld [vmem:[%s8378_s22 + $0x68] sm:$0xff]  ;;  %s10580_s22 = sshll.u32 %s8123_s20, 7  ;;  %s507_s20 = sadd.s32 1, %s8123_s20  }
 0xebd   : >> { %v4876_v5 = vadd.f32 %v9858_v1, %v4792_v47  ;;  %v9881_v36 = vadd.f32 %v9878_v61, %v4875_v58  ;;  %s10334_s25 = scalar_lea.vmem %s8358_s14, %s10580_s22 [#allocation7]  ;;  %p504_p4 = scmp.ge.s32.totalorder %s507_s20, 2  }
 0xebe   : >> { %v9873_v13 = vadd.f32 %v9870_v60, %v4878_v57  ;;  %4913 = vadd.xlane.f32.xlu0 %v9865_v14  ;;  %s6246_s21 = sshll.u32 (%p504_p4), %s8227_s29, 12  ;;  %s10581_s13 = sld [smem:[#allocation30_spill]] (%p504_p4) }
 0xebf   : >> { %v9888_v21 = vadd.f32 %v9885_v3, %v4876_v5  ;;  %s5727_s19 = sshll.u32 (%p504_p4), %s8358_s14, 4  ;;  %s5713_s30 = scalar_lea.sflag (%p504_p4), [#allocation4], %s8337_s17  ;;  %s10432_s19 = int_to_ptr.vmem [resolvable:$true] %s5727_s19 }
 0xec0   : >> { %4915 = vadd.xlane.f32.xlu1 %v9873_v13  ;;  %s8133_s18 = smov (%p504_p4), [#allocation7]  }
 0xec1   : >> { %v7335_v59 = vpop.f32.mrb[100].mxu0  ;;  %s8049_s11 = sshll.u32 (%p504_p4), %s8133_s18, 4  ;;  %s8050_s11 = int_to_ptr.vmem [resolvable:$false] %s8049_s11 }
 0xec2   : >> { %v4881_v50 = vadd.f32 %v7335_v59, %v9858_v1  ;;  %4909 = vadd.xlane.f32.xlu0 %v9881_v36  ;;  %v4805_v31 = vpop.f32.mrb[101].mxu0  ;;  %s8051_s29 = scalar_lea.vmem (%p504_p4), %s8050_s11, 8192  ;;  %p8052_p3 = scmp.lt.s32.totalorder (%p504_p4), %s10432_s19, %s8050_s11 }
 0xec3   : >> { %v7336_v18 = vpop.f32.mrb[102].mxu0  ;;  %v4879_v25 = vadd.f32 %v9858_v1, %v4805_v31 }
 0xec4   : >> { %v9896_v38 = vadd.f32 %v9893_v41, %v4881_v50  ;;  %v4882_v10 = vadd.f32 %v7336_v18, %v9858_v1  ;;  %4911 = vadd.xlane.f32.xlu1 %v9888_v21  ;;  %v4808_v54 = vpop.f32.mrb[103].mxu0 }
 0xec5   : >> { %v4880_v28 = vadd.f32 %v9858_v1, %v4808_v54  ;;  %v9913_v33 = vadd.f32 %v9910_v62, %v4879_v25 }
 0xec6   : >> { %v9905_v17 = vadd.f32 %v9902_v43, %v4882_v10  ;;  %4921 = vadd.xlane.f32.xlu0 %v9896_v38 }
 0xec7   : >> { %v9920_v2 = vadd.f32 %v9917_v44, %v4880_v28 }
 0xec8   : >> { %4923 = vadd.xlane.f32.xlu1 %v9905_v17 }
 0xec9   : >> { %v7339_v0 = vpop.f32.mrb[104].mxu0 }
 0xeca   : >> { %v4885_v37 = vadd.f32 %v7339_v0, %v9858_v1  ;;  %4917 = vadd.xlane.f32.xlu0 %v9913_v33  ;;  %v4821_v63 = vpop.f32.mrb[105].mxu0 }
 0xecb   : >> { %v7340_v8 = vpop.f32.mrb[106].mxu0  ;;  %v4883_v52 = vadd.f32 %v9858_v1, %v4821_v63 }
 0xecc   : >> { %v9928_v56 = vadd.f32 %v9925_v48, %v4885_v37  ;;  %v4886_v12 = vadd.f32 %v7340_v8, %v9858_v1  ;;  %4919 = vadd.xlane.f32.xlu1 %v9920_v2  ;;  %v4824_v46 = vpop.f32.mrb[107].mxu0 }
 0xecd   : >> { %v4884_v24 = vadd.f32 %v9858_v1, %v4824_v46  ;;  %v9945_v9 = vadd.f32 %v9942_v34, %v4883_v52 }
 0xece   : >> { %v9937_v42 = vadd.f32 %v9934_v29, %v4886_v12  ;;  %4929 = vadd.xlane.f32.xlu0 %v9928_v56 }
 0xecf   : >> { %v9952_v55 = vadd.f32 %v9949_v15, %v4884_v24 }
 0xed0   : >> { %4931 = vadd.xlane.f32.xlu1 %v9937_v42 }
 0xed1   : >> { %v7343_v26 = vpop.f32.mrb[108].mxu0 }
 0xed2   : >> { %v4889_v11 = vadd.f32 %v7343_v26, %v9858_v1  ;;  %4925 = vadd.xlane.f32.xlu0 %v9945_v9  ;;  %v4837_v39 = vpop.f32.mrb[109].mxu0 }
 0xed3   : >> { %v7344_v45 = vpop.f32.mrb[110].mxu0  ;;  %v4887_v22 = vadd.f32 %v9858_v1, %v4837_v39 }
 0xed4   : >> { %v9960_v53 = vadd.f32 %v9957_v20, %v4889_v11  ;;  %v4890_v30 = vadd.f32 %v7344_v45, %v9858_v1  ;;  %4927 = vadd.xlane.f32.xlu1 %v9952_v55  ;;  %v4840_v7 = vpop.f32.mrb[111].mxu0 }
 0xed5   : >> { %v4888_v32 = vadd.f32 %v9858_v1, %v4840_v7  ;;  %v9977_v35 = vadd.f32 %v9974_v4, %v4887_v22 }
 0xed6   : >> { %v9969_v51 = vadd.f32 %v9966_v23, %v4890_v30  ;;  %4937 = vadd.xlane.f32.xlu0 %v9960_v53 }
 0xed7   : >> { %v9989_v40 = vadd.f32 %v9986_v49, %v4888_v32 }
 0xed8   : >> { %4939 = vadd.xlane.f32.xlu1 %v9969_v51 }
 0xed9   : >> { %v7369_v16 = vpop.f32.mrb[164].mxu1 }
 0xeda   : >> { %v5357_v1 = vsub.f32 %v9862_v19, %v7369_v16  ;;  %v5291_v6 = vpop.f32.mrb[165].mxu1  ;;  %4933 = vadd.xlane.f32.xlu0 %v9977_v35 }
 0xedb   : >> { %v5355_v58 = vsub.f32 %v9878_v61, %v5291_v6  ;;  %v7370_v57 = vpop.f32.mrb[166].mxu1 }
 0xedc   : >> { %v5379_v47 = vmul.f32 %v9983_v27, %v5357_v1  ;;  %v5358_v5 = vsub.f32 %v9870_v60, %v7370_v57  ;;  %v5294_v59 = vpop.f32.mrb[167].mxu1  ;;  %4935 = vadd.xlane.f32.xlu1 %v9989_v40 }
 0xedd   : >> { %v5377_v50 = vmul.f32 %v9983_v27, %v5355_v58  ;;  %v5356_v31 = vsub.f32 %v9885_v3, %v5294_v59 }
 0xede   : >> { %v5395_v18 = vadd.f32 %v7369_v16, %v5379_v47  ;;  %v5380_v25 = vmul.f32 %v9983_v27, %v5358_v5 }
 0xedf   : >> { %v5378_v10 = vmul.f32 %v9983_v27, %v5356_v31  ;;  %v5393_v28 = vadd.f32 %v5377_v50, %v5291_v6 }
 0xee0   : >> { %v10002_v54 = vadd.f32 %v9862_v19, %v5395_v18  ;;  %v5396_v0 = vadd.f32 %v7370_v57, %v5380_v25 }
 0xee1   : >> { %v7373_v37 = vpop.f32.mrb[168].mxu1  ;;  %v5394_v8 = vadd.f32 %v5378_v10, %v5294_v59  ;;  %v10011_v26 = vadd.f32 %v9878_v61, %v5393_v28 }
 0xee2   : >> { %v10005_v63 = vadd.f32 %v9870_v60, %v5396_v0  ;;  %v5361_v52 = vsub.f32 %v9893_v41, %v7373_v37  ;;  %v5307_v12 = vpop.f32.mrb[169].mxu1  ;;  %5431 = vadd.xlane.f32.xlu0 %v10002_v54 }
 0xee3   : >> { %v5359_v46 = vsub.f32 %v9910_v62, %v5307_v12  ;;  %v7374_v24 = vpop.f32.mrb[170].mxu1  ;;  %v10019_v22 = vadd.f32 %v9885_v3, %v5394_v8 }
 0xee4   : >> { %v5383_v19 = vmul.f32 %v9983_v27, %v5361_v52  ;;  %v5362_v11 = vsub.f32 %v9902_v43, %v7374_v24  ;;  %v5310_v39 = vpop.f32.mrb[171].mxu1  ;;  %5433 = vadd.xlane.f32.xlu1 %v10005_v63 }
 0xee5   : >> { %v5381_v60 = vmul.f32 %v9983_v27, %v5359_v46  ;;  %v5360_v45 = vsub.f32 %v9917_v44, %v5310_v39 }
 0xee6   : >> { %v5399_v30 = vadd.f32 %v7373_v37, %v5383_v19  ;;  %v5384_v7 = vmul.f32 %v9983_v27, %v5362_v11  ;;  %5427 = vadd.xlane.f32.xlu0 %v10011_v26 }
 0xee7   : >> { %v5382_v61 = vmul.f32 %v9983_v27, %v5360_v45  ;;  %v5397_v16 = vadd.f32 %v5381_v60, %v5307_v12 }
 0xee8   : >> { %v10025_v32 = vadd.f32 %v9893_v41, %v5399_v30  ;;  %v5400_v1 = vadd.f32 %v7374_v24, %v5384_v7  ;;  %5429 = vadd.xlane.f32.xlu1 %v10019_v22 }
 0xee9   : >> { %v7377_v6 = vpop.f32.mrb[172].mxu1  ;;  %v5398_v3 = vadd.f32 %v5382_v61, %v5310_v39  ;;  %v10035_v41 = vadd.f32 %v9910_v62, %v5397_v16 }
 0xeea   : >> { %v10029_v58 = vadd.f32 %v9902_v43, %v5400_v1  ;;  %v5365_v57 = vsub.f32 %v9925_v48, %v7377_v6  ;;  %v5323_v47 = vpop.f32.mrb[173].mxu1  ;;  %5439 = vadd.xlane.f32.xlu0 %v10025_v32 }
 0xeeb   : >> { %v5363_v5 = vsub.f32 %v9942_v34, %v5323_v47  ;;  %v7378_v59 = vpop.f32.mrb[174].mxu1  ;;  %v10043_v10 = vadd.f32 %v9917_v44, %v5398_v3 }
 0xeec   : >> { %v5387_v50 = vmul.f32 %v9983_v27, %v5365_v57  ;;  %v5366_v31 = vsub.f32 %v9934_v29, %v7378_v59  ;;  %v5326_v18 = vpop.f32.mrb[175].mxu1  ;;  %5441 = vadd.xlane.f32.xlu1 %v10029_v58 }
 0xeed   : >> { %v5385_v43 = vmul.f32 %v9983_v27, %v5363_v5  ;;  %v5364_v25 = vsub.f32 %v9949_v15, %v5326_v18 }
 0xeee   : >> { %v5403_v28 = vadd.f32 %v7377_v6, %v5387_v50  ;;  %v5388_v0 = vmul.f32 %v9983_v27, %v5366_v31  ;;  %5435 = vadd.xlane.f32.xlu0 %v10035_v41 }
 0xeef   : >> { %v5386_v62 = vmul.f32 %v9983_v27, %v5364_v25  ;;  %v5401_v8 = vadd.f32 %v5385_v43, %v5323_v47 }
 0xef0   : >> { %v10049_v37 = vadd.f32 %v9925_v48, %v5403_v28  ;;  %v5404_v52 = vadd.f32 %v7378_v59, %v5388_v0  ;;  %5437 = vadd.xlane.f32.xlu1 %v10043_v10 }
 0xef1   : >> { %v7381_v12 = vpop.f32.mrb[176].mxu1  ;;  %v5402_v44 = vadd.f32 %v5386_v62, %v5326_v18  ;;  %v10059_v48 = vadd.f32 %v9942_v34, %v5401_v8 }
 0xef2   : >> { %v10053_v46 = vadd.f32 %v9934_v29, %v5404_v52  ;;  %v5369_v24 = vsub.f32 %v9957_v20, %v7381_v12  ;;  %v5339_v19 = vpop.f32.mrb[177].mxu1  ;;  %5447 = vadd.xlane.f32.xlu0 %v10049_v37 }
 0xef3   : >> { %v5367_v11 = vsub.f32 %v9974_v4, %v5339_v19  ;;  %v7382_v39 = vpop.f32.mrb[178].mxu1  ;;  %v10067_v61 = vadd.f32 %v9949_v15, %v5402_v44 }
 0xef4   : >> { %v5370_v60 = vsub.f32 %v9966_v23, %v7382_v39  ;;  %v5342_v45 = vpop.f32.mrb[179].mxu1  ;;  %5449 = vadd.xlane.f32.xlu1 %v10053_v46  ;;  %v5391_v29 = vmul.f32 %v9983_v27, %v5369_v24 }
 0xef5   : >> { %v5389_v30 = vmul.f32 %v9983_v27, %v5367_v11  ;;  %v5368_v7 = vsub.f32 %v9986_v49, %v5342_v45 }
 0xef6   : >> { %5443 = vadd.xlane.f32.xlu0 %v10059_v48  ;;  %v5392_v34 = vmul.f32 %v9983_v27, %v5370_v60  ;;  %v5407_v6 = vadd.f32 %v7381_v12, %v5391_v29 }
 0xef7   : >> { %v5405_v16 = vadd.f32 %v5389_v30, %v5339_v19  ;;  %v5390_v1 = vmul.f32 %v9983_v27, %v5368_v7 }
 0xef8   : >> { %5445 = vadd.xlane.f32.xlu1 %v10067_v61  ;;  %v5408_v47 = vadd.f32 %v7382_v39, %v5392_v34  ;;  %v10081_v15 = vadd.f32 %v9957_v20, %v5407_v6 }
 0xef9   : >> { %v10074_v3 = vadd.f32 %v9974_v4, %v5405_v16  ;;  %v5406_v57 = vadd.f32 %v5390_v1, %v5342_v45 }
 0xefa   : >> { %v10085_v27 = vadd.f32 %v9966_v23, %v5408_v47 }
 0xefb   : >> { %v10077_v5 = vadd.f32 %v9986_v49, %v5406_v57  ;;  %5451 = vadd.xlane.f32.xlu0 %v10074_v3 }
 0xefd   : >> { %5453 = vadd.xlane.f32.xlu1 %v10077_v5 }
 0xeff   : >> { %5455 = vadd.xlane.f32.xlu0 %v10081_v15 }
 0xf01   : >> { %5457 = vadd.xlane.f32.xlu1 %v10085_v27 }
 0xf4b   : >> { %v4914_v4 = vpop.xlane.xlu0 %4913 }
 0xf4c   : >> { %v4944_v59 = vmul.f32 0.0078125, %v4914_v4 }
 0xf4d   : >> { %v4916_v50 = vpop.xlane.xlu1 %4915 }
 0xf4e   : >> { %v10090_v49 = vsub.f32 %v9865_v14, %v4944_v59  ;;  %v4945_v31 = vmul.f32 0.0078125, %v4916_v50 }
 0xf4f   : >> { %v4910_v18 = vpop.xlane.xlu0 %4909 }
 0xf50   : >> { %v10093_v20 = vsub.f32 %v9873_v13, %v4945_v31  ;;  %v4942_v43 = vmul.f32 0.0078125, %v4910_v18  ;;  %v4976_v23 = vmul.f32 %v10090_v49, %v10090_v49 }
 0xf51   : >> { %v4912_v25 = vpop.xlane.xlu1 %4911 }
 0xf52   : >> { %v10098_v28 = vsub.f32 %v9881_v36, %v4942_v43  ;;  %v4943_v0 = vmul.f32 0.0078125, %v4912_v25  ;;  %4994 = vadd.xlane.f32.xlu0 %v4976_v23  ;;  %v4977_v62 = vmul.f32 %v10093_v20, %v10093_v20 }
 0xf53   : >> { %v4922_v14 = vpop.xlane.xlu0 %4921 }
 0xf54   : >> { %v10103_v8 = vsub.f32 %v9888_v21, %v4943_v0  ;;  %v4948_v52 = vmul.f32 0.0078125, %v4922_v14  ;;  %4996 = vadd.xlane.f32.xlu1 %v4977_v62  ;;  %v4974_v13 = vmul.f32 %v10098_v28, %v10098_v28 }
 0xf55   : >> { %v4924_v12 = vpop.xlane.xlu1 %4923 }
 0xf56   : >> { %v10108_v44 = vsub.f32 %v9896_v38, %v4948_v52  ;;  %v4949_v36 = vmul.f32 0.0078125, %v4924_v12  ;;  %4990 = vadd.xlane.f32.xlu0 %v4974_v13  ;;  %v4975_v24 = vmul.f32 %v10103_v8, %v10103_v8 }
 0xf57   : >> { %v4918_v19 = vpop.xlane.xlu0 %4917 }
 0xf58   : >> { %v10113_v11 = vsub.f32 %v9905_v17, %v4949_v36  ;;  %v4946_v21 = vmul.f32 0.0078125, %v4918_v19  ;;  %4992 = vadd.xlane.f32.xlu1 %v4975_v24  ;;  %v4980_v39 = vmul.f32 %v10108_v44, %v10108_v44 }
 0xf59   : >> { %v4920_v60 = vpop.xlane.xlu1 %4919 }
 0xf5a   : >> { %v10118_v45 = vsub.f32 %v9913_v33, %v4946_v21  ;;  %v4947_v38 = vmul.f32 0.0078125, %v4920_v60  ;;  %5002 = vadd.xlane.f32.xlu0 %v4980_v39  ;;  %v4981_v29 = vmul.f32 %v10113_v11, %v10113_v11 }
 0xf5b   : >> { %v4930_v30 = vpop.xlane.xlu0 %4929 }
 0xf5c   : >> { %v10123_v7 = vsub.f32 %v9920_v2, %v4947_v38  ;;  %v4952_v17 = vmul.f32 0.0078125, %v4930_v30  ;;  %5004 = vadd.xlane.f32.xlu1 %v4981_v29  ;;  %v4978_v16 = vmul.f32 %v10118_v45, %v10118_v45 }
 0xf5d   : >> { %v4932_v34 = vpop.xlane.xlu1 %4931 }
 0xf5e   : >> { %v10128_v1 = vsub.f32 %v9928_v56, %v4952_v17  ;;  %v4953_v33 = vmul.f32 0.0078125, %v4932_v34  ;;  %4998 = vadd.xlane.f32.xlu0 %v4978_v16  ;;  %v4979_v6 = vmul.f32 %v10123_v7, %v10123_v7 }
 0xf5f   : >> { %v4926_v57 = vpop.xlane.xlu0 %4925 }
 0xf60   : >> { %v10133_v47 = vsub.f32 %v9937_v42, %v4953_v33  ;;  %v4950_v2 = vmul.f32 0.0078125, %v4926_v57  ;;  %5000 = vadd.xlane.f32.xlu1 %v4979_v6  ;;  %v4984_v4 = vmul.f32 %v10128_v1, %v10128_v1 }
 0xf61   : >> { %v4928_v59 = vpop.xlane.xlu1 %4927 }
 0xf62   : >> { %v10138_v50 = vsub.f32 %v9945_v9, %v4950_v2  ;;  %v4951_v56 = vmul.f32 0.0078125, %v4928_v59  ;;  %5010 = vadd.xlane.f32.xlu0 %v4984_v4  ;;  %v4985_v31 = vmul.f32 %v10133_v47, %v10133_v47 }
 0xf63   : >> { %v4938_v18 = vpop.xlane.xlu0 %4937 }
 0xf64   : >> { %v10143_v43 = vsub.f32 %v9952_v55, %v4951_v56  ;;  %v4956_v42 = vmul.f32 0.0078125, %v4938_v18  ;;  %5012 = vadd.xlane.f32.xlu1 %v4985_v31  ;;  %v4982_v23 = vmul.f32 %v10138_v50, %v10138_v50 }
 0xf65   : >> { %v4940_v25 = vpop.xlane.xlu1 %4939 }
 0xf66   : >> { %v10148_v0 = vsub.f32 %v9960_v53, %v4956_v42  ;;  %v4957_v9 = vmul.f32 0.0078125, %v4940_v25  ;;  %5006 = vadd.xlane.f32.xlu0 %v4982_v23  ;;  %v4983_v62 = vmul.f32 %v10143_v43, %v10143_v43 }
 0xf67   : >> { %v4934_v14 = vpop.xlane.xlu0 %4933 }
 0xf68   : >> { %v10153_v52 = vsub.f32 %v9969_v51, %v4957_v9  ;;  %v4954_v55 = vmul.f32 0.0078125, %v4934_v14  ;;  %5008 = vadd.xlane.f32.xlu1 %v4983_v62  ;;  %v4988_v13 = vmul.f32 %v10148_v0, %v10148_v0 }
 0xf69   : >> { %v4936_v12 = vpop.xlane.xlu1 %4935 }
 0xf6a   : >> { %v10158_v36 = vsub.f32 %v9977_v35, %v4954_v55  ;;  %v4955_v53 = vmul.f32 0.0078125, %v4936_v12  ;;  %5018 = vadd.xlane.f32.xlu0 %v4988_v13  ;;  %v4989_v24 = vmul.f32 %v10153_v52, %v10153_v52 }
 0xf6c   : >> { %v10163_v19 = vsub.f32 %v9989_v40, %v4955_v53  ;;  %5020 = vadd.xlane.f32.xlu1 %v4989_v24  ;;  %v4986_v51 = vmul.f32 %v10158_v36, %v10158_v36 }
 0xf6e   : >> { %5014 = vadd.xlane.f32.xlu0 %v4986_v51  ;;  %v4987_v21 = vmul.f32 %v10163_v19, %v10163_v19 }
 0xf6f   : >> { %v5432_v39 = vpop.xlane.xlu0 %5431 }
 0xf70   : >> { %v5461_v60 = vmul.f32 0.0078125, %v5432_v39  ;;  %5016 = vadd.xlane.f32.xlu1 %v4987_v21 }
 0xf71   : >> { %v5434_v35 = vpop.xlane.xlu1 %5433 }
 0xf72   : >> { %v10170_v38 = vsub.f32 %v10002_v54, %v5461_v60  ;;  %v5462_v29 = vmul.f32 0.0078125, %v5434_v35 }
 0xf73   : >> { %v5428_v30 = vpop.xlane.xlu0 %5427 }
 0xf74   : >> { %v10173_v40 = vsub.f32 %v10005_v63, %v5462_v29  ;;  %v5459_v17 = vmul.f32 0.0078125, %v5428_v30  ;;  %v5493_v16 = vmul.f32 %v10170_v38, %v10170_v38 }
 0xf75   : >> { %v5430_v34 = vpop.xlane.xlu1 %5429 }
 0xf76   : >> { %v10178_v33 = vsub.f32 %v10011_v26, %v5459_v17  ;;  %v5460_v6 = vmul.f32 0.0078125, %v5430_v34  ;;  %5511 = vadd.xlane.f32.xlu0 %v5493_v16  ;;  %v5494_v57 = vmul.f32 %v10173_v40, %v10173_v40 }
 0xf77   : >> { %v5440_v54 = vpop.xlane.xlu0 %5439 }
 0xf78   : >> { %v10183_v2 = vsub.f32 %v10019_v22, %v5460_v6  ;;  %v5465_v4 = vmul.f32 0.0078125, %v5440_v54  ;;  %5513 = vadd.xlane.f32.xlu1 %v5494_v57  ;;  %v5491_v63 = vmul.f32 %v10178_v33, %v10178_v33 }
 0xf79   : >> { %v5442_v59 = vpop.xlane.xlu1 %5441 }
 0xf7a   : >> { %v10188_v56 = vsub.f32 %v10025_v32, %v5465_v4  ;;  %v5466_v26 = vmul.f32 0.0078125, %v5442_v59  ;;  %5507 = vadd.xlane.f32.xlu0 %v5491_v63  ;;  %v5492_v31 = vmul.f32 %v10183_v2, %v10183_v2 }
 0xf7b   : >> { %v5436_v18 = vpop.xlane.xlu0 %5435 }
 0xf7c   : >> { %v10193_v42 = vsub.f32 %v10029_v58, %v5466_v26  ;;  %v5463_v22 = vmul.f32 0.0078125, %v5436_v18  ;;  %5509 = vadd.xlane.f32.xlu1 %v5492_v31  ;;  %v5497_v23 = vmul.f32 %v10188_v56, %v10188_v56 }
 0xf7d   : >> { %v5438_v25 = vpop.xlane.xlu1 %5437 }
 0xf7e   : >> { %v10198_v9 = vsub.f32 %v10035_v41, %v5463_v22  ;;  %v5464_v32 = vmul.f32 0.0078125, %v5438_v25  ;;  %5519 = vadd.xlane.f32.xlu0 %v5497_v23  ;;  %v5498_v62 = vmul.f32 %v10193_v42, %v10193_v42 }
 0xf7f   : >> { %v5448_v14 = vpop.xlane.xlu0 %5447 }
 0xf80   : >> { %v10203_v55 = vsub.f32 %v10043_v10, %v5464_v32  ;;  %v5469_v58 = vmul.f32 0.0078125, %v5448_v14  ;;  %5521 = vadd.xlane.f32.xlu1 %v5498_v62  ;;  %v5495_v13 = vmul.f32 %v10198_v9, %v10198_v9 }
 0xf81   : >> { %v5450_v12 = vpop.xlane.xlu1 %5449 }
 0xf82   : >> { %v10208_v53 = vsub.f32 %v10049_v37, %v5469_v58  ;;  %v5470_v41 = vmul.f32 0.0078125, %v5450_v12  ;;  %5515 = vadd.xlane.f32.xlu0 %v5495_v13  ;;  %v5496_v24 = vmul.f32 %v10203_v55, %v10203_v55 }
 0xf83   : >> { %v5444_v51 = vpop.xlane.xlu0 %5443 }
 0xf84   : >> { %v10213_v21 = vsub.f32 %v10053_v46, %v5470_v41  ;;  %v5467_v10 = vmul.f32 0.0078125, %v5444_v51  ;;  %5517 = vadd.xlane.f32.xlu1 %v5496_v24  ;;  %v5501_v39 = vmul.f32 %v10208_v53, %v10208_v53 }
 0xf85   : >> { %v5446_v60 = vpop.xlane.xlu1 %5445 }
 0xf86   : >> { %v10218_v35 = vsub.f32 %v10059_v48, %v5467_v10  ;;  %v5468_v37 = vmul.f32 0.0078125, %v5446_v60  ;;  %5527 = vadd.xlane.f32.xlu0 %v5501_v39  ;;  %v5502_v29 = vmul.f32 %v10213_v21, %v10213_v21 }
 0xf88   : >> { %v10223_v30 = vsub.f32 %v10067_v61, %v5468_v37  ;;  %5529 = vadd.xlane.f32.xlu1 %v5502_v29  ;;  %v5452_v46 = vpop.xlane.xlu0 %5451  ;;  %v5499_v17 = vmul.f32 %v10218_v35, %v10218_v35 }
 0xf89   : >> { %v5471_v16 = vmul.f32 0.0078125, %v5452_v46 }
 0xf8a   : >> { %v5454_v34 = vpop.xlane.xlu1 %5453  ;;  %5523 = vadd.xlane.f32.xlu0 %v5499_v17  ;;  %v5500_v48 = vmul.f32 %v10223_v30, %v10223_v30 }
 0xf8b   : >> { %v10230_v6 = vsub.f32 %v10074_v3, %v5471_v16  ;;  %v5472_v57 = vmul.f32 0.0078125, %v5454_v34 }
 0xf8c   : >> { %5525 = vadd.xlane.f32.xlu1 %v5500_v48  ;;  %v5456_v54 = vpop.xlane.xlu0 %5455 }
 0xf8d   : >> { %v10233_v61 = vsub.f32 %v10077_v5, %v5472_v57  ;;  %v5473_v4 = vmul.f32 0.0078125, %v5456_v54  ;;  %v5503_v63 = vmul.f32 %v10230_v6, %v10230_v6 }
 0xf8e   : >> { %v5458_v59 = vpop.xlane.xlu1 %5457 }
 0xf8f   : >> { %v10238_v26 = vsub.f32 %v10081_v15, %v5473_v4  ;;  %v5474_v31 = vmul.f32 0.0078125, %v5458_v59  ;;  %5531 = vadd.xlane.f32.xlu0 %v5503_v63  ;;  %v5504_v3 = vmul.f32 %v10233_v61, %v10233_v61 }
 0xf91   : >> { %v10243_v18 = vsub.f32 %v10085_v27, %v5474_v31  ;;  %5533 = vadd.xlane.f32.xlu1 %v5504_v3  ;;  %v5505_v5 = vmul.f32 %v10238_v26, %v10238_v26 }
 0xf93   : >> { %5535 = vadd.xlane.f32.xlu0 %v5505_v5  ;;  %v5506_v22 = vmul.f32 %v10243_v18, %v10243_v18 }
 0xf95   : >> { %5537 = vadd.xlane.f32.xlu1 %v5506_v22 }
 0xfdf   : >> { %v4995_v23 = vpop.xlane.xlu0 %4994 }
 0xfe0   : >> { %v5024_v32 = vmul.f32 0.0078125, %v4995_v23 }
 0xfe1   : >> { %v4997_v15 = vpop.xlane.xlu1 %4996 }
 0xfe2   : >> { %v5025_v62 = vmul.f32 0.0078125, %v4997_v15  ;;  %v5040_v12 = vadd.f32 1e-12, %v5024_v32 }
 0xfe3   : >> { %v4991_v25 = vpop.xlane.xlu0 %4990 }
 0xfe4   : >> { %v5022_v58 = vmul.f32 0.0078125, %v4991_v25  ;;  %v5041_v27 = vadd.f32 1e-12, %v5025_v62  ;;  %7905 = vrsqrt.f32 %v5040_v12  ;;  %v10253_v25 = vld [vmem:[%s10481_s6] ss:$0 sm:$0xff] }
 0xfe5   : >> { %v4993_v14 = vpop.xlane.xlu1 %4992 }
 0xfe6   : >> { %v5038_v24 = vadd.f32 1e-12, %v5022_v58  ;;  %7907 = vrsqrt.f32 %v5041_v27  ;;  %v5023_v10 = vmul.f32 0.0078125, %v4993_v14 }
 0xfe7   : >> { %v5003_v13 = vpop.xlane.xlu0 %5002 }
 0xfe8   : >> { %7909 = vrsqrt.f32 %v5038_v24  ;;  %v5028_v37 = vmul.f32 0.0078125, %v5003_v13  ;;  %v5039_v29 = vadd.f32 1e-12, %v5023_v10 }
 0xfe9   : >> { %v5005_v41 = vpop.xlane.xlu1 %5004 }
 0xfea   : >> { %v5029_v46 = vmul.f32 0.0078125, %v5005_v41  ;;  %v5044_v48 = vadd.f32 1e-12, %v5028_v37  ;;  %7911 = vrsqrt.f32 %v5039_v29 }
 0xfeb   : >> { %v4999_v51 = vpop.xlane.xlu0 %4998 }
 0xfec   : >> { %v5026_v16 = vmul.f32 0.0078125, %v4999_v51  ;;  %v5045_v54 = vadd.f32 1e-12, %v5029_v46  ;;  %7913 = vrsqrt.f32 %v5044_v48 }
 0xfed   : >> { %v5001_v39 = vpop.xlane.xlu1 %5000 }
 0xfee   : >> { %v5027_v57 = vmul.f32 0.0078125, %v5001_v39  ;;  %v7906_v63 = vpop.eup %7905  ;;  %v5042_v59 = vadd.f32 1e-12, %v5026_v16  ;;  %7915 = vrsqrt.f32 %v5045_v54 }
 0xfef   : >> { %v5011_v60 = vpop.xlane.xlu0 %5010  ;;  %v5072_v23 = vmul.f32 %v7906_v63, %v10090_v49  ;;  %v10261_v49 = vld [vmem:[%s10482_s7] ss:$0 sm:$0xff] }
 0xff0   : >> { %v7908_v31 = vpop.eup %7907  ;;  %v5032_v3 = vmul.f32 0.0078125, %v5011_v60  ;;  %v5043_v5 = vadd.f32 1e-12, %v5027_v57  ;;  %7917 = vrsqrt.f32 %v5042_v59 }
 0xff1   : >> { %v5013_v17 = vpop.xlane.xlu1 %5012  ;;  %v5073_v32 = vmul.f32 %v7908_v31, %v10093_v20  ;;  %v5094_v13 = vmul.f32 %v10253_v25, %v5072_v23 }
 0xff2   : >> { %v7910_v22 = vpop.eup %7909  ;;  %v5048_v62 = vadd.f32 1e-12, %v5032_v3  ;;  %7919 = vrsqrt.f32 %v5043_v5  ;;  %v5033_v12 = vmul.f32 0.0078125, %v5013_v17 }
 0xff3   : >> { %v5007_v34 = vpop.xlane.xlu0 %5006  ;;  %v5070_v58 = vmul.f32 %v7910_v22, %v10098_v28  ;;  %v5095_v27 = vmul.f32 %v10253_v25, %v5073_v32  ;;  %v5116_v10 = vadd.f32 %v10261_v49, %v5094_v13 }
 0xff4   : >> { %v7912_v41 = vpop.eup %7911  ;;  %7921 = vrsqrt.f32 %v5048_v62  ;;  %v5030_v24 = vmul.f32 0.0078125, %v5007_v34  ;;  %v5049_v28 = vadd.f32 1e-12, %v5033_v12 }
 0xff5   : >> { %v5009_v4 = vpop.xlane.xlu1 %5008  ;;  %v5092_v51 = vmul.f32 %v10253_v25, %v5070_v58  ;;  %v5117_v29 = vadd.f32 %v10261_v49, %v5095_v27  ;;  %v5071_v46 = vmul.f32 %v7912_v41, %v10103_v8  ;;  %v10269_v63 = vmul.f32 0.5, %v5116_v10 }
 0xff6   : >> { %v5031_v39 = vmul.f32 0.0078125, %v5009_v4  ;;  %v7914_v37 = vpop.eup %7913  ;;  %v5046_v16 = vadd.f32 1e-12, %v5030_v24  ;;  %7923 = vrsqrt.f32 %v5049_v28 }
 0xff7   : >> { %v5019_v15 = vpop.xlane.xlu0 %5018  ;;  %v5114_v54 = vadd.f32 %v10261_v49, %v5092_v51  ;;  %v5076_v59 = vmul.f32 %v7914_v37, %v10108_v44  ;;  %v10272_v5 = vmul.f32 0.5, %v5117_v29  ;;  %v5093_v22 = vmul.f32 %v10253_v25, %v5071_v46 }
 0xff8   : >> { %v7916_v17 = vpop.eup %7915  ;;  %v5047_v31 = vadd.f32 1e-12, %v5031_v39  ;;  %7925 = vrsqrt.f32 %v5046_v16  ;;  %v5036_v58 = vmul.f32 0.0078125, %v5019_v15 }
 0xff9   : >> { %v5021_v14 = vpop.xlane.xlu1 %5020  ;;  %v5077_v32 = vmul.f32 %v7916_v17, %v10113_v11  ;;  %v10277_v12 = vmul.f32 0.5, %v5114_v54  ;;  %v5098_v24 = vmul.f32 %v10253_v25, %v5076_v59  ;;  %v5115_v11 = vadd.f32 %v10261_v49, %v5093_v22 }
 0xffa   : >> { %v7918_v57 = vpop.eup %7917  ;;  %v5037_v10 = vmul.f32 0.0078125, %v5021_v14  ;;  %v5052_v29 = vadd.f32 1e-12, %v5036_v58 }
 0xffb   : >> { %v5015_v20 = vpop.xlane.xlu0 %5014  ;;  %v5074_v62 = vmul.f32 %v7918_v57, %v10118_v45  ;;  %v5099_v15 = vmul.f32 %v10253_v25, %v5077_v32  ;;  %v5120_v14 = vadd.f32 %v10261_v49, %v5098_v24 }
 0xffc   : >> { %v7920_v3 = vpop.eup %7919  ;;  %v5034_v46 = vmul.f32 0.0078125, %v5015_v20  ;;  %v5053_v54 = vadd.f32 1e-12, %v5037_v10  ;;  %v10299_v10 = vld [vmem:[%s10578_s23] ss:$0 sm:$0xff]  ;;  %s10429_s23 = scalar_lea.hbm (%p504_p4), %s10581_s13, %s6246_s21 }
 0xffd   : >> { %v5017_v60 = vpop.xlane.xlu1 %5016  ;;  %v5075_v51 = vmul.f32 %v7920_v3, %v10123_v7  ;;  %v5096_v37 = vmul.f32 %v10253_v25, %v5074_v62  ;;  %v5121_v20 = vadd.f32 %v10261_v49, %v5099_v15 }
 0xffe   : >> { %v7922_v41 = vpop.eup %7921 }
 0xfff   : >> { %v5080_v16 = vmul.f32 %v7922_v41, %v10128_v1  ;;  %v5097_v57 = vmul.f32 %v10253_v25, %v5075_v51  ;;  %v5118_v1 = vadd.f32 %v10261_v49, %v5096_v37 }
0x1000   : >> { %v7924_v22 = vpop.eup %7923 }
0x1001   : >> { %v5102_v32 = vmul.f32 %v10253_v25, %v5080_v16  ;;  %v5081_v51 = vmul.f32 %v7924_v22, %v10133_v47  ;;  %v10303_v15 = vmul.f32 0.5, %v5118_v1 }
0x1003   : >> { %v5512_v48 = vpop.xlane.xlu0 %5511  ;;  %v5124_v47 = vadd.f32 %v10261_v49, %v5102_v32 }
0x1004   : >> { %v5541_v34 = vmul.f32 0.0078125, %v5512_v48 }
0x1005   : >> { %v5514_v4 = vpop.xlane.xlu1 %5513 }
0x1006   : >> { %v5557_v8 = vadd.f32 1e-12, %v5541_v34  ;;  %v5542_v23 = vmul.f32 0.0078125, %v5514_v4  ;;  %v5035_v34 = vmul.f32 0.0078125, %v5017_v60  ;;  %v7926_v60 = vpop.eup %7925 }
0x1007   : >> { %v5508_v13 = vpop.xlane.xlu0 %5507 }
0x1008   : >> { %7927 = vrsqrt.f32 %v5557_v8  ;;  %v5558_v44 = vadd.f32 1e-12, %v5542_v23  ;;  %v5539_v27 = vmul.f32 0.0078125, %v5508_v13  ;;  %v5050_v8 = vadd.f32 1e-12, %v5034_v46 }
0x1009   : >> { %7929 = vrsqrt.f32 %v5047_v31  ;;  %v5510_v28 = vpop.xlane.xlu1 %5509  ;;  %v10287_v31 = vmul.f32 0.5, %v5115_v11  ;;  %v10292_v13 = vmul.f32 0.5, %v5120_v14 }
0x100a   : >> { %7931 = vrsqrt.f32 %v5558_v44  ;;  %v5555_v45 = vadd.f32 1e-12, %v5539_v27  ;;  %v5540_v39 = vmul.f32 0.0078125, %v5510_v28  ;;  %v5119_v44 = vadd.f32 %v10261_v49, %v5097_v57 }
0x100b   : >> { %v5520_v17 = vpop.xlane.xlu0 %5519  ;;  %v5051_v27 = vadd.f32 1e-12, %v5035_v34  ;;  %v5103_v34 = vmul.f32 %v10253_v25, %v5081_v51 }
0x100c   : >> { %7933 = vrsqrt.f32 %v5555_v45  ;;  %v5556_v48 = vadd.f32 1e-12, %v5540_v39  ;;  %v5545_v7 = vmul.f32 0.0078125, %v5520_v17  ;;  %v10301_v39 = vmul.f32 0.5, %v5121_v20  ;;  %v10310_v17 = vld [vmem:[%s10579_s0] ss:$0 sm:$0xff] }
0x100d   : >> { %v5522_v59 = vpop.xlane.xlu1 %5521  ;;  %s8045_s0 = scalar_lea.vmem (%p504_p4), %s10432_s19, 4096 }
0x100e   : >> { %7935 = vrsqrt.f32 %v5556_v48  ;;  %v5561_v4 = vadd.f32 1e-12, %v5545_v7  ;;  %v5546_v3 = vmul.f32 0.0078125, %v5522_v59  ;;  %v10312_v7 = vmul.f32 0.5, %v5119_v44  ;;  %p8046_p6 = scmp.ne.s32.totalorder (%p504_p4), %s10432_s19, %s8045_s0  ;;  %p8053_p7 = scmp.lt.s32.totalorder (%p504_p4), %s8051_s29, %s8045_s0 }
0x100f   : >> { %7937 = vrsqrt.f32 %v5052_v29  ;;  %v5516_v23 = vpop.xlane.xlu0 %5515 }
0x1010   : >> { %7939 = vrsqrt.f32 %v5561_v4  ;;  %v5562_v62 = vadd.f32 1e-12, %v5546_v3  ;;  %v5543_v58 = vmul.f32 0.0078125, %v5516_v23  ;;  %v5078_v3 = vmul.f32 %v7926_v60, %v10138_v50  ;;  %p8047_p8 = pnand (%p504_p4), %p8046_p6, %p8289_p12  ;;  %p8054_p9 = por (%p504_p4), %p8053_p7, %p8052_p3 }
0x1011   : >> { %7941 = vrsqrt.f32 %v5053_v54  ;;  %v5518_v41 = vpop.xlane.xlu1 %5517 }
0x1012   : >> { %v7928_v24 = vpop.eup %7927  ;;  %7943 = vrsqrt.f32 %v5562_v62  ;;  %v5559_v28 = vadd.f32 1e-12, %v5543_v58  ;;  %v5544_v11 = vmul.f32 0.0078125, %v5518_v41  ;;  %p8048_p13 = pneg (%p504_p4), %p8047_p8 }
0x1013   : >> { %v7930_v45 = vpop.eup %7929  ;;  %7945 = vrsqrt.f32 %v5050_v8  ;;  %v5589_v37 = vmul.f32 %v7928_v24, %v10170_v38  ;;  %v5528_v29 = vpop.xlane.xlu0 %5527 }
0x1014   : >> { %v7932_v46 = vpop.eup %7931  ;;  %7947 = vrsqrt.f32 %v5559_v28  ;;  %v5560_v16 = vadd.f32 1e-12, %v5544_v11  ;;  %v5549_v48 = vmul.f32 0.0078125, %v5528_v29  ;;  %p8055_p11 = pnand (%p504_p4), %p8054_p9, %p8048_p13 }
0x1015   : >> { %7949 = vrsqrt.f32 %v5051_v27  ;;  %v5611_v14 = vmul.f32 %v10299_v10, %v5589_v37  ;;  %v5590_v57 = vmul.f32 %v7932_v46, %v10173_v40  ;;  %v5530_v38 = vpop.xlane.xlu1 %5529  ;;  %v10321_v40 = vmul.f32 0.5, %v5124_v47 }
0x1016   : >> { %v7934_v54 = vpop.eup %7933  ;;  %7951 = vrsqrt.f32 %v5560_v16  ;;  %v5565_v59 = vadd.f32 1e-12, %v5549_v48  ;;  %v5550_v4 = vmul.f32 0.0078125, %v5530_v38  ;;  %v5079_v16 = vmul.f32 %v7930_v45, %v10143_v43 }
0x1017   : >> { %v5633_v22 = vadd.f32 %v10310_v17, %v5611_v14  ;;  %v5612_v20 = vmul.f32 %v10299_v10, %v5590_v57  ;;  %v5587_v1 = vmul.f32 %v7934_v54, %v10178_v33  ;;  %v5524_v8 = vpop.xlane.xlu0 %5523  ;;  %v10329_v33 = vadd.f32 %v10261_v49, %v5103_v34 }
0x1018   : >> { %v7936_v23 = vpop.eup %7935  ;;  %7953 = vrsqrt.f32 %v5565_v59  ;;  %v5566_v32 = vadd.f32 1e-12, %v5550_v4  ;;  %v5547_v62 = vmul.f32 0.0078125, %v5524_v8 }
0x1019   : >> { %v10323_v58 = vpop.eup %7937  ;;  %v5649_v44 = vmul.f32 0.5, %v5633_v22  ;;  %v5634_v50 = vadd.f32 %v10310_v17, %v5612_v20  ;;  %v5609_v60 = vmul.f32 %v10299_v10, %v5587_v1  ;;  %v5588_v27 = vmul.f32 %v7936_v23, %v10183_v2  ;;  %v5526_v41 = vpop.xlane.xlu1 %5525 }
0x101a   : >> { %v7940_v24 = vpop.eup %7939  ;;  %7955 = vrsqrt.f32 %v5566_v32  ;;  %v5563_v51 = vadd.f32 1e-12, %v5547_v62  ;;  %v5548_v28 = vmul.f32 0.0078125, %v5526_v41  ;;  %v5100_v22 = vmul.f32 %v10253_v25, %v5078_v3 }
0x101b   : >> { %v10336_v11 = vpop.eup %7941  ;;  %v5681_v37 = vadd.f32 %v10269_v63, %v5649_v44  ;;  %v5650_v29 = vmul.f32 0.5, %v5634_v50  ;;  %v5631_v46 = vadd.f32 %v10310_v17, %v5609_v60  ;;  %v5610_v2 = vmul.f32 %v10299_v10, %v5588_v27 }
0x101c   : >> { %v7944_v47 = vpop.eup %7943  ;;  %v5593_v48 = vmul.f32 %v7940_v24, %v10188_v56  ;;  %7957 = vrsqrt.f32 %v5563_v51  ;;  %v5564_v14 = vadd.f32 1e-12, %v5548_v28  ;;  %v5532_v57 = vpop.xlane.xlu0 %5531 }
0x101d   : >> { %v7946_v38 = vpop.eup %7945  ;;  %5698 = vst [vmem:[%s10334_s25 + $0x10] sm:$0xff] %v5681_v37  ;;  %v5682_v54 = vadd.f32 %v10272_v5, %v5650_v29  ;;  %v5647_v34 = vmul.f32 0.5, %v5631_v46  ;;  %v5632_v63 = vadd.f32 %v10310_v17, %v5610_v2  ;;  %v5594_v59 = vmul.f32 %v7944_v47, %v10193_v42 }
0x101e   : >> { %v7948_v4 = vpop.eup %7947  ;;  %v5615_v43 = vmul.f32 %v10299_v10, %v5593_v48  ;;  %7959 = vrsqrt.f32 %v5564_v14  ;;  %v5551_v56 = vmul.f32 0.0078125, %v5532_v57  ;;  %v5534_v45 = vpop.xlane.xlu1 %5533  ;;  %v5101_v42 = vmul.f32 %v10253_v25, %v5079_v16 }
0x101f   : >> { %v7950_v20 = vpop.eup %7949  ;;  %5699 = vst [vmem:[%s10334_s25 + $0x18] sm:$0xff] %v5682_v54  ;;  %v5679_v1 = vadd.f32 %v10277_v12, %v5647_v34  ;;  %v5648_v8 = vmul.f32 0.5, %v5632_v63  ;;  %v5616_v5 = vmul.f32 %v10299_v10, %v5594_v59  ;;  %v5591_v23 = vmul.f32 %v7948_v4, %v10198_v9 }
0x1020   : >> { %v7952_v32 = vpop.eup %7951  ;;  %v5637_v3 = vadd.f32 %v10310_v17, %v5615_v43  ;;  %v5567_v62 = vadd.f32 1e-12, %v5551_v56  ;;  %v5552_v44 = vmul.f32 0.0078125, %v5534_v45  ;;  %v5536_v50 = vpop.xlane.xlu0 %5535  ;;  %v5082_v59 = vmul.f32 %v7946_v38, %v10158_v36 }
0x1021   : >> { %5696 = vst [vmem:[%s10334_s25] sm:$0xff] %v5679_v1  ;;  %v5680_v60 = vadd.f32 %v10287_v31, %v5648_v8  ;;  %v5638_v27 = vadd.f32 %v10310_v17, %v5616_v5  ;;  %v5613_v12 = vmul.f32 %v10299_v10, %v5591_v23  ;;  %v5592_v41 = vmul.f32 %v7952_v32, %v10203_v55 }
0x1022   : >> { %v7954_v24 = vpop.eup %7953  ;;  %v5653_v9 = vmul.f32 0.5, %v5637_v3  ;;  %7961 = vrsqrt.f32 %v5567_v62  ;;  %v5568_v51 = vadd.f32 1e-12, %v5552_v44  ;;  %v5553_v28 = vmul.f32 0.0078125, %v5536_v50  ;;  %v5538_v37 = vpop.xlane.xlu1 %5537 }
0x1023   : >> { %5697 = vst [vmem:[%s10334_s25 + $0x8] sm:$0xff] %v5680_v60  ;;  %v5654_v29 = vmul.f32 0.5, %v5638_v27  ;;  %v5635_v46 = vadd.f32 %v10310_v17, %v5613_v12  ;;  %v5614_v2 = vmul.f32 %v10299_v10, %v5592_v41  ;;  %v5597_v31 = vmul.f32 %v7954_v24, %v10208_v53 }
0x1024   : >> { %v7956_v47 = vpop.eup %7955  ;;  %v5685_v16 = vadd.f32 %v10292_v13, %v5653_v9  ;;  %7963 = vrsqrt.f32 %v5568_v51  ;;  %v5569_v55 = vadd.f32 1e-12, %v5553_v28  ;;  %v5554_v48 = vmul.f32 0.0078125, %v5538_v37 }
0x1025   : >> { %v5686_v14 = vadd.f32 %v10301_v39, %v5654_v29  ;;  %v5651_v57 = vmul.f32 0.5, %v5635_v46  ;;  %v5636_v54 = vadd.f32 %v10310_v17, %v5614_v2  ;;  %v5619_v34 = vmul.f32 %v10299_v10, %v5597_v31 }
0x1026   : >> { %v7958_v63 = vpop.eup %7957  ;;  %5702 = vst [vmem:[%s10334_s25 + $0x30] sm:$0xff] %v5685_v16  ;;  %v5598_v53 = vmul.f32 %v7956_v47, %v10213_v21  ;;  %7965 = vrsqrt.f32 %v5569_v55  ;;  %v5570_v4 = vadd.f32 1e-12, %v5554_v48  ;;  %v5122_v1 = vadd.f32 %v10261_v49, %v5100_v22 }
0x1027   : >> { %5703 = vst [vmem:[%s10334_s25 + $0x38] sm:$0xff] %v5686_v14  ;;  %v5683_v13 = vadd.f32 %v10303_v15, %v5651_v57  ;;  %v5652_v43 = vmul.f32 0.5, %v5636_v54  ;;  %v5641_v39 = vadd.f32 %v10310_v17, %v5619_v34  ;;  %v5595_v56 = vmul.f32 %v7958_v63, %v10218_v35 }
0x1028   : >> { %v7960_v45 = vpop.eup %7959  ;;  %v5083_v8 = vmul.f32 %v7950_v20, %v10163_v19  ;;  %v5620_v36 = vmul.f32 %v10299_v10, %v5598_v53  ;;  %7967 = vrsqrt.f32 %v5570_v4  ;;  %v5123_v23 = vadd.f32 %v10261_v49, %v5101_v42 }
0x1029   : >> { %5700 = vst [vmem:[%s10334_s25 + $0x20] sm:$0xff] %v5683_v13  ;;  %v5684_v21 = vadd.f32 %v10312_v7, %v5652_v43  ;;  %v5657_v38 = vmul.f32 0.5, %v5641_v39  ;;  %v5617_v15 = vmul.f32 %v10299_v10, %v5595_v56  ;;  %v5596_v5 = vmul.f32 %v7960_v45, %v10223_v30 }
0x102a   : >> { %v5084_v35 = vmul.f32 %v10323_v58, %v10148_v0  ;;  %v5104_v22 = vmul.f32 %v10253_v25, %v5082_v59  ;;  %v5642_v19 = vadd.f32 %v10310_v17, %v5620_v36  ;;  %v5674_v62 = vmul.f32 0.5, %v10329_v33 }
0x102b   : >> { %5701 = vst [vmem:[%s10334_s25 + $0x28] sm:$0xff] %v5684_v21  ;;  %v5689_v20 = vadd.f32 %v10321_v40, %v5657_v38  ;;  %v5639_v7 = vadd.f32 %v10310_v17, %v5617_v15  ;;  %v5618_v32 = vmul.f32 %v10299_v10, %v5596_v5  ;;  %v5085_v30 = vmul.f32 %v10336_v11, %v10153_v52 }
0x102c   : >> { %v7962_v3 = vpop.eup %7961  ;;  %v5105_v42 = vmul.f32 %v10253_v25, %v5083_v8  ;;  %v5658_v0 = vmul.f32 0.5, %v5642_v19  ;;  %v5671_v58 = vmul.f32 0.5, %v5122_v1  ;;  %v5672_v27 = vmul.f32 0.5, %v5123_v23 }
0x102d   : >> { %5706 = vst [vmem:[%s10334_s25 + $0x50] sm:$0xff] %v5689_v20  ;;  %v5655_v44 = vmul.f32 0.5, %v5639_v7  ;;  %v5640_v40 = vadd.f32 %v10310_v17, %v5618_v32  ;;  %v5599_v50 = vmul.f32 %v7962_v3, %v10230_v6  ;;  %v5106_v12 = vmul.f32 %v10253_v25, %v5084_v35 }
0x102e   : >> { %v7964_v60 = vpop.eup %7963  ;;  %v5126_v33 = vadd.f32 %v10261_v49, %v5104_v22  ;;  %v5690_v41 = vadd.f32 %v5674_v62, %v5658_v0  ;;  %v5107_v28 = vmul.f32 %v10253_v25, %v5085_v30  ;;  %v5127_v37 = vadd.f32 %v10261_v49, %v5105_v42 }
0x102f   : >> { %v5687_v52 = vadd.f32 %v5671_v58, %v5655_v44  ;;  %v5656_v11 = vmul.f32 0.5, %v5640_v40  ;;  %v5621_v24 = vmul.f32 %v10299_v10, %v5599_v50  ;;  %v5600_v9 = vmul.f32 %v7964_v60, %v10233_v61 }
0x1030   : >> { %v7966_v51 = vpop.eup %7965  ;;  %5707 = vst [vmem:[%s10334_s25 + $0x58] sm:$0xff] %v5690_v41  ;;  %v5128_v47 = vadd.f32 %v10261_v49, %v5106_v12  ;;  %v5675_v16 = vmul.f32 0.5, %v5126_v33  ;;  %v5129_v14 = vadd.f32 %v10261_v49, %v5107_v28  ;;  %v5676_v57 = vmul.f32 0.5, %v5127_v37 }
0x1031   : >> { %5704 = vst [vmem:[%s10334_s25 + $0x40] sm:$0xff] %v5687_v52  ;;  %v5688_v6 = vadd.f32 %v5672_v27, %v5656_v11  ;;  %v5643_v29 = vadd.f32 %v10310_v17, %v5621_v24  ;;  %v5622_v46 = vmul.f32 %v10299_v10, %v5600_v9  ;;  %v5601_v2 = vmul.f32 %v7966_v51, %v10238_v26 }
0x1032   : >> { %v7968_v31 = vpop.eup %7967  ;;  %v5677_v59 = vmul.f32 0.5, %v5128_v47  ;;  %v5678_v43 = vmul.f32 0.5, %v5129_v14 }
0x1033   : >> { %5705 = vst [vmem:[%s10334_s25 + $0x48] sm:$0xff] %v5688_v6  ;;  %v5659_v61 = vmul.f32 0.5, %v5643_v29  ;;  %v5644_v25 = vadd.f32 %v10310_v17, %v5622_v46  ;;  %v5623_v55 = vmul.f32 %v10299_v10, %v5601_v2  ;;  %v5602_v48 = vmul.f32 %v7968_v31, %v10243_v18 }
0x1035   : >> { %v5691_v26 = vadd.f32 %v5675_v16, %v5659_v61  ;;  %v5660_v54 = vmul.f32 0.5, %v5644_v25  ;;  %v5645_v34 = vadd.f32 %v10310_v17, %v5623_v55  ;;  %v5624_v63 = vmul.f32 %v10299_v10, %v5602_v48 }
0x1037   : >> { %5708 = vst [vmem:[%s10334_s25 + $0x60] sm:$0xff] %v5691_v26  ;;  %v5692_v53 = vadd.f32 %v5676_v57, %v5660_v54  ;;  %v5661_v4 = vmul.f32 0.5, %v5645_v34  ;;  %v5646_v13 = vadd.f32 %v10310_v17, %v5624_v63  ;;  %506 = sbr.rel (!%p504_p4) target bundleno = 99 (0x63), region = 159 }
0x1039   : >> { %5709 = vst [vmem:[%s10334_s25 + $0x68] sm:$0xff] %v5692_v53  ;;  %v5693_v18 = vadd.f32 %v5677_v59, %v5661_v4  ;;  %v5662_v39 = vmul.f32 0.5, %v5646_v13 }
0x103b   : >> { %5710 = vst [vmem:[%s10334_s25 + $0x70] sm:$0xff] %v5693_v18  ;;  %v5694_v49 = vadd.f32 %v5678_v43, %v5662_v39 }
0x103d   : >> { %5711 = vst [vmem:[%s10334_s25 + $0x78] sm:$0xff] %v5694_v49 }
0x103e   : > { %8058 = shalt.err (!%p8055_p11)
}
0x103f   : > { %s8059_s14 = scalar_lea.hbm %s10429_s23, 4096  ;;  %s8063_s25 = scalar_lea.hbm %s10581_s13, 16384 }
0x1040   : > { %p8060_p0 = scmp.ne.s32.totalorder %s10429_s23, %s8059_s14  ;;  %p8064_p2 = scmp.lt.u32.totalorder %s10429_s23, %s10581_s13 }
0x1041   : > { %p8065_p1 = scmp.lt.u32.totalorder %s8063_s25, %s8059_s14  ;;  %p8067_p6 = scmp.lt.u32.totalorder %s8059_s14, %s10429_s23 }
0x1042   : > { %p8061_p5 = pnand %p8060_p0, %p8289_p12 }
0x1043   : > { %p8066_p4 = por %p8065_p1, %p8064_p2 }
0x1044   : > { %p8062_p10 = pneg %p8061_p5 }
0x1045   : > { %p8068_p8 = por %p8067_p6, %p8066_p4 }
0x1047   : > { %p8069_p13 = pnand %p8068_p8, %p8062_p10 }
0x1049   : > { %8072 = shalt.err (!%p8069_p13)
}
0x104a   : > { %s8134_s16 = smov 128   ;;  %s8135_s0 = smov 8  }
0x104b   : > { %7470 = dma.vmem_to_hbm [thread:$0]  (%p8289_p12), %s10432_s19, 4096, %s10429_s23, %s5713_s30, %s8134_s16, %s8134_s16, %s8135_s0  }
0x104c PF: > { %s10582_s18 = sld [smem:[#allocation11_spill]]  ;;  %s10583_s11 = sld [smem:[#allocation12_spill]] }
0x104d   : > { %p7487_p3 = scmp.ge.s32.totalorder %s8119_s28, 2 }
0x1052   : > { %s5742_s29 = sand.u32 1, %s10582_s18   ;;  %p10584_p7 = scmp.ne.s32.totalorder %s10583_s11, 0 }
0x1053   : > { %s5743_s14 = scalar_lea.sflag [#allocation4], %s5742_s29 }
0x1054   : > { %p7481_p9 = pnand %p7487_p3, %p10584_p7 }
0x1056   : > { %8102 = dma.done.wait (!%p7481_p9), %s5743_s14, 4096  }
0x1057   : > { %8104 = vsyncadd (!%p7481_p9), %s5743_s14, 4294963200  ;;  %s10585_s28 = sld [smem:[#allocation13_spill]]  ;;  %s10586_s25 = smov %s8111_s26 }
0x1058   : > { %s10587_s26 = smov %s8115_s27  ;;  %s10588_s27 = smov %s8285_s12 }
0x105d   : > { %p27_p11 = scmp.ge.s32.totalorder %s10585_s28, 6  }
0x105f   :  { %29 = sbr.rel (!%p27_p11) target bundleno = 11 (0xb), region = 170 }
0x1066   :  { %5748 = vsyncpa [#allocation3], 1 }
0x1067   :  { %5750 = vsyncpa [#allocation3 + $0x1], 1 }
0x1068   :  { %5751 = vsyncpa [#allocation6], 1 }
0x1069   :  { %5752 = vsyncpa [#allocation4], 1 }
0x106a   :  { %5754 = vsyncpa [#allocation4 + $0x1], 1 }

</bundles_post_ra>
